<compile_context>
chip_gen: v5e
topology: v5e:2x2
jax: 0.10.0
libtpu: 0.0.40
codegen_flags: <defaults>
</compile_context>

<pallas_src>
import functools

import jax
import jax.numpy as jnp
from jax.experimental import pallas as pl
from jax.experimental.pallas import tpu as pltpu

BN_EPS = 1e-5
CPAD = 128          # lane-dense channel padding
EXPANSION = 2


# ------------------------------ Pallas kernels ------------------------------

def _fused_conv1_conv2_kernel(x_ref, w1_ref, b1_ref, w2_ref, b2_ref, o_ref, y1_ref,
                              *, H, W, WO, TR, stride):
    """Fused conv1(1x1)+BN1+ReLU -> conv2(3x3, stride, pad=1)+BN2+ReLU for one
    (image, output-row-tile) grid step.

    x_ref : (1, H, W, CPAD) bf16   -- whole image, resident across its row tiles
    w1_ref: (CPAD, CPAD) bf16      -- conv1 weight, BN1 scale folded
    w2_ref: (3, 3*CPAD, CPAD) bf16 -- conv2 weight, dx taps stacked along K, BN2 folded
    o_ref : (1, TR, WO, CPAD) bf16 -- output row tile
    y1_ref: (NRIN, W+2, CPAD) bf16 -- conv1 output scratch with 1-col halo
    """
    rt = pl.program_id(1)
    row_base = rt * (TR * stride) - 1           # first conv1 row needed (may be -1)
    nrin = (TR - 1) * stride + 3                # conv1 rows needed for this tile

    # Zero the left/right column halo of the conv1 scratch.
    zcol = jnp.zeros((nrin, 1, CPAD), y1_ref.dtype)
    y1_ref[:, pl.ds(0, 1), :] = zcol
    y1_ref[:, pl.ds(W + 1, 1), :] = zcol

    w1 = w1_ref[...]
    b1 = b1_ref[...]

    # conv1 + BN1 + ReLU, one input row at a time (halo rows masked to zero,
    # matching conv2's zero spatial padding of conv1's output).
    for i in range(nrin):
        r = row_base + i
        rc = jnp.clip(r, 0, H - 1)
        xrow = x_ref[0, pl.ds(rc, 1), :, :].reshape(W, CPAD)
        y1 = jnp.dot(xrow, w1, preferred_element_type=jnp.float32) + b1
        y1 = jnp.maximum(y1, 0.0)
        valid = jnp.logical_and(r >= 0, r < H)
        y1 = jnp.where(valid, y1, 0.0)
        y1_ref[i, pl.ds(1, W), :] = y1.astype(y1_ref.dtype)

    b2 = b2_ref[...]

    # conv2 3x3 (stride s) + BN2 + ReLU: per output row, the 3 column taps are
    # K-stacked into a single (WO, 384) @ (384, 128) MXU op per kernel row dy.
    # Accumulation stays in registers; one output store per row (no VMEM RMW).
    for r in range(TR):
        acc = jnp.zeros((WO, CPAD), jnp.float32)
        for dy in range(3):
            if stride == 1:
                taps = [y1_ref[r + dy, pl.ds(dx, WO), :] for dx in range(3)]
            else:
                taps = [y1_ref[r * stride + dy, pl.ds(dx, WO, stride=stride), :]
                        for dx in range(3)]
            lhs = jnp.concatenate(taps, axis=-1)               # (WO, 3*CPAD)
            acc = acc + jnp.dot(lhs, w2_ref[dy],
                                preferred_element_type=jnp.float32)
        y2 = jnp.maximum(acc + b2, 0.0)
        o_ref[0, r, :, :] = y2.astype(o_ref.dtype)


def _tail_kernel(*refs, proj):
    """conv3(1x1)+BN3 + residual (identity or fused downsample 1x1 conv+BN) + ReLU."""
    if proj:
        y_ref, w3_ref, b3_ref, id_ref, wd_ref, bd_ref, o_ref = refs
    else:
        y_ref, w3_ref, b3_ref, id_ref, o_ref = refs
    acc = jnp.dot(y_ref[...], w3_ref[...], preferred_element_type=jnp.float32)
    acc = acc + b3_ref[...]
    if proj:
        acc = acc + jnp.dot(id_ref[...], wd_ref[...],
                            preferred_element_type=jnp.float32) + bd_ref[...]
    else:
        acc = acc + id_ref[...].astype(jnp.float32)
    o_ref[...] = jnp.maximum(acc, 0.0).astype(o_ref.dtype)


# ---------------------------- pallas_call wrappers ---------------------------

def _pick_row_tile(ho, n):
    """Output-row tile: prefer >= 4 total grid steps (dual-TC + pipelining)."""
    for t in (16, 8, 4, 2, 1):
        if ho % t == 0 and n * (ho // t) >= 4:
            return t
    for t in (16, 8, 4, 2, 1):
        if ho % t == 0:
            return t
    return ho


def _pick_m_tile(m):
    """Row tile for the pointwise tail GEMM; never the whole array."""
    for t in (1024, 512, 256, 128, 64, 32, 16, 8):
        if m % t == 0 and m // t >= 4:
            return t
    for t in (512, 256, 128, 64, 32, 16, 8):
        if m % t == 0 and m // t >= 2:
            return t
    return None


def fused_conv1_conv2(xp, w1, b1, w2k, b2, *, stride):
    """xp: (N,H,W,CPAD) bf16. Returns conv2(conv1(x)) activation, (N,HO,WO,CPAD) bf16."""
    n, h, w, c = xp.shape
    assert c == CPAD
    ho = (h - 1) // stride + 1
    wo = (w - 1) // stride + 1
    tr = _pick_row_tile(ho, n)
    nrt = ho // tr
    nrin = (tr - 1) * stride + 3

    flops = 2 * n * (nrt * nrin * w + 9 * ho * wo) * CPAD * CPAD
    bytes_acc = (n * h * w * CPAD * 2 + n * ho * wo * CPAD * 2
                 + (CPAD * CPAD + 3 * 3 * CPAD * CPAD) * 2 + 2 * CPAD * 4)

    return pl.pallas_call(
        functools.partial(_fused_conv1_conv2_kernel,
                          H=h, W=w, WO=wo, TR=tr, stride=stride),
        grid=(n, nrt),
        in_specs=[
            pl.BlockSpec((1, h, w, CPAD), lambda i, j: (i, 0, 0, 0)),   # resident per image
            pl.BlockSpec((CPAD, CPAD), lambda i, j: (0, 0)),
            pl.BlockSpec((1, CPAD), lambda i, j: (0, 0)),
            pl.BlockSpec((3, 3 * CPAD, CPAD), lambda i, j: (0, 0, 0)),
            pl.BlockSpec((1, CPAD), lambda i, j: (0, 0)),
        ],
        out_specs=pl.BlockSpec((1, tr, wo, CPAD), lambda i, j: (i, j, 0, 0)),
        out_shape=jax.ShapeDtypeStruct((n, ho, wo, CPAD), jnp.bfloat16),
        scratch_shapes=[pltpu.VMEM((nrin, w + 2, CPAD), jnp.bfloat16)],
        compiler_params=pltpu.CompilerParams(
            dimension_semantics=("parallel", "parallel")),
        cost_estimate=pl.CostEstimate(flops=int(flops), transcendentals=0,
                                      bytes_accessed=int(bytes_acc)),
    )(xp, w1, b1, w2k, b2)


def conv3_residual(y2d, w3, b3, id2d, wd=None, bd=None, out_dtype=jnp.bfloat16):
    """Fused conv3 + BN3 + (identity | downsample 1x1 conv + BN) + ReLU GEMM."""
    m0 = y2d.shape[0]
    tm = _pick_m_tile(m0)
    pad = 0
    if tm is None:
        tm = 128
        mp = ((m0 + tm - 1) // tm) * tm
        pad = mp - m0
        y2d = jnp.pad(y2d, ((0, pad), (0, 0)))
        id2d = jnp.pad(id2d, ((0, pad), (0, 0)))
    m = m0 + pad
    grid = (m // tm,)
    proj = wd is not None

    in_specs = [pl.BlockSpec((tm, CPAD), lambda i: (i, 0)),
                pl.BlockSpec((CPAD, CPAD), lambda i: (0, 0)),
                pl.BlockSpec((1, CPAD), lambda i: (0, 0)),
                pl.BlockSpec((tm, CPAD), lambda i: (i, 0))]
    args = [y2d, w3, b3, id2d]
    if proj:
        in_specs += [pl.BlockSpec((CPAD, CPAD), lambda i: (0, 0)),
                     pl.BlockSpec((1, CPAD), lambda i: (0, 0))]
        args += [wd, bd]

    flops = 2 * m * CPAD * CPAD * (2 if proj else 1)
    bytes_acc = (2 + (2 if proj else 0)) * CPAD * CPAD * 2 + 3 * m * CPAD * 2 + 2 * CPAD * 4

    out = pl.pallas_call(
        functools.partial(_tail_kernel, proj=proj),
        grid=grid,
        in_specs=in_specs,
        out_specs=pl.BlockSpec((tm, CPAD), lambda i: (i, 0)),
        out_shape=jax.ShapeDtypeStruct((m, CPAD), out_dtype),
        compiler_params=pltpu.CompilerParams(dimension_semantics=("parallel",)),
        cost_estimate=pl.CostEstimate(flops=int(flops), transcendentals=0,
                                      bytes_accessed=int(bytes_acc)),
    )(*args)
    return out[:m0] if pad else out


# ------------------------- parameters (init + folding) -----------------------

def _conv_init(key, cout, cin, kh, kw):
    std = (2.0 / (cout * kh * kw)) ** 0.5
    return std * jax.random.normal(key, (cout, cin, kh, kw), jnp.float32)


def _bn_init(key, c):
    # Inference-mode BN with non-trivial ("pretend trained") statistics so the
    # folded scale/bias actually exercise the epilogue math.
    k1, k2, k3, k4 = jax.random.split(key, 4)
    gamma = jax.random.uniform(k1, (c,), jnp.float32, 0.5, 1.5)
    beta = 0.1 * jax.random.normal(k2, (c,), jnp.float32)
    mean = 0.1 * jax.random.normal(k3, (c,), jnp.float32)
    var = jax.random.uniform(k4, (c,), jnp.float32, 0.5, 1.5)
    return gamma, beta, mean, var


def init_bottleneck(key, in_channel, out_channel, stride=1, groups=1,
                    width_per_group=64):
    assert groups == 1  # TODO(synk): groups > 1 not implemented
    width = int(out_channel * (width_per_group / 64.0)) * groups
    out_c = out_channel * EXPANSION
    ks = jax.random.split(key, 8)
    raw = {"stride": stride, "in_c": in_channel, "width": width, "out_c": out_c}
    raw["conv1_w"] = _conv_init(ks[0], width, in_channel, 1, 1)
    raw["bn1"] = _bn_init(ks[1], width)
    raw["conv2_w"] = _conv_init(ks[2], width, width, 3, 3)
    raw["bn2"] = _bn_init(ks[3], width)
    raw["conv3_w"] = _conv_init(ks[4], out_c, width, 1, 1)
    raw["bn3"] = _bn_init(ks[5], out_c)
    if stride != 1 or in_channel != out_c:
        # Standard ResNet downsample: 1x1 conv (stride) + BN.
        raw["ds_w"] = _conv_init(ks[6], out_c, in_channel, 1, 1)
        raw["ds_bn"] = _bn_init(ks[7], out_c)
    else:
        raw["ds_w"] = None
    return raw


def _fold_bn(bn):
    gamma, beta, mean, var = bn
    scale = gamma / jnp.sqrt(var + BN_EPS)
    return scale, beta - mean * scale


def _pad_pointwise_weight(w_oihw, scale):
    cout, cin = w_oihw.shape[0], w_oihw.shape[1]
    wm = jnp.transpose(w_oihw[:, :, 0, 0], (1, 0)) * scale[None, :]   # (cin, cout)
    wp = jnp.zeros((CPAD, CPAD), jnp.float32).at[:cin, :cout].set(wm)
    return wp.astype(jnp.bfloat16)


def _pack_conv3x3_weight(w_oihw, scale):
    """(cout,cin,3,3) -> (3, 3*CPAD, CPAD): dy major, dx stacked along K, BN folded."""
    cout, cin = w_oihw.shape[0], w_oihw.shape[1]
    w_hwio = jnp.transpose(w_oihw, (2, 3, 1, 0)) * scale[None, None, None, :]  # (3,3,cin,cout)
    wp = jnp.zeros((3, 3, CPAD, CPAD), jnp.float32).at[:, :, :cin, :cout].set(w_hwio)
    return wp.reshape(3, 3 * CPAD, CPAD).astype(jnp.bfloat16)


def _pad_bias(bias):
    c = bias.shape[0]
    return jnp.zeros((1, CPAD), jnp.float32).at[0, :c].set(bias)


def prepare_kernel_params(raw):
    assert raw["in_c"] <= CPAD and raw["width"] <= CPAD and raw["out_c"] <= CPAD
    kp = {"stride": raw["stride"], "out_c": raw["out_c"],
          "has_ds": raw["ds_w"] is not None}
    if not kp["has_ds"]:
        assert raw["stride"] == 1 and raw["in_c"] == raw["out_c"]
    s1, b1 = _fold_bn(raw["bn1"])
    s2, b2 = _fold_bn(raw["bn2"])
    s3, b3 = _fold_bn(raw["bn3"])
    kp["w1"] = _pad_pointwise_weight(raw["conv1_w"], s1); kp["b1"] = _pad_bias(b1)
    kp["w2k"] = _pack_conv3x3_weight(raw["conv2_w"], s2); kp["b2"] = _pad_bias(b2)
    kp["w3"] = _pad_pointwise_weight(raw["conv3_w"], s3); kp["b3"] = _pad_bias(b3)
    if kp["has_ds"]:
        sd, bd = _fold_bn(raw["ds_bn"])
        kp["wd"] = _pad_pointwise_weight(raw["ds_w"], sd)
        kp["bd"] = _pad_bias(bd)
    return kp


# --------------------------------- forward ----------------------------------

def bottleneck_forward(kp, x_nchw):
    x = jnp.transpose(x_nchw, (0, 2, 3, 1))                          # NHWC
    n, h, w, cin = x.shape
    s = kp["stride"]
    xp = jnp.pad(x, ((0, 0), (0, 0), (0, 0), (0, CPAD - cin))).astype(jnp.bfloat16)

    # conv1 (1x1)+bn1+relu  fused with  conv2 (3x3, stride s, pad 1)+bn2+relu
    y2 = fused_conv1_conv2(xp, kp["w1"], kp["b1"], kp["w2k"], kp["b2"], stride=s)
    ho, wo = y2.shape[1], y2.shape[2]
    y2d = y2.reshape(n * ho * wo, CPAD)

    # conv3 (1x1)+bn3 + residual (identity or fused downsample 1x1 conv+bn) + relu
    if kp["has_ds"]:
        # TODO(synk): fold the downsample stride into the tail kernel's index_map
        # instead of this XLA-side gather (only hit when stride > 1).
        xs = xp[:, ::s, ::s, :] if s > 1 else xp
        id2d = xs.reshape(n * ho * wo, CPAD)
        out2d = conv3_residual(y2d, kp["w3"], kp["b3"], id2d, kp["wd"], kp["bd"])
    else:
        id2d = xp.reshape(n * h * w, CPAD)
        out2d = conv3_residual(y2d, kp["w3"], kp["b3"], id2d)

    y = out2d.reshape(n, ho, wo, CPAD)[..., :kp["out_c"]]
    return jnp.transpose(y, (0, 3, 1, 2)).astype(jnp.float32)        # back to NCHW


# --------------------------- pure-JAX reference ------------------------------

def reference_forward(raw, x_nchw):
    def bn(x, p):
        g, b, m, v = p
        inv = g / jnp.sqrt(v + BN_EPS)
        return x * inv[None, :, None, None] + (b - m * inv)[None, :, None, None]

    def conv(x, w, stride=1, padding=0):
        return jax.lax.conv_general_dilated(
            x, w, window_strides=(stride, stride),
            padding=[(padding, padding), (padding, padding)],
            dimension_numbers=("NCHW", "OIHW", "NCHW"))

    s = raw["stride"]
    identity = x_nchw
    if raw["ds_w"] is not None:
        identity = bn(conv(x_nchw, raw["ds_w"], stride=s), raw["ds_bn"])
    out = jax.nn.relu(bn(conv(x_nchw, raw["conv1_w"]), raw["bn1"]))
    out = jax.nn.relu(bn(conv(out, raw["conv2_w"], stride=s, padding=1), raw["bn2"]))
    out = bn(conv(out, raw["conv3_w"]), raw["bn3"])
    return jax.nn.relu(out + identity)


# ----------------------------------- main ------------------------------------

if __name__ == "__main__":
    key = jax.random.PRNGKey(0)
    pkey, xkey = jax.random.split(key)

    in_channel, out_channel, stride = 4, 4, 1     # width=4, output channels = 8
    raw = init_bottleneck(pkey, in_channel, out_channel, stride=stride)
    kp = prepare_kernel_params(raw)

    x = jax.random.normal(xkey, (2, in_channel, 16, 16), jnp.float32)   # NCHW

    fwd = jax.jit(lambda xx: bottleneck_forward(kp, xx))
    out = jax.block_until_ready(fwd(x))

    assert out.shape == (2, out_channel * EXPANSION, 16 // stride, 16 // stride), out.shape
    assert bool(jnp.all(jnp.isfinite(out)))

    # Numerical check against a pure-JAX/XLA reference (bf16 MXU inputs -> loose tol).
    ref = jax.block_until_ready(jax.jit(lambda xx: reference_forward(raw, xx))(x))
    max_ref = float(jnp.max(jnp.abs(ref)))
    max_err = float(jnp.max(jnp.abs(out - ref)))
    assert max_err <= 5e-2 * max(1.0, max_ref), (max_err, max_ref)

    print("KERNEL_OK")
</pallas_src>

<mosaic_0001>
module attributes {stable_mosaic.version = 11 : i64} {
  func.func @_fused_conv1_conv2_kernel(%arg0: i32, %arg1: i32, %arg2: memref<1x16x16x128xbf16, #tpu.memory_space<vmem>>, %arg3: memref<128x128xbf16, #tpu.memory_space<vmem>>, %arg4: memref<1x128xf32, #tpu.memory_space<vmem>>, %arg5: memref<3x384x128xbf16, #tpu.memory_space<vmem>>, %arg6: memref<1x128xf32, #tpu.memory_space<vmem>>, %arg7: memref<1x8x16x128xbf16, #tpu.memory_space<vmem>>, %arg8: memref<10x18x128xbf16, #tpu.memory_space<vmem>>) attributes {dimension_semantics = [#tpu.dimension_semantics<parallel>, #tpu.dimension_semantics<parallel>], iteration_bounds = array<i64: 2, 2>, scalar_prefetch = 0 : i64, scratch_operands = 1 : i64, tpu.core_type = #tpu.core_type<tc>, window_params = [{transform_indices = @transform_0, window_bounds = array<i64: 1, 16, 16, 128>}, {pipeline_mode = #tpu.pipeline_mode<synchronous>, transform_indices = @transform_1, window_bounds = array<i64: 128, 128>}, {pipeline_mode = #tpu.pipeline_mode<synchronous>, transform_indices = @transform_2, window_bounds = array<i64: 1, 128>}, {pipeline_mode = #tpu.pipeline_mode<synchronous>, transform_indices = @transform_3, window_bounds = array<i64: 3, 384, 128>}, {pipeline_mode = #tpu.pipeline_mode<synchronous>, transform_indices = @transform_4, window_bounds = array<i64: 1, 128>}, {transform_indices = @transform_5, window_bounds = array<i64: 1, 8, 16, 128>}]} {
    %c8_i32 = arith.constant 8 : i32
    %0 = arith.muli %arg1, %c8_i32 : i32
    %c1_i32 = arith.constant 1 : i32
    %1 = arith.subi %0, %c1_i32 : i32
    %cst = arith.constant 0.000000e+00 : bf16
    %2 = vector.broadcast %cst : bf16 to vector<10x1x128xbf16>
    %c0 = arith.constant 0 : index
    %c0_0 = arith.constant 0 : index
    %c0_1 = arith.constant 0 : index
    %3 = vector.load %arg8[%c0, %c0_0, %c0_1] : memref<10x18x128xbf16, #tpu.memory_space<vmem>>, vector<10x1x128xbf16>
    tpu.vector_store %arg8[%c0, %c0_0, %c0_1], %2 {strides = array<i32>} : memref<10x18x128xbf16, #tpu.memory_space<vmem>>, vector<10x1x128xbf16>,
    %c0_2 = arith.constant 0 : index
    %c17 = arith.constant 17 : index
    %c0_3 = arith.constant 0 : index
    %4 = vector.load %arg8[%c0_2, %c17, %c0_3] : memref<10x18x128xbf16, #tpu.memory_space<vmem>>, vector<10x1x128xbf16>
    tpu.vector_store %arg8[%c0_2, %c17, %c0_3], %2 {strides = array<i32>} : memref<10x18x128xbf16, #tpu.memory_space<vmem>>, vector<10x1x128xbf16>,
    %c0_4 = arith.constant 0 : index
    %c0_5 = arith.constant 0 : index
    %5 = vector.load %arg3[%c0_4, %c0_5] : memref<128x128xbf16, #tpu.memory_space<vmem>>, vector<128x128xbf16>
    %c0_6 = arith.constant 0 : index
    %c0_7 = arith.constant 0 : index
    %6 = vector.load %arg4[%c0_6, %c0_7] : memref<1x128xf32, #tpu.memory_space<vmem>>, vector<1x128xf32>
    %c0_i32 = arith.constant 0 : i32
    %7 = arith.addi %1, %c0_i32 : i32
    %c0_i32_8 = arith.constant 0 : i32
    %c15_i32 = arith.constant 15 : i32
    %8 = arith.maxsi %c0_i32_8, %7 : i32
    %9 = arith.minsi %c15_i32, %8 : i32
    %c0_9 = arith.constant 0 : index
    %10 = arith.index_cast %9 : i32 to index
    %c0_10 = arith.constant 0 : index
    %c0_11 = arith.constant 0 : index
    %11 = vector.load %arg2[%c0_9, %10, %c0_10, %c0_11] : memref<1x16x16x128xbf16, #tpu.memory_space<vmem>>, vector<1x1x16x128xbf16>
    %12 = vector.shape_cast %11 : vector<1x1x16x128xbf16> to vector<1x16x128xbf16>
    %13 = vector.shape_cast %12 : vector<1x16x128xbf16> to vector<16x128xbf16>
    %cst_12 = arith.constant dense<0.000000e+00> : vector<16x128xf32>
    %14 = tpu.matmul %13, %5, %cst_12 {dimension_numbers = #tpu.dot_dimension_numbers<[1], [0], [0], [1], [0, 0, 1, 1], [], []>} : vector<16x128xbf16>, vector<128x128xbf16>, vector<16x128xf32> -> vector<16x128xf32>
    %15 = vector.broadcast %6 : vector<1x128xf32> to vector<16x128xf32>
    %16 = arith.addf %14, %15 : vector<16x128xf32>
    %cst_13 = arith.constant 0.000000e+00 : f32
    %17 = vector.broadcast %cst_13 : f32 to vector<16x128xf32>
    %18 = arith.maximumf %16, %17 : vector<16x128xf32>
    %c0_i32_14 = arith.constant 0 : i32
    %19 = arith.cmpi sge, %7, %c0_i32_14 : i32
    %c16_i32 = arith.constant 16 : i32
    %20 = arith.cmpi slt, %7, %c16_i32 : i32
    %21 = arith.andi %19, %20 : i1
    %cst_15 = arith.constant 0.000000e+00 : f32
    %22 = vector.broadcast %cst_15 : f32 to vector<16x128xf32>
    %23 = arith.select %21, %18, %22 : vector<16x128xf32>
    %24 = arith.truncf %23 : vector<16x128xf32> to vector<16x128xbf16>
    %c0_16 = arith.constant 0 : index
    %c1 = arith.constant 1 : index
    %c0_17 = arith.constant 0 : index
    %25 = vector.load %arg8[%c0_16, %c1, %c0_17] : memref<10x18x128xbf16, #tpu.memory_space<vmem>>, vector<1x16x128xbf16>
    %26 = vector.shape_cast %25 : vector<1x16x128xbf16> to vector<16x128xbf16>
    %27 = vector.shape_cast %24 : vector<16x128xbf16> to vector<1x16x128xbf16>
    tpu.vector_store %arg8[%c0_16, %c1, %c0_17], %27 {strides = array<i32>} : memref<10x18x128xbf16, #tpu.memory_space<vmem>>, vector<1x16x128xbf16>,
    %c1_i32_18 = arith.constant 1 : i32
    %28 = arith.addi %1, %c1_i32_18 : i32
    %c0_i32_19 = arith.constant 0 : i32
    %c15_i32_20 = arith.constant 15 : i32
    %29 = arith.maxsi %c0_i32_19, %28 : i32
    %30 = arith.minsi %c15_i32_20, %29 : i32
    %c0_21 = arith.constant 0 : index
    %31 = arith.index_cast %30 : i32 to index
    %c0_22 = arith.constant 0 : index
    %c0_23 = arith.constant 0 : index
    %32 = vector.load %arg2[%c0_21, %31, %c0_22, %c0_23] : memref<1x16x16x128xbf16, #tpu.memory_space<vmem>>, vector<1x1x16x128xbf16>
    %33 = vector.shape_cast %32 : vector<1x1x16x128xbf16> to vector<1x16x128xbf16>
    %34 = vector.shape_cast %33 : vector<1x16x128xbf16> to vector<16x128xbf16>
    %cst_24 = arith.constant dense<0.000000e+00> : vector<16x128xf32>
    %35 = tpu.matmul %34, %5, %cst_24 {dimension_numbers = #tpu.dot_dimension_numbers<[1], [0], [0], [1], [0, 0, 1, 1], [], []>} : vector<16x128xbf16>, vector<128x128xbf16>, vector<16x128xf32> -> vector<16x128xf32>
    %36 = vector.broadcast %6 : vector<1x128xf32> to vector<16x128xf32>
    %37 = arith.addf %35, %36 : vector<16x128xf32>
    %cst_25 = arith.constant 0.000000e+00 : f32
    %38 = vector.broadcast %cst_25 : f32 to vector<16x128xf32>
    %39 = arith.maximumf %37, %38 : vector<16x128xf32>
    %c0_i32_26 = arith.constant 0 : i32
    %40 = arith.cmpi sge, %28, %c0_i32_26 : i32
    %c16_i32_27 = arith.constant 16 : i32
    %41 = arith.cmpi slt, %28, %c16_i32_27 : i32
    %42 = arith.andi %40, %41 : i1
    %cst_28 = arith.constant 0.000000e+00 : f32
    %43 = vector.broadcast %cst_28 : f32 to vector<16x128xf32>
    %44 = arith.select %42, %39, %43 : vector<16x128xf32>
    %45 = arith.truncf %44 : vector<16x128xf32> to vector<16x128xbf16>
    %c1_29 = arith.constant 1 : index
    %c1_30 = arith.constant 1 : index
    %c0_31 = arith.constant 0 : index
    %46 = vector.load %arg8[%c1_29, %c1_30, %c0_31] : memref<10x18x128xbf16, #tpu.memory_space<vmem>>, vector<1x16x128xbf16>
    %47 = vector.shape_cast %46 : vector<1x16x128xbf16> to vector<16x128xbf16>
    %48 = vector.shape_cast %45 : vector<16x128xbf16> to vector<1x16x128xbf16>
    tpu.vector_store %arg8[%c1_29, %c1_30, %c0_31], %48 {strides = array<i32>} : memref<10x18x128xbf16, #tpu.memory_space<vmem>>, vector<1x16x128xbf16>,
    %c2_i32 = arith.constant 2 : i32
    %49 = arith.addi %1, %c2_i32 : i32
    %c0_i32_32 = arith.constant 0 : i32
    %c15_i32_33 = arith.constant 15 : i32
    %50 = arith.maxsi %c0_i32_32, %49 : i32
    %51 = arith.minsi %c15_i32_33, %50 : i32
    %c0_34 = arith.constant 0 : index
    %52 = arith.index_cast %51 : i32 to index
    %c0_35 = arith.constant 0 : index
    %c0_36 = arith.constant 0 : index
    %53 = vector.load %arg2[%c0_34, %52, %c0_35, %c0_36] : memref<1x16x16x128xbf16, #tpu.memory_space<vmem>>, vector<1x1x16x128xbf16>
    %54 = vector.shape_cast %53 : vector<1x1x16x128xbf16> to vector<1x16x128xbf16>
    %55 = vector.shape_cast %54 : vector<1x16x128xbf16> to vector<16x128xbf16>
    %cst_37 = arith.constant dense<0.000000e+00> : vector<16x128xf32>
    %56 = tpu.matmul %55, %5, %cst_37 {dimension_numbers = #tpu.dot_dimension_numbers<[1], [0], [0], [1], [0, 0, 1, 1], [], []>} : vector<16x128xbf16>, vector<128x128xbf16>, vector<16x128xf32> -> vector<16x128xf32>
    %57 = vector.broadcast %6 : vector<1x128xf32> to vector<16x128xf32>
    %58 = arith.addf %56, %57 : vector<16x128xf32>
    %cst_38 = arith.constant 0.000000e+00 : f32
    %59 = vector.broadcast %cst_38 : f32 to vector<16x128xf32>
    %60 = arith.maximumf %58, %59 : vector<16x128xf32>
    %c0_i32_39 = arith.constant 0 : i32
    %61 = arith.cmpi sge, %49, %c0_i32_39 : i32
    %c16_i32_40 = arith.constant 16 : i32
    %62 = arith.cmpi slt, %49, %c16_i32_40 : i32
    %63 = arith.andi %61, %62 : i1
    %cst_41 = arith.constant 0.000000e+00 : f32
    %64 = vector.broadcast %cst_41 : f32 to vector<16x128xf32>
    %65 = arith.select %63, %60, %64 : vector<16x128xf32>
    %66 = arith.truncf %65 : vector<16x128xf32> to vector<16x128xbf16>
    %c2 = arith.constant 2 : index
    %c1_42 = arith.constant 1 : index
    %c0_43 = arith.constant 0 : index
    %67 = vector.load %arg8[%c2, %c1_42, %c0_43] : memref<10x18x128xbf16, #tpu.memory_space<vmem>>, vector<1x16x128xbf16>
    %68 = vector.shape_cast %67 : vector<1x16x128xbf16> to vector<16x128xbf16>
    %69 = vector.shape_cast %66 : vector<16x128xbf16> to vector<1x16x128xbf16>
    tpu.vector_store %arg8[%c2, %c1_42, %c0_43], %69 {strides = array<i32>} : memref<10x18x128xbf16, #tpu.memory_space<vmem>>, vector<1x16x128xbf16>,
    %c3_i32 = arith.constant 3 : i32
    %70 = arith.addi %1, %c3_i32 : i32
    %c0_i32_44 = arith.constant 0 : i32
    %c15_i32_45 = arith.constant 15 : i32
    %71 = arith.maxsi %c0_i32_44, %70 : i32
    %72 = arith.minsi %c15_i32_45, %71 : i32
    %c0_46 = arith.constant 0 : index
    %73 = arith.index_cast %72 : i32 to index
    %c0_47 = arith.constant 0 : index
    %c0_48 = arith.constant 0 : index
    %74 = vector.load %arg2[%c0_46, %73, %c0_47, %c0_48] : memref<1x16x16x128xbf16, #tpu.memory_space<vmem>>, vector<1x1x16x128xbf16>
    %75 = vector.shape_cast %74 : vector<1x1x16x128xbf16> to vector<1x16x128xbf16>
    %76 = vector.shape_cast %75 : vector<1x16x128xbf16> to vector<16x128xbf16>
    %cst_49 = arith.constant dense<0.000000e+00> : vector<16x128xf32>
    %77 = tpu.matmul %76, %5, %cst_49 {dimension_numbers = #tpu.dot_dimension_numbers<[1], [0], [0], [1], [0, 0, 1, 1], [], []>} : vector<16x128xbf16>, vector<128x128xbf16>, vector<16x128xf32> -> vector<16x128xf32>
    %78 = vector.broadcast %6 : vector<1x128xf32> to vector<16x128xf32>
    %79 = arith.addf %77, %78 : vector<16x128xf32>
    %cst_50 = arith.constant 0.000000e+00 : f32
    %80 = vector.broadcast %cst_50 : f32 to vector<16x128xf32>
    %81 = arith.maximumf %79, %80 : vector<16x128xf32>
    %c0_i32_51 = arith.constant 0 : i32
    %82 = arith.cmpi sge, %70, %c0_i32_51 : i32
    %c16_i32_52 = arith.constant 16 : i32
    %83 = arith.cmpi slt, %70, %c16_i32_52 : i32
    %84 = arith.andi %82, %83 : i1
    %cst_53 = arith.constant 0.000000e+00 : f32
    %85 = vector.broadcast %cst_53 : f32 to vector<16x128xf32>
    %86 = arith.select %84, %81, %85 : vector<16x128xf32>
    %87 = arith.truncf %86 : vector<16x128xf32> to vector<16x128xbf16>
    %c3 = arith.constant 3 : index
    %c1_54 = arith.constant 1 : index
    %c0_55 = arith.constant 0 : index
    %88 = vector.load %arg8[%c3, %c1_54, %c0_55] : memref<10x18x128xbf16, #tpu.memory_space<vmem>>, vector<1x16x128xbf16>
    %89 = vector.shape_cast %88 : vector<1x16x128xbf16> to vector<16x128xbf16>
    %90 = vector.shape_cast %87 : vector<16x128xbf16> to vector<1x16x128xbf16>
    tpu.vector_store %arg8[%c3, %c1_54, %c0_55], %90 {strides = array<i32>} : memref<10x18x128xbf16, #tpu.memory_space<vmem>>, vector<1x16x128xbf16>,
    %c4_i32 = arith.constant 4 : i32
    %91 = arith.addi %1, %c4_i32 : i32
    %c0_i32_56 = arith.constant 0 : i32
    %c15_i32_57 = arith.constant 15 : i32
    %92 = arith.maxsi %c0_i32_56, %91 : i32
    %93 = arith.minsi %c15_i32_57, %92 : i32
    %c0_58 = arith.constant 0 : index
    %94 = arith.index_cast %93 : i32 to index
    %c0_59 = arith.constant 0 : index
    %c0_60 = arith.constant 0 : index
    %95 = vector.load %arg2[%c0_58, %94, %c0_59, %c0_60] : memref<1x16x16x128xbf16, #tpu.memory_space<vmem>>, vector<1x1x16x128xbf16>
    %96 = vector.shape_cast %95 : vector<1x1x16x128xbf16> to vector<1x16x128xbf16>
    %97 = vector.shape_cast %96 : vector<1x16x128xbf16> to vector<16x128xbf16>
    %cst_61 = arith.constant dense<0.000000e+00> : vector<16x128xf32>
    %98 = tpu.matmul %97, %5, %cst_61 {dimension_numbers = #tpu.dot_dimension_numbers<[1], [0], [0], [1], [0, 0, 1, 1], [], []>} : vector<16x128xbf16>, vector<128x128xbf16>, vector<16x128xf32> -> vector<16x128xf32>
    %99 = vector.broadcast %6 : vector<1x128xf32> to vector<16x128xf32>
    %100 = arith.addf %98, %99 : vector<16x128xf32>
    %cst_62 = arith.constant 0.000000e+00 : f32
    %101 = vector.broadcast %cst_62 : f32 to vector<16x128xf32>
    %102 = arith.maximumf %100, %101 : vector<16x128xf32>
    %c0_i32_63 = arith.constant 0 : i32
    %103 = arith.cmpi sge, %91, %c0_i32_63 : i32
    %c16_i32_64 = arith.constant 16 : i32
    %104 = arith.cmpi slt, %91, %c16_i32_64 : i32
    %105 = arith.andi %103, %104 : i1
    %cst_65 = arith.constant 0.000000e+00 : f32
    %106 = vector.broadcast %cst_65 : f32 to vector<16x128xf32>
    %107 = arith.select %105, %102, %106 : vector<16x128xf32>
    %108 = arith.truncf %107 : vector<16x128xf32> to vector<16x128xbf16>
    %c4 = arith.constant 4 : index
    %c1_66 = arith.constant 1 : index
    %c0_67 = arith.constant 0 : index
    %109 = vector.load %arg8[%c4, %c1_66, %c0_67] : memref<10x18x128xbf16, #tpu.memory_space<vmem>>, vector<1x16x128xbf16>
    %110 = vector.shape_cast %109 : vector<1x16x128xbf16> to vector<16x128xbf16>
    %111 = vector.shape_cast %108 : vector<16x128xbf16> to vector<1x16x128xbf16>
    tpu.vector_store %arg8[%c4, %c1_66, %c0_67], %111 {strides = array<i32>} : memref<10x18x128xbf16, #tpu.memory_space<vmem>>, vector<1x16x128xbf16>,
    %c5_i32 = arith.constant 5 : i32
    %112 = arith.addi %1, %c5_i32 : i32
    %c0_i32_68 = arith.constant 0 : i32
    %c15_i32_69 = arith.constant 15 : i32
    %113 = arith.maxsi %c0_i32_68, %112 : i32
    %114 = arith.minsi %c15_i32_69, %113 : i32
    %c0_70 = arith.constant 0 : index
    %115 = arith.index_cast %114 : i32 to index
    %c0_71 = arith.constant 0 : index
    %c0_72 = arith.constant 0 : index
    %116 = vector.load %arg2[%c0_70, %115, %c0_71, %c0_72] : memref<1x16x16x128xbf16, #tpu.memory_space<vmem>>, vector<1x1x16x128xbf16>
    %117 = vector.shape_cast %116 : vector<1x1x16x128xbf16> to vector<1x16x128xbf16>
    %118 = vector.shape_cast %117 : vector<1x16x128xbf16> to vector<16x128xbf16>
    %cst_73 = arith.constant dense<0.000000e+00> : vector<16x128xf32>
    %119 = tpu.matmul %118, %5, %cst_73 {dimension_numbers = #tpu.dot_dimension_numbers<[1], [0], [0], [1], [0, 0, 1, 1], [], []>} : vector<16x128xbf16>, vector<128x128xbf16>, vector<16x128xf32> -> vector<16x128xf32>
    %120 = vector.broadcast %6 : vector<1x128xf32> to vector<16x128xf32>
    %121 = arith.addf %119, %120 : vector<16x128xf32>
    %cst_74 = arith.constant 0.000000e+00 : f32
    %122 = vector.broadcast %cst_74 : f32 to vector<16x128xf32>
    %123 = arith.maximumf %121, %122 : vector<16x128xf32>
    %c0_i32_75 = arith.constant 0 : i32
    %124 = arith.cmpi sge, %112, %c0_i32_75 : i32
    %c16_i32_76 = arith.constant 16 : i32
    %125 = arith.cmpi slt, %112, %c16_i32_76 : i32
    %126 = arith.andi %124, %125 : i1
    %cst_77 = arith.constant 0.000000e+00 : f32
    %127 = vector.broadcast %cst_77 : f32 to vector<16x128xf32>
    %128 = arith.select %126, %123, %127 : vector<16x128xf32>
    %129 = arith.truncf %128 : vector<16x128xf32> to vector<16x128xbf16>
    %c5 = arith.constant 5 : index
    %c1_78 = arith.constant 1 : index
    %c0_79 = arith.constant 0 : index
    %130 = vector.load %arg8[%c5, %c1_78, %c0_79] : memref<10x18x128xbf16, #tpu.memory_space<vmem>>, vector<1x16x128xbf16>
    %131 = vector.shape_cast %130 : vector<1x16x128xbf16> to vector<16x128xbf16>
    %132 = vector.shape_cast %129 : vector<16x128xbf16> to vector<1x16x128xbf16>
    tpu.vector_store %arg8[%c5, %c1_78, %c0_79], %132 {strides = array<i32>} : memref<10x18x128xbf16, #tpu.memory_space<vmem>>, vector<1x16x128xbf16>,
    %c6_i32 = arith.constant 6 : i32
    %133 = arith.addi %1, %c6_i32 : i32
    %c0_i32_80 = arith.constant 0 : i32
    %c15_i32_81 = arith.constant 15 : i32
    %134 = arith.maxsi %c0_i32_80, %133 : i32
    %135 = arith.minsi %c15_i32_81, %134 : i32
    %c0_82 = arith.constant 0 : index
    %136 = arith.index_cast %135 : i32 to index
    %c0_83 = arith.constant 0 : index
    %c0_84 = arith.constant 0 : index
    %137 = vector.load %arg2[%c0_82, %136, %c0_83, %c0_84] : memref<1x16x16x128xbf16, #tpu.memory_space<vmem>>, vector<1x1x16x128xbf16>
    %138 = vector.shape_cast %137 : vector<1x1x16x128xbf16> to vector<1x16x128xbf16>
    %139 = vector.shape_cast %138 : vector<1x16x128xbf16> to vector<16x128xbf16>
    %cst_85 = arith.constant dense<0.000000e+00> : vector<16x128xf32>
    %140 = tpu.matmul %139, %5, %cst_85 {dimension_numbers = #tpu.dot_dimension_numbers<[1], [0], [0], [1], [0, 0, 1, 1], [], []>} : vector<16x128xbf16>, vector<128x128xbf16>, vector<16x128xf32> -> vector<16x128xf32>
    %141 = vector.broadcast %6 : vector<1x128xf32> to vector<16x128xf32>
    %142 = arith.addf %140, %141 : vector<16x128xf32>
    %cst_86 = arith.constant 0.000000e+00 : f32
    %143 = vector.broadcast %cst_86 : f32 to vector<16x128xf32>
    %144 = arith.maximumf %142, %143 : vector<16x128xf32>
    %c0_i32_87 = arith.constant 0 : i32
    %145 = arith.cmpi sge, %133, %c0_i32_87 : i32
    %c16_i32_88 = arith.constant 16 : i32
    %146 = arith.cmpi slt, %133, %c16_i32_88 : i32
    %147 = arith.andi %145, %146 : i1
    %cst_89 = arith.constant 0.000000e+00 : f32
    %148 = vector.broadcast %cst_89 : f32 to vector<16x128xf32>
    %149 = arith.select %147, %144, %148 : vector<16x128xf32>
    %150 = arith.truncf %149 : vector<16x128xf32> to vector<16x128xbf16>
    %c6 = arith.constant 6 : index
    %c1_90 = arith.constant 1 : index
    %c0_91 = arith.constant 0 : index
    %151 = vector.load %arg8[%c6, %c1_90, %c0_91] : memref<10x18x128xbf16, #tpu.memory_space<vmem>>, vector<1x16x128xbf16>
    %152 = vector.shape_cast %151 : vector<1x16x128xbf16> to vector<16x128xbf16>
    %153 = vector.shape_cast %150 : vector<16x128xbf16> to vector<1x16x128xbf16>
    tpu.vector_store %arg8[%c6, %c1_90, %c0_91], %153 {strides = array<i32>} : memref<10x18x128xbf16, #tpu.memory_space<vmem>>, vector<1x16x128xbf16>,
    %c7_i32 = arith.constant 7 : i32
    %154 = arith.addi %1, %c7_i32 : i32
    %c0_i32_92 = arith.constant 0 : i32
    %c15_i32_93 = arith.constant 15 : i32
    %155 = arith.maxsi %c0_i32_92, %154 : i32
    %156 = arith.minsi %c15_i32_93, %155 : i32
    %c0_94 = arith.constant 0 : index
    %157 = arith.index_cast %156 : i32 to index
    %c0_95 = arith.constant 0 : index
    %c0_96 = arith.constant 0 : index
    %158 = vector.load %arg2[%c0_94, %157, %c0_95, %c0_96] : memref<1x16x16x128xbf16, #tpu.memory_space<vmem>>, vector<1x1x16x128xbf16>
    %159 = vector.shape_cast %158 : vector<1x1x16x128xbf16> to vector<1x16x128xbf16>
    %160 = vector.shape_cast %159 : vector<1x16x128xbf16> to vector<16x128xbf16>
    %cst_97 = arith.constant dense<0.000000e+00> : vector<16x128xf32>
    %161 = tpu.matmul %160, %5, %cst_97 {dimension_numbers = #tpu.dot_dimension_numbers<[1], [0], [0], [1], [0, 0, 1, 1], [], []>} : vector<16x128xbf16>, vector<128x128xbf16>, vector<16x128xf32> -> vector<16x128xf32>
    %162 = vector.broadcast %6 : vector<1x128xf32> to vector<16x128xf32>
    %163 = arith.addf %161, %162 : vector<16x128xf32>
    %cst_98 = arith.constant 0.000000e+00 : f32
    %164 = vector.broadcast %cst_98 : f32 to vector<16x128xf32>
    %165 = arith.maximumf %163, %164 : vector<16x128xf32>
    %c0_i32_99 = arith.constant 0 : i32
    %166 = arith.cmpi sge, %154, %c0_i32_99 : i32
    %c16_i32_100 = arith.constant 16 : i32
    %167 = arith.cmpi slt, %154, %c16_i32_100 : i32
    %168 = arith.andi %166, %167 : i1
    %cst_101 = arith.constant 0.000000e+00 : f32
    %169 = vector.broadcast %cst_101 : f32 to vector<16x128xf32>
    %170 = arith.select %168, %165, %169 : vector<16x128xf32>
    %171 = arith.truncf %170 : vector<16x128xf32> to vector<16x128xbf16>
    %c7 = arith.constant 7 : index
    %c1_102 = arith.constant 1 : index
    %c0_103 = arith.constant 0 : index
    %172 = vector.load %arg8[%c7, %c1_102, %c0_103] : memref<10x18x128xbf16, #tpu.memory_space<vmem>>, vector<1x16x128xbf16>
    %173 = vector.shape_cast %172 : vector<1x16x128xbf16> to vector<16x128xbf16>
    %174 = vector.shape_cast %171 : vector<16x128xbf16> to vector<1x16x128xbf16>
    tpu.vector_store %arg8[%c7, %c1_102, %c0_103], %174 {strides = array<i32>} : memref<10x18x128xbf16, #tpu.memory_space<vmem>>, vector<1x16x128xbf16>,
    %c8_i32_104 = arith.constant 8 : i32
    %175 = arith.addi %1, %c8_i32_104 : i32
    %c0_i32_105 = arith.constant 0 : i32
    %c15_i32_106 = arith.constant 15 : i32
    %176 = arith.maxsi %c0_i32_105, %175 : i32
    %177 = arith.minsi %c15_i32_106, %176 : i32
    %c0_107 = arith.constant 0 : index
    %178 = arith.index_cast %177 : i32 to index
    %c0_108 = arith.constant 0 : index
    %c0_109 = arith.constant 0 : index
    %179 = vector.load %arg2[%c0_107, %178, %c0_108, %c0_109] : memref<1x16x16x128xbf16, #tpu.memory_space<vmem>>, vector<1x1x16x128xbf16>
    %180 = vector.shape_cast %179 : vector<1x1x16x128xbf16> to vector<1x16x128xbf16>
    %181 = vector.shape_cast %180 : vector<1x16x128xbf16> to vector<16x128xbf16>
    %cst_110 = arith.constant dense<0.000000e+00> : vector<16x128xf32>
    %182 = tpu.matmul %181, %5, %cst_110 {dimension_numbers = #tpu.dot_dimension_numbers<[1], [0], [0], [1], [0, 0, 1, 1], [], []>} : vector<16x128xbf16>, vector<128x128xbf16>, vector<16x128xf32> -> vector<16x128xf32>
    %183 = vector.broadcast %6 : vector<1x128xf32> to vector<16x128xf32>
    %184 = arith.addf %182, %183 : vector<16x128xf32>
    %cst_111 = arith.constant 0.000000e+00 : f32
    %185 = vector.broadcast %cst_111 : f32 to vector<16x128xf32>
    %186 = arith.maximumf %184, %185 : vector<16x128xf32>
    %c0_i32_112 = arith.constant 0 : i32
    %187 = arith.cmpi sge, %175, %c0_i32_112 : i32
    %c16_i32_113 = arith.constant 16 : i32
    %188 = arith.cmpi slt, %175, %c16_i32_113 : i32
    %189 = arith.andi %187, %188 : i1
    %cst_114 = arith.constant 0.000000e+00 : f32
    %190 = vector.broadcast %cst_114 : f32 to vector<16x128xf32>
    %191 = arith.select %189, %186, %190 : vector<16x128xf32>
    %192 = arith.truncf %191 : vector<16x128xf32> to vector<16x128xbf16>
    %c8 = arith.constant 8 : index
    %c1_115 = arith.constant 1 : index
    %c0_116 = arith.constant 0 : index
    %193 = vector.load %arg8[%c8, %c1_115, %c0_116] : memref<10x18x128xbf16, #tpu.memory_space<vmem>>, vector<1x16x128xbf16>
    %194 = vector.shape_cast %193 : vector<1x16x128xbf16> to vector<16x128xbf16>
    %195 = vector.shape_cast %192 : vector<16x128xbf16> to vector<1x16x128xbf16>
    tpu.vector_store %arg8[%c8, %c1_115, %c0_116], %195 {strides = array<i32>} : memref<10x18x128xbf16, #tpu.memory_space<vmem>>, vector<1x16x128xbf16>,
    %c9_i32 = arith.constant 9 : i32
    %196 = arith.addi %1, %c9_i32 : i32
    %c0_i32_117 = arith.constant 0 : i32
    %c15_i32_118 = arith.constant 15 : i32
    %197 = arith.maxsi %c0_i32_117, %196 : i32
    %198 = arith.minsi %c15_i32_118, %197 : i32
    %c0_119 = arith.constant 0 : index
    %199 = arith.index_cast %198 : i32 to index
    %c0_120 = arith.constant 0 : index
    %c0_121 = arith.constant 0 : index
    %200 = vector.load %arg2[%c0_119, %199, %c0_120, %c0_121] : memref<1x16x16x128xbf16, #tpu.memory_space<vmem>>, vector<1x1x16x128xbf16>
    %201 = vector.shape_cast %200 : vector<1x1x16x128xbf16> to vector<1x16x128xbf16>
    %202 = vector.shape_cast %201 : vector<1x16x128xbf16> to vector<16x128xbf16>
    %cst_122 = arith.constant dense<0.000000e+00> : vector<16x128xf32>
    %203 = tpu.matmul %202, %5, %cst_122 {dimension_numbers = #tpu.dot_dimension_numbers<[1], [0], [0], [1], [0, 0, 1, 1], [], []>} : vector<16x128xbf16>, vector<128x128xbf16>, vector<16x128xf32> -> vector<16x128xf32>
    %204 = vector.broadcast %6 : vector<1x128xf32> to vector<16x128xf32>
    %205 = arith.addf %203, %204 : vector<16x128xf32>
    %cst_123 = arith.constant 0.000000e+00 : f32
    %206 = vector.broadcast %cst_123 : f32 to vector<16x128xf32>
    %207 = arith.maximumf %205, %206 : vector<16x128xf32>
    %c0_i32_124 = arith.constant 0 : i32
    %208 = arith.cmpi sge, %196, %c0_i32_124 : i32
    %c16_i32_125 = arith.constant 16 : i32
    %209 = arith.cmpi slt, %196, %c16_i32_125 : i32
    %210 = arith.andi %208, %209 : i1
    %cst_126 = arith.constant 0.000000e+00 : f32
    %211 = vector.broadcast %cst_126 : f32 to vector<16x128xf32>
    %212 = arith.select %210, %207, %211 : vector<16x128xf32>
    %213 = arith.truncf %212 : vector<16x128xf32> to vector<16x128xbf16>
    %c9 = arith.constant 9 : index
    %c1_127 = arith.constant 1 : index
    %c0_128 = arith.constant 0 : index
    %214 = vector.load %arg8[%c9, %c1_127, %c0_128] : memref<10x18x128xbf16, #tpu.memory_space<vmem>>, vector<1x16x128xbf16>
    %215 = vector.shape_cast %214 : vector<1x16x128xbf16> to vector<16x128xbf16>
    %216 = vector.shape_cast %213 : vector<16x128xbf16> to vector<1x16x128xbf16>
    tpu.vector_store %arg8[%c9, %c1_127, %c0_128], %216 {strides = array<i32>} : memref<10x18x128xbf16, #tpu.memory_space<vmem>>, vector<1x16x128xbf16>,
    %c0_129 = arith.constant 0 : index
    %c0_130 = arith.constant 0 : index
    %217 = vector.load %arg6[%c0_129, %c0_130] : memref<1x128xf32, #tpu.memory_space<vmem>>, vector<1x128xf32>
    %cst_131 = arith.constant 0.000000e+00 : f32
    %218 = vector.broadcast %cst_131 : f32 to vector<16x128xf32>
    %c0_132 = arith.constant 0 : index
    %c0_133 = arith.constant 0 : index
    %c0_134 = arith.constant 0 : index
    %219 = vector.load %arg8[%c0_132, %c0_133, %c0_134] : memref<10x18x128xbf16, #tpu.memory_space<vmem>>, vector<1x16x128xbf16>
    %220 = vector.shape_cast %219 : vector<1x16x128xbf16> to vector<16x128xbf16>
    %c0_135 = arith.constant 0 : index
    %c1_136 = arith.constant 1 : index
    %c0_137 = arith.constant 0 : index
    %221 = vector.load %arg8[%c0_135, %c1_136, %c0_137] : memref<10x18x128xbf16, #tpu.memory_space<vmem>>, vector<1x16x128xbf16>
    %222 = vector.shape_cast %221 : vector<1x16x128xbf16> to vector<16x128xbf16>
    %c0_138 = arith.constant 0 : index
    %c2_139 = arith.constant 2 : index
    %c0_140 = arith.constant 0 : index
    %223 = vector.load %arg8[%c0_138, %c2_139, %c0_140] : memref<10x18x128xbf16, #tpu.memory_space<vmem>>, vector<1x16x128xbf16>
    %224 = vector.shape_cast %223 : vector<1x16x128xbf16> to vector<16x128xbf16>
    %225 = tpu.concatenate %220, %222, %224 in 1 : vector<16x128xbf16>, vector<16x128xbf16>, vector<16x128xbf16> -> vector<16x384xbf16>
    %c0_141 = arith.constant 0 : index
    %c0_142 = arith.constant 0 : index
    %c0_143 = arith.constant 0 : index
    %226 = vector.load %arg5[%c0_141, %c0_142, %c0_143] : memref<3x384x128xbf16, #tpu.memory_space<vmem>>, vector<1x384x128xbf16>
    %227 = vector.shape_cast %226 : vector<1x384x128xbf16> to vector<384x128xbf16>
    %cst_144 = arith.constant dense<0.000000e+00> : vector<16x128xf32>
    %228 = tpu.matmul %225, %227, %cst_144 {dimension_numbers = #tpu.dot_dimension_numbers<[1], [0], [0], [1], [0, 0, 1, 1], [], []>} : vector<16x384xbf16>, vector<384x128xbf16>, vector<16x128xf32> -> vector<16x128xf32>
    %229 = arith.addf %218, %228 : vector<16x128xf32>
    %c1_145 = arith.constant 1 : index
    %c0_146 = arith.constant 0 : index
    %c0_147 = arith.constant 0 : index
    %230 = vector.load %arg8[%c1_145, %c0_146, %c0_147] : memref<10x18x128xbf16, #tpu.memory_space<vmem>>, vector<1x16x128xbf16>
    %231 = vector.shape_cast %230 : vector<1x16x128xbf16> to vector<16x128xbf16>
    %c1_148 = arith.constant 1 : index
    %c1_149 = arith.constant 1 : index
    %c0_150 = arith.constant 0 : index
    %232 = vector.load %arg8[%c1_148, %c1_149, %c0_150] : memref<10x18x128xbf16, #tpu.memory_space<vmem>>, vector<1x16x128xbf16>
    %233 = vector.shape_cast %232 : vector<1x16x128xbf16> to vector<16x128xbf16>
    %c1_151 = arith.constant 1 : index
    %c2_152 = arith.constant 2 : index
    %c0_153 = arith.constant 0 : index
    %234 = vector.load %arg8[%c1_151, %c2_152, %c0_153] : memref<10x18x128xbf16, #tpu.memory_space<vmem>>, vector<1x16x128xbf16>
    %235 = vector.shape_cast %234 : vector<1x16x128xbf16> to vector<16x128xbf16>
    %236 = tpu.concatenate %231, %233, %235 in 1 : vector<16x128xbf16>, vector<16x128xbf16>, vector<16x128xbf16> -> vector<16x384xbf16>
    %c1_154 = arith.constant 1 : index
    %c0_155 = arith.constant 0 : index
    %c0_156 = arith.constant 0 : index
    %237 = vector.load %arg5[%c1_154, %c0_155, %c0_156] : memref<3x384x128xbf16, #tpu.memory_space<vmem>>, vector<1x384x128xbf16>
    %238 = vector.shape_cast %237 : vector<1x384x128xbf16> to vector<384x128xbf16>
    %cst_157 = arith.constant dense<0.000000e+00> : vector<16x128xf32>
    %239 = tpu.matmul %236, %238, %cst_157 {dimension_numbers = #tpu.dot_dimension_numbers<[1], [0], [0], [1], [0, 0, 1, 1], [], []>} : vector<16x384xbf16>, vector<384x128xbf16>, vector<16x128xf32> -> vector<16x128xf32>
    %240 = arith.addf %229, %239 : vector<16x128xf32>
    %c2_158 = arith.constant 2 : index
    %c0_159 = arith.constant 0 : index
    %c0_160 = arith.constant 0 : index
    %241 = vector.load %arg8[%c2_158, %c0_159, %c0_160] : memref<10x18x128xbf16, #tpu.memory_space<vmem>>, vector<1x16x128xbf16>
    %242 = vector.shape_cast %241 : vector<1x16x128xbf16> to vector<16x128xbf16>
    %c2_161 = arith.constant 2 : index
    %c1_162 = arith.constant 1 : index
    %c0_163 = arith.constant 0 : index
    %243 = vector.load %arg8[%c2_161, %c1_162, %c0_163] : memref<10x18x128xbf16, #tpu.memory_space<vmem>>, vector<1x16x128xbf16>
    %244 = vector.shape_cast %243 : vector<1x16x128xbf16> to vector<16x128xbf16>
    %c2_164 = arith.constant 2 : index
    %c2_165 = arith.constant 2 : index
    %c0_166 = arith.constant 0 : index
    %245 = vector.load %arg8[%c2_164, %c2_165, %c0_166] : memref<10x18x128xbf16, #tpu.memory_space<vmem>>, vector<1x16x128xbf16>
    %246 = vector.shape_cast %245 : vector<1x16x128xbf16> to vector<16x128xbf16>
    %247 = tpu.concatenate %242, %244, %246 in 1 : vector<16x128xbf16>, vector<16x128xbf16>, vector<16x128xbf16> -> vector<16x384xbf16>
    %c2_167 = arith.constant 2 : index
    %c0_168 = arith.constant 0 : index
    %c0_169 = arith.constant 0 : index
    %248 = vector.load %arg5[%c2_167, %c0_168, %c0_169] : memref<3x384x128xbf16, #tpu.memory_space<vmem>>, vector<1x384x128xbf16>
    %249 = vector.shape_cast %248 : vector<1x384x128xbf16> to vector<384x128xbf16>
    %cst_170 = arith.constant dense<0.000000e+00> : vector<16x128xf32>
    %250 = tpu.matmul %247, %249, %cst_170 {dimension_numbers = #tpu.dot_dimension_numbers<[1], [0], [0], [1], [0, 0, 1, 1], [], []>} : vector<16x384xbf16>, vector<384x128xbf16>, vector<16x128xf32> -> vector<16x128xf32>
    %251 = arith.addf %240, %250 : vector<16x128xf32>
    %252 = vector.broadcast %217 : vector<1x128xf32> to vector<16x128xf32>
    %253 = arith.addf %251, %252 : vector<16x128xf32>
    %cst_171 = arith.constant 0.000000e+00 : f32
    %254 = vector.broadcast %cst_171 : f32 to vector<16x128xf32>
    %255 = arith.maximumf %253, %254 : vector<16x128xf32>
    %256 = arith.truncf %255 : vector<16x128xf32> to vector<16x128xbf16>
    %c0_172 = arith.constant 0 : index
    %c0_173 = arith.constant 0 : index
    %c0_174 = arith.constant 0 : index
    %c0_175 = arith.constant 0 : index
    %257 = vector.load %arg7[%c0_172, %c0_173, %c0_174, %c0_175] : memref<1x8x16x128xbf16, #tpu.memory_space<vmem>>, vector<1x1x16x128xbf16>
    %258 = vector.shape_cast %257 : vector<1x1x16x128xbf16> to vector<16x128xbf16>
    %259 = vector.shape_cast %256 : vector<16x128xbf16> to vector<1x1x16x128xbf16>
    tpu.vector_store %arg7[%c0_172, %c0_173, %c0_174, %c0_175], %259 {strides = array<i32>} : memref<1x8x16x128xbf16, #tpu.memory_space<vmem>>, vector<1x1x16x128xbf16>,
    %cst_176 = arith.constant 0.000000e+00 : f32
    %260 = vector.broadcast %cst_176 : f32 to vector<16x128xf32>
    %c1_177 = arith.constant 1 : index
    %c0_178 = arith.constant 0 : index
    %c0_179 = arith.constant 0 : index
    %261 = vector.load %arg8[%c1_177, %c0_178, %c0_179] : memref<10x18x128xbf16, #tpu.memory_space<vmem>>, vector<1x16x128xbf16>
    %262 = vector.shape_cast %261 : vector<1x16x128xbf16> to vector<16x128xbf16>
    %c1_180 = arith.constant 1 : index
    %c1_181 = arith.constant 1 : index
    %c0_182 = arith.constant 0 : index
    %263 = vector.load %arg8[%c1_180, %c1_181, %c0_182] : memref<10x18x128xbf16, #tpu.memory_space<vmem>>, vector<1x16x128xbf16>
    %264 = vector.shape_cast %263 : vector<1x16x128xbf16> to vector<16x128xbf16>
    %c1_183 = arith.constant 1 : index
    %c2_184 = arith.constant 2 : index
    %c0_185 = arith.constant 0 : index
    %265 = vector.load %arg8[%c1_183, %c2_184, %c0_185] : memref<10x18x128xbf16, #tpu.memory_space<vmem>>, vector<1x16x128xbf16>
    %266 = vector.shape_cast %265 : vector<1x16x128xbf16> to vector<16x128xbf16>
    %267 = tpu.concatenate %262, %264, %266 in 1 : vector<16x128xbf16>, vector<16x128xbf16>, vector<16x128xbf16> -> vector<16x384xbf16>
    %c0_186 = arith.constant 0 : index
    %c0_187 = arith.constant 0 : index
    %c0_188 = arith.constant 0 : index
    %268 = vector.load %arg5[%c0_186, %c0_187, %c0_188] : memref<3x384x128xbf16, #tpu.memory_space<vmem>>, vector<1x384x128xbf16>
    %269 = vector.shape_cast %268 : vector<1x384x128xbf16> to vector<384x128xbf16>
    %cst_189 = arith.constant dense<0.000000e+00> : vector<16x128xf32>
    %270 = tpu.matmul %267, %269, %cst_189 {dimension_numbers = #tpu.dot_dimension_numbers<[1], [0], [0], [1], [0, 0, 1, 1], [], []>} : vector<16x384xbf16>, vector<384x128xbf16>, vector<16x128xf32> -> vector<16x128xf32>
    %271 = arith.addf %260, %270 : vector<16x128xf32>
    %c2_190 = arith.constant 2 : index
    %c0_191 = arith.constant 0 : index
    %c0_192 = arith.constant 0 : index
    %272 = vector.load %arg8[%c2_190, %c0_191, %c0_192] : memref<10x18x128xbf16, #tpu.memory_space<vmem>>, vector<1x16x128xbf16>
    %273 = vector.shape_cast %272 : vector<1x16x128xbf16> to vector<16x128xbf16>
    %c2_193 = arith.constant 2 : index
    %c1_194 = arith.constant 1 : index
    %c0_195 = arith.constant 0 : index
    %274 = vector.load %arg8[%c2_193, %c1_194, %c0_195] : memref<10x18x128xbf16, #tpu.memory_space<vmem>>, vector<1x16x128xbf16>
    %275 = vector.shape_cast %274 : vector<1x16x128xbf16> to vector<16x128xbf16>
    %c2_196 = arith.constant 2 : index
    %c2_197 = arith.constant 2 : index
    %c0_198 = arith.constant 0 : index
    %276 = vector.load %arg8[%c2_196, %c2_197, %c0_198] : memref<10x18x128xbf16, #tpu.memory_space<vmem>>, vector<1x16x128xbf16>
    %277 = vector.shape_cast %276 : vector<1x16x128xbf16> to vector<16x128xbf16>
    %278 = tpu.concatenate %273, %275, %277 in 1 : vector<16x128xbf16>, vector<16x128xbf16>, vector<16x128xbf16> -> vector<16x384xbf16>
    %c1_199 = arith.constant 1 : index
    %c0_200 = arith.constant 0 : index
    %c0_201 = arith.constant 0 : index
    %279 = vector.load %arg5[%c1_199, %c0_200, %c0_201] : memref<3x384x128xbf16, #tpu.memory_space<vmem>>, vector<1x384x128xbf16>
    %280 = vector.shape_cast %279 : vector<1x384x128xbf16> to vector<384x128xbf16>
    %cst_202 = arith.constant dense<0.000000e+00> : vector<16x128xf32>
    %281 = tpu.matmul %278, %280, %cst_202 {dimension_numbers = #tpu.dot_dimension_numbers<[1], [0], [0], [1], [0, 0, 1, 1], [], []>} : vector<16x384xbf16>, vector<384x128xbf16>, vector<16x128xf32> -> vector<16x128xf32>
    %282 = arith.addf %271, %281 : vector<16x128xf32>
    %c3_203 = arith.constant 3 : index
    %c0_204 = arith.constant 0 : index
    %c0_205 = arith.constant 0 : index
    %283 = vector.load %arg8[%c3_203, %c0_204, %c0_205] : memref<10x18x128xbf16, #tpu.memory_space<vmem>>, vector<1x16x128xbf16>
    %284 = vector.shape_cast %283 : vector<1x16x128xbf16> to vector<16x128xbf16>
    %c3_206 = arith.constant 3 : index
    %c1_207 = arith.constant 1 : index
    %c0_208 = arith.constant 0 : index
    %285 = vector.load %arg8[%c3_206, %c1_207, %c0_208] : memref<10x18x128xbf16, #tpu.memory_space<vmem>>, vector<1x16x128xbf16>
    %286 = vector.shape_cast %285 : vector<1x16x128xbf16> to vector<16x128xbf16>
    %c3_209 = arith.constant 3 : index
    %c2_210 = arith.constant 2 : index
    %c0_211 = arith.constant 0 : index
    %287 = vector.load %arg8[%c3_209, %c2_210, %c0_211] : memref<10x18x128xbf16, #tpu.memory_space<vmem>>, vector<1x16x128xbf16>
    %288 = vector.shape_cast %287 : vector<1x16x128xbf16> to vector<16x128xbf16>
    %289 = tpu.concatenate %284, %286, %288 in 1 : vector<16x128xbf16>, vector<16x128xbf16>, vector<16x128xbf16> -> vector<16x384xbf16>
    %c2_212 = arith.constant 2 : index
    %c0_213 = arith.constant 0 : index
    %c0_214 = arith.constant 0 : index
    %290 = vector.load %arg5[%c2_212, %c0_213, %c0_214] : memref<3x384x128xbf16, #tpu.memory_space<vmem>>, vector<1x384x128xbf16>
    %291 = vector.shape_cast %290 : vector<1x384x128xbf16> to vector<384x128xbf16>
    %cst_215 = arith.constant dense<0.000000e+00> : vector<16x128xf32>
    %292 = tpu.matmul %289, %291, %cst_215 {dimension_numbers = #tpu.dot_dimension_numbers<[1], [0], [0], [1], [0, 0, 1, 1], [], []>} : vector<16x384xbf16>, vector<384x128xbf16>, vector<16x128xf32> -> vector<16x128xf32>
    %293 = arith.addf %282, %292 : vector<16x128xf32>
    %294 = vector.broadcast %217 : vector<1x128xf32> to vector<16x128xf32>
    %295 = arith.addf %293, %294 : vector<16x128xf32>
    %cst_216 = arith.constant 0.000000e+00 : f32
    %296 = vector.broadcast %cst_216 : f32 to vector<16x128xf32>
    %297 = arith.maximumf %295, %296 : vector<16x128xf32>
    %298 = arith.truncf %297 : vector<16x128xf32> to vector<16x128xbf16>
    %c0_217 = arith.constant 0 : index
    %c1_218 = arith.constant 1 : index
    %c0_219 = arith.constant 0 : index
    %c0_220 = arith.constant 0 : index
    %299 = vector.load %arg7[%c0_217, %c1_218, %c0_219, %c0_220] : memref<1x8x16x128xbf16, #tpu.memory_space<vmem>>, vector<1x1x16x128xbf16>
    %300 = vector.shape_cast %299 : vector<1x1x16x128xbf16> to vector<16x128xbf16>
    %301 = vector.shape_cast %298 : vector<16x128xbf16> to vector<1x1x16x128xbf16>
    tpu.vector_store %arg7[%c0_217, %c1_218, %c0_219, %c0_220], %301 {strides = array<i32>} : memref<1x8x16x128xbf16, #tpu.memory_space<vmem>>, vector<1x1x16x128xbf16>,
    %cst_221 = arith.constant 0.000000e+00 : f32
    %302 = vector.broadcast %cst_221 : f32 to vector<16x128xf32>
    %c2_222 = arith.constant 2 : index
    %c0_223 = arith.constant 0 : index
    %c0_224 = arith.constant 0 : index
    %303 = vector.load %arg8[%c2_222, %c0_223, %c0_224] : memref<10x18x128xbf16, #tpu.memory_space<vmem>>, vector<1x16x128xbf16>
    %304 = vector.shape_cast %303 : vector<1x16x128xbf16> to vector<16x128xbf16>
    %c2_225 = arith.constant 2 : index
    %c1_226 = arith.constant 1 : index
    %c0_227 = arith.constant 0 : index
    %305 = vector.load %arg8[%c2_225, %c1_226, %c0_227] : memref<10x18x128xbf16, #tpu.memory_space<vmem>>, vector<1x16x128xbf16>
    %306 = vector.shape_cast %305 : vector<1x16x128xbf16> to vector<16x128xbf16>
    %c2_228 = arith.constant 2 : index
    %c2_229 = arith.constant 2 : index
    %c0_230 = arith.constant 0 : index
    %307 = vector.load %arg8[%c2_228, %c2_229, %c0_230] : memref<10x18x128xbf16, #tpu.memory_space<vmem>>, vector<1x16x128xbf16>
    %308 = vector.shape_cast %307 : vector<1x16x128xbf16> to vector<16x128xbf16>
    %309 = tpu.concatenate %304, %306, %308 in 1 : vector<16x128xbf16>, vector<16x128xbf16>, vector<16x128xbf16> -> vector<16x384xbf16>
    %c0_231 = arith.constant 0 : index
    %c0_232 = arith.constant 0 : index
    %c0_233 = arith.constant 0 : index
    %310 = vector.load %arg5[%c0_231, %c0_232, %c0_233] : memref<3x384x128xbf16, #tpu.memory_space<vmem>>, vector<1x384x128xbf16>
    %311 = vector.shape_cast %310 : vector<1x384x128xbf16> to vector<384x128xbf16>
    %cst_234 = arith.constant dense<0.000000e+00> : vector<16x128xf32>
    %312 = tpu.matmul %309, %311, %cst_234 {dimension_numbers = #tpu.dot_dimension_numbers<[1], [0], [0], [1], [0, 0, 1, 1], [], []>} : vector<16x384xbf16>, vector<384x128xbf16>, vector<16x128xf32> -> vector<16x128xf32>
    %313 = arith.addf %302, %312 : vector<16x128xf32>
    %c3_235 = arith.constant 3 : index
    %c0_236 = arith.constant 0 : index
    %c0_237 = arith.constant 0 : index
    %314 = vector.load %arg8[%c3_235, %c0_236, %c0_237] : memref<10x18x128xbf16, #tpu.memory_space<vmem>>, vector<1x16x128xbf16>
    %315 = vector.shape_cast %314 : vector<1x16x128xbf16> to vector<16x128xbf16>
    %c3_238 = arith.constant 3 : index
    %c1_239 = arith.constant 1 : index
    %c0_240 = arith.constant 0 : index
    %316 = vector.load %arg8[%c3_238, %c1_239, %c0_240] : memref<10x18x128xbf16, #tpu.memory_space<vmem>>, vector<1x16x128xbf16>
    %317 = vector.shape_cast %316 : vector<1x16x128xbf16> to vector<16x128xbf16>
    %c3_241 = arith.constant 3 : index
    %c2_242 = arith.constant 2 : index
    %c0_243 = arith.constant 0 : index
    %318 = vector.load %arg8[%c3_241, %c2_242, %c0_243] : memref<10x18x128xbf16, #tpu.memory_space<vmem>>, vector<1x16x128xbf16>
    %319 = vector.shape_cast %318 : vector<1x16x128xbf16> to vector<16x128xbf16>
    %320 = tpu.concatenate %315, %317, %319 in 1 : vector<16x128xbf16>, vector<16x128xbf16>, vector<16x128xbf16> -> vector<16x384xbf16>
    %c1_244 = arith.constant 1 : index
    %c0_245 = arith.constant 0 : index
    %c0_246 = arith.constant 0 : index
    %321 = vector.load %arg5[%c1_244, %c0_245, %c0_246] : memref<3x384x128xbf16, #tpu.memory_space<vmem>>, vector<1x384x128xbf16>
    %322 = vector.shape_cast %321 : vector<1x384x128xbf16> to vector<384x128xbf16>
    %cst_247 = arith.constant dense<0.000000e+00> : vector<16x128xf32>
    %323 = tpu.matmul %320, %322, %cst_247 {dimension_numbers = #tpu.dot_dimension_numbers<[1], [0], [0], [1], [0, 0, 1, 1], [], []>} : vector<16x384xbf16>, vector<384x128xbf16>, vector<16x128xf32> -> vector<16x128xf32>
    %324 = arith.addf %313, %323 : vector<16x128xf32>
    %c4_248 = arith.constant 4 : index
    %c0_249 = arith.constant 0 : index
    %c0_250 = arith.constant 0 : index
    %325 = vector.load %arg8[%c4_248, %c0_249, %c0_250] : memref<10x18x128xbf16, #tpu.memory_space<vmem>>, vector<1x16x128xbf16>
    %326 = vector.shape_cast %325 : vector<1x16x128xbf16> to vector<16x128xbf16>
    %c4_251 = arith.constant 4 : index
    %c1_252 = arith.constant 1 : index
    %c0_253 = arith.constant 0 : index
    %327 = vector.load %arg8[%c4_251, %c1_252, %c0_253] : memref<10x18x128xbf16, #tpu.memory_space<vmem>>, vector<1x16x128xbf16>
    %328 = vector.shape_cast %327 : vector<1x16x128xbf16> to vector<16x128xbf16>
    %c4_254 = arith.constant 4 : index
    %c2_255 = arith.constant 2 : index
    %c0_256 = arith.constant 0 : index
    %329 = vector.load %arg8[%c4_254, %c2_255, %c0_256] : memref<10x18x128xbf16, #tpu.memory_space<vmem>>, vector<1x16x128xbf16>
    %330 = vector.shape_cast %329 : vector<1x16x128xbf16> to vector<16x128xbf16>
    %331 = tpu.concatenate %326, %328, %330 in 1 : vector<16x128xbf16>, vector<16x128xbf16>, vector<16x128xbf16> -> vector<16x384xbf16>
    %c2_257 = arith.constant 2 : index
    %c0_258 = arith.constant 0 : index
    %c0_259 = arith.constant 0 : index
    %332 = vector.load %arg5[%c2_257, %c0_258, %c0_259] : memref<3x384x128xbf16, #tpu.memory_space<vmem>>, vector<1x384x128xbf16>
    %333 = vector.shape_cast %332 : vector<1x384x128xbf16> to vector<384x128xbf16>
    %cst_260 = arith.constant dense<0.000000e+00> : vector<16x128xf32>
    %334 = tpu.matmul %331, %333, %cst_260 {dimension_numbers = #tpu.dot_dimension_numbers<[1], [0], [0], [1], [0, 0, 1, 1], [], []>} : vector<16x384xbf16>, vector<384x128xbf16>, vector<16x128xf32> -> vector<16x128xf32>
    %335 = arith.addf %324, %334 : vector<16x128xf32>
    %336 = vector.broadcast %217 : vector<1x128xf32> to vector<16x128xf32>
    %337 = arith.addf %335, %336 : vector<16x128xf32>
    %cst_261 = arith.constant 0.000000e+00 : f32
    %338 = vector.broadcast %cst_261 : f32 to vector<16x128xf32>
    %339 = arith.maximumf %337, %338 : vector<16x128xf32>
    %340 = arith.truncf %339 : vector<16x128xf32> to vector<16x128xbf16>
    %c0_262 = arith.constant 0 : index
    %c2_263 = arith.constant 2 : index
    %c0_264 = arith.constant 0 : index
    %c0_265 = arith.constant 0 : index
    %341 = vector.load %arg7[%c0_262, %c2_263, %c0_264, %c0_265] : memref<1x8x16x128xbf16, #tpu.memory_space<vmem>>, vector<1x1x16x128xbf16>
    %342 = vector.shape_cast %341 : vector<1x1x16x128xbf16> to vector<16x128xbf16>
    %343 = vector.shape_cast %340 : vector<16x128xbf16> to vector<1x1x16x128xbf16>
    tpu.vector_store %arg7[%c0_262, %c2_263, %c0_264, %c0_265], %343 {strides = array<i32>} : memref<1x8x16x128xbf16, #tpu.memory_space<vmem>>, vector<1x1x16x128xbf16>,
    %cst_266 = arith.constant 0.000000e+00 : f32
    %344 = vector.broadcast %cst_266 : f32 to vector<16x128xf32>
    %c3_267 = arith.constant 3 : index
    %c0_268 = arith.constant 0 : index
    %c0_269 = arith.constant 0 : index
    %345 = vector.load %arg8[%c3_267, %c0_268, %c0_269] : memref<10x18x128xbf16, #tpu.memory_space<vmem>>, vector<1x16x128xbf16>
    %346 = vector.shape_cast %345 : vector<1x16x128xbf16> to vector<16x128xbf16>
    %c3_270 = arith.constant 3 : index
    %c1_271 = arith.constant 1 : index
    %c0_272 = arith.constant 0 : index
    %347 = vector.load %arg8[%c3_270, %c1_271, %c0_272] : memref<10x18x128xbf16, #tpu.memory_space<vmem>>, vector<1x16x128xbf16>
    %348 = vector.shape_cast %347 : vector<1x16x128xbf16> to vector<16x128xbf16>
    %c3_273 = arith.constant 3 : index
    %c2_274 = arith.constant 2 : index
    %c0_275 = arith.constant 0 : index
    %349 = vector.load %arg8[%c3_273, %c2_274, %c0_275] : memref<10x18x128xbf16, #tpu.memory_space<vmem>>, vector<1x16x128xbf16>
    %350 = vector.shape_cast %349 : vector<1x16x128xbf16> to vector<16x128xbf16>
    %351 = tpu.concatenate %346, %348, %350 in 1 : vector<16x128xbf16>, vector<16x128xbf16>, vector<16x128xbf16> -> vector<16x384xbf16>
    %c0_276 = arith.constant 0 : index
    %c0_277 = arith.constant 0 : index
    %c0_278 = arith.constant 0 : index
    %352 = vector.load %arg5[%c0_276, %c0_277, %c0_278] : memref<3x384x128xbf16, #tpu.memory_space<vmem>>, vector<1x384x128xbf16>
    %353 = vector.shape_cast %352 : vector<1x384x128xbf16> to vector<384x128xbf16>
    %cst_279 = arith.constant dense<0.000000e+00> : vector<16x128xf32>
    %354 = tpu.matmul %351, %353, %cst_279 {dimension_numbers = #tpu.dot_dimension_numbers<[1], [0], [0], [1], [0, 0, 1, 1], [], []>} : vector<16x384xbf16>, vector<384x128xbf16>, vector<16x128xf32> -> vector<16x128xf32>
    %355 = arith.addf %344, %354 : vector<16x128xf32>
    %c4_280 = arith.constant 4 : index
    %c0_281 = arith.constant 0 : index
    %c0_282 = arith.constant 0 : index
    %356 = vector.load %arg8[%c4_280, %c0_281, %c0_282] : memref<10x18x128xbf16, #tpu.memory_space<vmem>>, vector<1x16x128xbf16>
    %357 = vector.shape_cast %356 : vector<1x16x128xbf16> to vector<16x128xbf16>
    %c4_283 = arith.constant 4 : index
    %c1_284 = arith.constant 1 : index
    %c0_285 = arith.constant 0 : index
    %358 = vector.load %arg8[%c4_283, %c1_284, %c0_285] : memref<10x18x128xbf16, #tpu.memory_space<vmem>>, vector<1x16x128xbf16>
    %359 = vector.shape_cast %358 : vector<1x16x128xbf16> to vector<16x128xbf16>
    %c4_286 = arith.constant 4 : index
    %c2_287 = arith.constant 2 : index
    %c0_288 = arith.constant 0 : index
    %360 = vector.load %arg8[%c4_286, %c2_287, %c0_288] : memref<10x18x128xbf16, #tpu.memory_space<vmem>>, vector<1x16x128xbf16>
    %361 = vector.shape_cast %360 : vector<1x16x128xbf16> to vector<16x128xbf16>
    %362 = tpu.concatenate %357, %359, %361 in 1 : vector<16x128xbf16>, vector<16x128xbf16>, vector<16x128xbf16> -> vector<16x384xbf16>
    %c1_289 = arith.constant 1 : index
    %c0_290 = arith.constant 0 : index
    %c0_291 = arith.constant 0 : index
    %363 = vector.load %arg5[%c1_289, %c0_290, %c0_291] : memref<3x384x128xbf16, #tpu.memory_space<vmem>>, vector<1x384x128xbf16>
    %364 = vector.shape_cast %363 : vector<1x384x128xbf16> to vector<384x128xbf16>
    %cst_292 = arith.constant dense<0.000000e+00> : vector<16x128xf32>
    %365 = tpu.matmul %362, %364, %cst_292 {dimension_numbers = #tpu.dot_dimension_numbers<[1], [0], [0], [1], [0, 0, 1, 1], [], []>} : vector<16x384xbf16>, vector<384x128xbf16>, vector<16x128xf32> -> vector<16x128xf32>
    %366 = arith.addf %355, %365 : vector<16x128xf32>
    %c5_293 = arith.constant 5 : index
    %c0_294 = arith.constant 0 : index
    %c0_295 = arith.constant 0 : index
    %367 = vector.load %arg8[%c5_293, %c0_294, %c0_295] : memref<10x18x128xbf16, #tpu.memory_space<vmem>>, vector<1x16x128xbf16>
    %368 = vector.shape_cast %367 : vector<1x16x128xbf16> to vector<16x128xbf16>
    %c5_296 = arith.constant 5 : index
    %c1_297 = arith.constant 1 : index
    %c0_298 = arith.constant 0 : index
    %369 = vector.load %arg8[%c5_296, %c1_297, %c0_298] : memref<10x18x128xbf16, #tpu.memory_space<vmem>>, vector<1x16x128xbf16>
    %370 = vector.shape_cast %369 : vector<1x16x128xbf16> to vector<16x128xbf16>
    %c5_299 = arith.constant 5 : index
    %c2_300 = arith.constant 2 : index
    %c0_301 = arith.constant 0 : index
    %371 = vector.load %arg8[%c5_299, %c2_300, %c0_301] : memref<10x18x128xbf16, #tpu.memory_space<vmem>>, vector<1x16x128xbf16>
    %372 = vector.shape_cast %371 : vector<1x16x128xbf16> to vector<16x128xbf16>
    %373 = tpu.concatenate %368, %370, %372 in 1 : vector<16x128xbf16>, vector<16x128xbf16>, vector<16x128xbf16> -> vector<16x384xbf16>
    %c2_302 = arith.constant 2 : index
    %c0_303 = arith.constant 0 : index
    %c0_304 = arith.constant 0 : index
    %374 = vector.load %arg5[%c2_302, %c0_303, %c0_304] : memref<3x384x128xbf16, #tpu.memory_space<vmem>>, vector<1x384x128xbf16>
    %375 = vector.shape_cast %374 : vector<1x384x128xbf16> to vector<384x128xbf16>
    %cst_305 = arith.constant dense<0.000000e+00> : vector<16x128xf32>
    %376 = tpu.matmul %373, %375, %cst_305 {dimension_numbers = #tpu.dot_dimension_numbers<[1], [0], [0], [1], [0, 0, 1, 1], [], []>} : vector<16x384xbf16>, vector<384x128xbf16>, vector<16x128xf32> -> vector<16x128xf32>
    %377 = arith.addf %366, %376 : vector<16x128xf32>
    %378 = vector.broadcast %217 : vector<1x128xf32> to vector<16x128xf32>
    %379 = arith.addf %377, %378 : vector<16x128xf32>
    %cst_306 = arith.constant 0.000000e+00 : f32
    %380 = vector.broadcast %cst_306 : f32 to vector<16x128xf32>
    %381 = arith.maximumf %379, %380 : vector<16x128xf32>
    %382 = arith.truncf %381 : vector<16x128xf32> to vector<16x128xbf16>
    %c0_307 = arith.constant 0 : index
    %c3_308 = arith.constant 3 : index
    %c0_309 = arith.constant 0 : index
    %c0_310 = arith.constant 0 : index
    %383 = vector.load %arg7[%c0_307, %c3_308, %c0_309, %c0_310] : memref<1x8x16x128xbf16, #tpu.memory_space<vmem>>, vector<1x1x16x128xbf16>
    %384 = vector.shape_cast %383 : vector<1x1x16x128xbf16> to vector<16x128xbf16>
    %385 = vector.shape_cast %382 : vector<16x128xbf16> to vector<1x1x16x128xbf16>
    tpu.vector_store %arg7[%c0_307, %c3_308, %c0_309, %c0_310], %385 {strides = array<i32>} : memref<1x8x16x128xbf16, #tpu.memory_space<vmem>>, vector<1x1x16x128xbf16>,
    %cst_311 = arith.constant 0.000000e+00 : f32
    %386 = vector.broadcast %cst_311 : f32 to vector<16x128xf32>
    %c4_312 = arith.constant 4 : index
    %c0_313 = arith.constant 0 : index
    %c0_314 = arith.constant 0 : index
    %387 = vector.load %arg8[%c4_312, %c0_313, %c0_314] : memref<10x18x128xbf16, #tpu.memory_space<vmem>>, vector<1x16x128xbf16>
    %388 = vector.shape_cast %387 : vector<1x16x128xbf16> to vector<16x128xbf16>
    %c4_315 = arith.constant 4 : index
    %c1_316 = arith.constant 1 : index
    %c0_317 = arith.constant 0 : index
    %389 = vector.load %arg8[%c4_315, %c1_316, %c0_317] : memref<10x18x128xbf16, #tpu.memory_space<vmem>>, vector<1x16x128xbf16>
    %390 = vector.shape_cast %389 : vector<1x16x128xbf16> to vector<16x128xbf16>
    %c4_318 = arith.constant 4 : index
    %c2_319 = arith.constant 2 : index
    %c0_320 = arith.constant 0 : index
    %391 = vector.load %arg8[%c4_318, %c2_319, %c0_320] : memref<10x18x128xbf16, #tpu.memory_space<vmem>>, vector<1x16x128xbf16>
    %392 = vector.shape_cast %391 : vector<1x16x128xbf16> to vector<16x128xbf16>
    %393 = tpu.concatenate %388, %390, %392 in 1 : vector<16x128xbf16>, vector<16x128xbf16>, vector<16x128xbf16> -> vector<16x384xbf16>
    %c0_321 = arith.constant 0 : index
    %c0_322 = arith.constant 0 : index
    %c0_323 = arith.constant 0 : index
    %394 = vector.load %arg5[%c0_321, %c0_322, %c0_323] : memref<3x384x128xbf16, #tpu.memory_space<vmem>>, vector<1x384x128xbf16>
    %395 = vector.shape_cast %394 : vector<1x384x128xbf16> to vector<384x128xbf16>
    %cst_324 = arith.constant dense<0.000000e+00> : vector<16x128xf32>
    %396 = tpu.matmul %393, %395, %cst_324 {dimension_numbers = #tpu.dot_dimension_numbers<[1], [0], [0], [1], [0, 0, 1, 1], [], []>} : vector<16x384xbf16>, vector<384x128xbf16>, vector<16x128xf32> -> vector<16x128xf32>
    %397 = arith.addf %386, %396 : vector<16x128xf32>
    %c5_325 = arith.constant 5 : index
    %c0_326 = arith.constant 0 : index
    %c0_327 = arith.constant 0 : index
    %398 = vector.load %arg8[%c5_325, %c0_326, %c0_327] : memref<10x18x128xbf16, #tpu.memory_space<vmem>>, vector<1x16x128xbf16>
    %399 = vector.shape_cast %398 : vector<1x16x128xbf16> to vector<16x128xbf16>
    %c5_328 = arith.constant 5 : index
    %c1_329 = arith.constant 1 : index
    %c0_330 = arith.constant 0 : index
    %400 = vector.load %arg8[%c5_328, %c1_329, %c0_330] : memref<10x18x128xbf16, #tpu.memory_space<vmem>>, vector<1x16x128xbf16>
    %401 = vector.shape_cast %400 : vector<1x16x128xbf16> to vector<16x128xbf16>
    %c5_331 = arith.constant 5 : index
    %c2_332 = arith.constant 2 : index
    %c0_333 = arith.constant 0 : index
    %402 = vector.load %arg8[%c5_331, %c2_332, %c0_333] : memref<10x18x128xbf16, #tpu.memory_space<vmem>>, vector<1x16x128xbf16>
    %403 = vector.shape_cast %402 : vector<1x16x128xbf16> to vector<16x128xbf16>
    %404 = tpu.concatenate %399, %401, %403 in 1 : vector<16x128xbf16>, vector<16x128xbf16>, vector<16x128xbf16> -> vector<16x384xbf16>
    %c1_334 = arith.constant 1 : index
    %c0_335 = arith.constant 0 : index
    %c0_336 = arith.constant 0 : index
    %405 = vector.load %arg5[%c1_334, %c0_335, %c0_336] : memref<3x384x128xbf16, #tpu.memory_space<vmem>>, vector<1x384x128xbf16>
    %406 = vector.shape_cast %405 : vector<1x384x128xbf16> to vector<384x128xbf16>
    %cst_337 = arith.constant dense<0.000000e+00> : vector<16x128xf32>
    %407 = tpu.matmul %404, %406, %cst_337 {dimension_numbers = #tpu.dot_dimension_numbers<[1], [0], [0], [1], [0, 0, 1, 1], [], []>} : vector<16x384xbf16>, vector<384x128xbf16>, vector<16x128xf32> -> vector<16x128xf32>
    %408 = arith.addf %397, %407 : vector<16x128xf32>
    %c6_338 = arith.constant 6 : index
    %c0_339 = arith.constant 0 : index
    %c0_340 = arith.constant 0 : index
    %409 = vector.load %arg8[%c6_338, %c0_339, %c0_340] : memref<10x18x128xbf16, #tpu.memory_space<vmem>>, vector<1x16x128xbf16>
    %410 = vector.shape_cast %409 : vector<1x16x128xbf16> to vector<16x128xbf16>
    %c6_341 = arith.constant 6 : index
    %c1_342 = arith.constant 1 : index
    %c0_343 = arith.constant 0 : index
    %411 = vector.load %arg8[%c6_341, %c1_342, %c0_343] : memref<10x18x128xbf16, #tpu.memory_space<vmem>>, vector<1x16x128xbf16>
    %412 = vector.shape_cast %411 : vector<1x16x128xbf16> to vector<16x128xbf16>
    %c6_344 = arith.constant 6 : index
    %c2_345 = arith.constant 2 : index
    %c0_346 = arith.constant 0 : index
    %413 = vector.load %arg8[%c6_344, %c2_345, %c0_346] : memref<10x18x128xbf16, #tpu.memory_space<vmem>>, vector<1x16x128xbf16>
    %414 = vector.shape_cast %413 : vector<1x16x128xbf16> to vector<16x128xbf16>
    %415 = tpu.concatenate %410, %412, %414 in 1 : vector<16x128xbf16>, vector<16x128xbf16>, vector<16x128xbf16> -> vector<16x384xbf16>
    %c2_347 = arith.constant 2 : index
    %c0_348 = arith.constant 0 : index
    %c0_349 = arith.constant 0 : index
    %416 = vector.load %arg5[%c2_347, %c0_348, %c0_349] : memref<3x384x128xbf16, #tpu.memory_space<vmem>>, vector<1x384x128xbf16>
    %417 = vector.shape_cast %416 : vector<1x384x128xbf16> to vector<384x128xbf16>
    %cst_350 = arith.constant dense<0.000000e+00> : vector<16x128xf32>
    %418 = tpu.matmul %415, %417, %cst_350 {dimension_numbers = #tpu.dot_dimension_numbers<[1], [0], [0], [1], [0, 0, 1, 1], [], []>} : vector<16x384xbf16>, vector<384x128xbf16>, vector<16x128xf32> -> vector<16x128xf32>
    %419 = arith.addf %408, %418 : vector<16x128xf32>
    %420 = vector.broadcast %217 : vector<1x128xf32> to vector<16x128xf32>
    %421 = arith.addf %419, %420 : vector<16x128xf32>
    %cst_351 = arith.constant 0.000000e+00 : f32
    %422 = vector.broadcast %cst_351 : f32 to vector<16x128xf32>
    %423 = arith.maximumf %421, %422 : vector<16x128xf32>
    %424 = arith.truncf %423 : vector<16x128xf32> to vector<16x128xbf16>
    %c0_352 = arith.constant 0 : index
    %c4_353 = arith.constant 4 : index
    %c0_354 = arith.constant 0 : index
    %c0_355 = arith.constant 0 : index
    %425 = vector.load %arg7[%c0_352, %c4_353, %c0_354, %c0_355] : memref<1x8x16x128xbf16, #tpu.memory_space<vmem>>, vector<1x1x16x128xbf16>
    %426 = vector.shape_cast %425 : vector<1x1x16x128xbf16> to vector<16x128xbf16>
    %427 = vector.shape_cast %424 : vector<16x128xbf16> to vector<1x1x16x128xbf16>
    tpu.vector_store %arg7[%c0_352, %c4_353, %c0_354, %c0_355], %427 {strides = array<i32>} : memref<1x8x16x128xbf16, #tpu.memory_space<vmem>>, vector<1x1x16x128xbf16>,
    %cst_356 = arith.constant 0.000000e+00 : f32
    %428 = vector.broadcast %cst_356 : f32 to vector<16x128xf32>
    %c5_357 = arith.constant 5 : index
    %c0_358 = arith.constant 0 : index
    %c0_359 = arith.constant 0 : index
    %429 = vector.load %arg8[%c5_357, %c0_358, %c0_359] : memref<10x18x128xbf16, #tpu.memory_space<vmem>>, vector<1x16x128xbf16>
    %430 = vector.shape_cast %429 : vector<1x16x128xbf16> to vector<16x128xbf16>
    %c5_360 = arith.constant 5 : index
    %c1_361 = arith.constant 1 : index
    %c0_362 = arith.constant 0 : index
    %431 = vector.load %arg8[%c5_360, %c1_361, %c0_362] : memref<10x18x128xbf16, #tpu.memory_space<vmem>>, vector<1x16x128xbf16>
    %432 = vector.shape_cast %431 : vector<1x16x128xbf16> to vector<16x128xbf16>
    %c5_363 = arith.constant 5 : index
    %c2_364 = arith.constant 2 : index
    %c0_365 = arith.constant 0 : index
    %433 = vector.load %arg8[%c5_363, %c2_364, %c0_365] : memref<10x18x128xbf16, #tpu.memory_space<vmem>>, vector<1x16x128xbf16>
    %434 = vector.shape_cast %433 : vector<1x16x128xbf16> to vector<16x128xbf16>
    %435 = tpu.concatenate %430, %432, %434 in 1 : vector<16x128xbf16>, vector<16x128xbf16>, vector<16x128xbf16> -> vector<16x384xbf16>
    %c0_366 = arith.constant 0 : index
    %c0_367 = arith.constant 0 : index
    %c0_368 = arith.constant 0 : index
    %436 = vector.load %arg5[%c0_366, %c0_367, %c0_368] : memref<3x384x128xbf16, #tpu.memory_space<vmem>>, vector<1x384x128xbf16>
    %437 = vector.shape_cast %436 : vector<1x384x128xbf16> to vector<384x128xbf16>
    %cst_369 = arith.constant dense<0.000000e+00> : vector<16x128xf32>
    %438 = tpu.matmul %435, %437, %cst_369 {dimension_numbers = #tpu.dot_dimension_numbers<[1], [0], [0], [1], [0, 0, 1, 1], [], []>} : vector<16x384xbf16>, vector<384x128xbf16>, vector<16x128xf32> -> vector<16x128xf32>
    %439 = arith.addf %428, %438 : vector<16x128xf32>
    %c6_370 = arith.constant 6 : index
    %c0_371 = arith.constant 0 : index
    %c0_372 = arith.constant 0 : index
    %440 = vector.load %arg8[%c6_370, %c0_371, %c0_372] : memref<10x18x128xbf16, #tpu.memory_space<vmem>>, vector<1x16x128xbf16>
    %441 = vector.shape_cast %440 : vector<1x16x128xbf16> to vector<16x128xbf16>
    %c6_373 = arith.constant 6 : index
    %c1_374 = arith.constant 1 : index
    %c0_375 = arith.constant 0 : index
    %442 = vector.load %arg8[%c6_373, %c1_374, %c0_375] : memref<10x18x128xbf16, #tpu.memory_space<vmem>>, vector<1x16x128xbf16>
    %443 = vector.shape_cast %442 : vector<1x16x128xbf16> to vector<16x128xbf16>
    %c6_376 = arith.constant 6 : index
    %c2_377 = arith.constant 2 : index
    %c0_378 = arith.constant 0 : index
    %444 = vector.load %arg8[%c6_376, %c2_377, %c0_378] : memref<10x18x128xbf16, #tpu.memory_space<vmem>>, vector<1x16x128xbf16>
    %445 = vector.shape_cast %444 : vector<1x16x128xbf16> to vector<16x128xbf16>
    %446 = tpu.concatenate %441, %443, %445 in 1 : vector<16x128xbf16>, vector<16x128xbf16>, vector<16x128xbf16> -> vector<16x384xbf16>
    %c1_379 = arith.constant 1 : index
    %c0_380 = arith.constant 0 : index
    %c0_381 = arith.constant 0 : index
    %447 = vector.load %arg5[%c1_379, %c0_380, %c0_381] : memref<3x384x128xbf16, #tpu.memory_space<vmem>>, vector<1x384x128xbf16>
    %448 = vector.shape_cast %447 : vector<1x384x128xbf16> to vector<384x128xbf16>
    %cst_382 = arith.constant dense<0.000000e+00> : vector<16x128xf32>
    %449 = tpu.matmul %446, %448, %cst_382 {dimension_numbers = #tpu.dot_dimension_numbers<[1], [0], [0], [1], [0, 0, 1, 1], [], []>} : vector<16x384xbf16>, vector<384x128xbf16>, vector<16x128xf32> -> vector<16x128xf32>
    %450 = arith.addf %439, %449 : vector<16x128xf32>
    %c7_383 = arith.constant 7 : index
    %c0_384 = arith.constant 0 : index
    %c0_385 = arith.constant 0 : index
    %451 = vector.load %arg8[%c7_383, %c0_384, %c0_385] : memref<10x18x128xbf16, #tpu.memory_space<vmem>>, vector<1x16x128xbf16>
    %452 = vector.shape_cast %451 : vector<1x16x128xbf16> to vector<16x128xbf16>
    %c7_386 = arith.constant 7 : index
    %c1_387 = arith.constant 1 : index
    %c0_388 = arith.constant 0 : index
    %453 = vector.load %arg8[%c7_386, %c1_387, %c0_388] : memref<10x18x128xbf16, #tpu.memory_space<vmem>>, vector<1x16x128xbf16>
    %454 = vector.shape_cast %453 : vector<1x16x128xbf16> to vector<16x128xbf16>
    %c7_389 = arith.constant 7 : index
    %c2_390 = arith.constant 2 : index
    %c0_391 = arith.constant 0 : index
    %455 = vector.load %arg8[%c7_389, %c2_390, %c0_391] : memref<10x18x128xbf16, #tpu.memory_space<vmem>>, vector<1x16x128xbf16>
    %456 = vector.shape_cast %455 : vector<1x16x128xbf16> to vector<16x128xbf16>
    %457 = tpu.concatenate %452, %454, %456 in 1 : vector<16x128xbf16>, vector<16x128xbf16>, vector<16x128xbf16> -> vector<16x384xbf16>
    %c2_392 = arith.constant 2 : index
    %c0_393 = arith.constant 0 : index
    %c0_394 = arith.constant 0 : index
    %458 = vector.load %arg5[%c2_392, %c0_393, %c0_394] : memref<3x384x128xbf16, #tpu.memory_space<vmem>>, vector<1x384x128xbf16>
    %459 = vector.shape_cast %458 : vector<1x384x128xbf16> to vector<384x128xbf16>
    %cst_395 = arith.constant dense<0.000000e+00> : vector<16x128xf32>
    %460 = tpu.matmul %457, %459, %cst_395 {dimension_numbers = #tpu.dot_dimension_numbers<[1], [0], [0], [1], [0, 0, 1, 1], [], []>} : vector<16x384xbf16>, vector<384x128xbf16>, vector<16x128xf32> -> vector<16x128xf32>
    %461 = arith.addf %450, %460 : vector<16x128xf32>
    %462 = vector.broadcast %217 : vector<1x128xf32> to vector<16x128xf32>
    %463 = arith.addf %461, %462 : vector<16x128xf32>
    %cst_396 = arith.constant 0.000000e+00 : f32
    %464 = vector.broadcast %cst_396 : f32 to vector<16x128xf32>
    %465 = arith.maximumf %463, %464 : vector<16x128xf32>
    %466 = arith.truncf %465 : vector<16x128xf32> to vector<16x128xbf16>
    %c0_397 = arith.constant 0 : index
    %c5_398 = arith.constant 5 : index
    %c0_399 = arith.constant 0 : index
    %c0_400 = arith.constant 0 : index
    %467 = vector.load %arg7[%c0_397, %c5_398, %c0_399, %c0_400] : memref<1x8x16x128xbf16, #tpu.memory_space<vmem>>, vector<1x1x16x128xbf16>
    %468 = vector.shape_cast %467 : vector<1x1x16x128xbf16> to vector<16x128xbf16>
    %469 = vector.shape_cast %466 : vector<16x128xbf16> to vector<1x1x16x128xbf16>
    tpu.vector_store %arg7[%c0_397, %c5_398, %c0_399, %c0_400], %469 {strides = array<i32>} : memref<1x8x16x128xbf16, #tpu.memory_space<vmem>>, vector<1x1x16x128xbf16>,
    %cst_401 = arith.constant 0.000000e+00 : f32
    %470 = vector.broadcast %cst_401 : f32 to vector<16x128xf32>
    %c6_402 = arith.constant 6 : index
    %c0_403 = arith.constant 0 : index
    %c0_404 = arith.constant 0 : index
    %471 = vector.load %arg8[%c6_402, %c0_403, %c0_404] : memref<10x18x128xbf16, #tpu.memory_space<vmem>>, vector<1x16x128xbf16>
    %472 = vector.shape_cast %471 : vector<1x16x128xbf16> to vector<16x128xbf16>
    %c6_405 = arith.constant 6 : index
    %c1_406 = arith.constant 1 : index
    %c0_407 = arith.constant 0 : index
    %473 = vector.load %arg8[%c6_405, %c1_406, %c0_407] : memref<10x18x128xbf16, #tpu.memory_space<vmem>>, vector<1x16x128xbf16>
    %474 = vector.shape_cast %473 : vector<1x16x128xbf16> to vector<16x128xbf16>
    %c6_408 = arith.constant 6 : index
    %c2_409 = arith.constant 2 : index
    %c0_410 = arith.constant 0 : index
    %475 = vector.load %arg8[%c6_408, %c2_409, %c0_410] : memref<10x18x128xbf16, #tpu.memory_space<vmem>>, vector<1x16x128xbf16>
    %476 = vector.shape_cast %475 : vector<1x16x128xbf16> to vector<16x128xbf16>
    %477 = tpu.concatenate %472, %474, %476 in 1 : vector<16x128xbf16>, vector<16x128xbf16>, vector<16x128xbf16> -> vector<16x384xbf16>
    %c0_411 = arith.constant 0 : index
    %c0_412 = arith.constant 0 : index
    %c0_413 = arith.constant 0 : index
    %478 = vector.load %arg5[%c0_411, %c0_412, %c0_413] : memref<3x384x128xbf16, #tpu.memory_space<vmem>>, vector<1x384x128xbf16>
    %479 = vector.shape_cast %478 : vector<1x384x128xbf16> to vector<384x128xbf16>
    %cst_414 = arith.constant dense<0.000000e+00> : vector<16x128xf32>
    %480 = tpu.matmul %477, %479, %cst_414 {dimension_numbers = #tpu.dot_dimension_numbers<[1], [0], [0], [1], [0, 0, 1, 1], [], []>} : vector<16x384xbf16>, vector<384x128xbf16>, vector<16x128xf32> -> vector<16x128xf32>
    %481 = arith.addf %470, %480 : vector<16x128xf32>
    %c7_415 = arith.constant 7 : index
    %c0_416 = arith.constant 0 : index
    %c0_417 = arith.constant 0 : index
    %482 = vector.load %arg8[%c7_415, %c0_416, %c0_417] : memref<10x18x128xbf16, #tpu.memory_space<vmem>>, vector<1x16x128xbf16>
    %483 = vector.shape_cast %482 : vector<1x16x128xbf16> to vector<16x128xbf16>
    %c7_418 = arith.constant 7 : index
    %c1_419 = arith.constant 1 : index
    %c0_420 = arith.constant 0 : index
    %484 = vector.load %arg8[%c7_418, %c1_419, %c0_420] : memref<10x18x128xbf16, #tpu.memory_space<vmem>>, vector<1x16x128xbf16>
    %485 = vector.shape_cast %484 : vector<1x16x128xbf16> to vector<16x128xbf16>
    %c7_421 = arith.constant 7 : index
    %c2_422 = arith.constant 2 : index
    %c0_423 = arith.constant 0 : index
    %486 = vector.load %arg8[%c7_421, %c2_422, %c0_423] : memref<10x18x128xbf16, #tpu.memory_space<vmem>>, vector<1x16x128xbf16>
    %487 = vector.shape_cast %486 : vector<1x16x128xbf16> to vector<16x128xbf16>
    %488 = tpu.concatenate %483, %485, %487 in 1 : vector<16x128xbf16>, vector<16x128xbf16>, vector<16x128xbf16> -> vector<16x384xbf16>
    %c1_424 = arith.constant 1 : index
    %c0_425 = arith.constant 0 : index
    %c0_426 = arith.constant 0 : index
    %489 = vector.load %arg5[%c1_424, %c0_425, %c0_426] : memref<3x384x128xbf16, #tpu.memory_space<vmem>>, vector<1x384x128xbf16>
    %490 = vector.shape_cast %489 : vector<1x384x128xbf16> to vector<384x128xbf16>
    %cst_427 = arith.constant dense<0.000000e+00> : vector<16x128xf32>
    %491 = tpu.matmul %488, %490, %cst_427 {dimension_numbers = #tpu.dot_dimension_numbers<[1], [0], [0], [1], [0, 0, 1, 1], [], []>} : vector<16x384xbf16>, vector<384x128xbf16>, vector<16x128xf32> -> vector<16x128xf32>
    %492 = arith.addf %481, %491 : vector<16x128xf32>
    %c8_428 = arith.constant 8 : index
    %c0_429 = arith.constant 0 : index
    %c0_430 = arith.constant 0 : index
    %493 = vector.load %arg8[%c8_428, %c0_429, %c0_430] : memref<10x18x128xbf16, #tpu.memory_space<vmem>>, vector<1x16x128xbf16>
    %494 = vector.shape_cast %493 : vector<1x16x128xbf16> to vector<16x128xbf16>
    %c8_431 = arith.constant 8 : index
    %c1_432 = arith.constant 1 : index
    %c0_433 = arith.constant 0 : index
    %495 = vector.load %arg8[%c8_431, %c1_432, %c0_433] : memref<10x18x128xbf16, #tpu.memory_space<vmem>>, vector<1x16x128xbf16>
    %496 = vector.shape_cast %495 : vector<1x16x128xbf16> to vector<16x128xbf16>
    %c8_434 = arith.constant 8 : index
    %c2_435 = arith.constant 2 : index
    %c0_436 = arith.constant 0 : index
    %497 = vector.load %arg8[%c8_434, %c2_435, %c0_436] : memref<10x18x128xbf16, #tpu.memory_space<vmem>>, vector<1x16x128xbf16>
    %498 = vector.shape_cast %497 : vector<1x16x128xbf16> to vector<16x128xbf16>
    %499 = tpu.concatenate %494, %496, %498 in 1 : vector<16x128xbf16>, vector<16x128xbf16>, vector<16x128xbf16> -> vector<16x384xbf16>
    %c2_437 = arith.constant 2 : index
    %c0_438 = arith.constant 0 : index
    %c0_439 = arith.constant 0 : index
    %500 = vector.load %arg5[%c2_437, %c0_438, %c0_439] : memref<3x384x128xbf16, #tpu.memory_space<vmem>>, vector<1x384x128xbf16>
    %501 = vector.shape_cast %500 : vector<1x384x128xbf16> to vector<384x128xbf16>
    %cst_440 = arith.constant dense<0.000000e+00> : vector<16x128xf32>
    %502 = tpu.matmul %499, %501, %cst_440 {dimension_numbers = #tpu.dot_dimension_numbers<[1], [0], [0], [1], [0, 0, 1, 1], [], []>} : vector<16x384xbf16>, vector<384x128xbf16>, vector<16x128xf32> -> vector<16x128xf32>
    %503 = arith.addf %492, %502 : vector<16x128xf32>
    %504 = vector.broadcast %217 : vector<1x128xf32> to vector<16x128xf32>
    %505 = arith.addf %503, %504 : vector<16x128xf32>
    %cst_441 = arith.constant 0.000000e+00 : f32
    %506 = vector.broadcast %cst_441 : f32 to vector<16x128xf32>
    %507 = arith.maximumf %505, %506 : vector<16x128xf32>
    %508 = arith.truncf %507 : vector<16x128xf32> to vector<16x128xbf16>
    %c0_442 = arith.constant 0 : index
    %c6_443 = arith.constant 6 : index
    %c0_444 = arith.constant 0 : index
    %c0_445 = arith.constant 0 : index
    %509 = vector.load %arg7[%c0_442, %c6_443, %c0_444, %c0_445] : memref<1x8x16x128xbf16, #tpu.memory_space<vmem>>, vector<1x1x16x128xbf16>
    %510 = vector.shape_cast %509 : vector<1x1x16x128xbf16> to vector<16x128xbf16>
    %511 = vector.shape_cast %508 : vector<16x128xbf16> to vector<1x1x16x128xbf16>
    tpu.vector_store %arg7[%c0_442, %c6_443, %c0_444, %c0_445], %511 {strides = array<i32>} : memref<1x8x16x128xbf16, #tpu.memory_space<vmem>>, vector<1x1x16x128xbf16>,
    %cst_446 = arith.constant 0.000000e+00 : f32
    %512 = vector.broadcast %cst_446 : f32 to vector<16x128xf32>
    %c7_447 = arith.constant 7 : index
    %c0_448 = arith.constant 0 : index
    %c0_449 = arith.constant 0 : index
    %513 = vector.load %arg8[%c7_447, %c0_448, %c0_449] : memref<10x18x128xbf16, #tpu.memory_space<vmem>>, vector<1x16x128xbf16>
    %514 = vector.shape_cast %513 : vector<1x16x128xbf16> to vector<16x128xbf16>
    %c7_450 = arith.constant 7 : index
    %c1_451 = arith.constant 1 : index
    %c0_452 = arith.constant 0 : index
    %515 = vector.load %arg8[%c7_450, %c1_451, %c0_452] : memref<10x18x128xbf16, #tpu.memory_space<vmem>>, vector<1x16x128xbf16>
    %516 = vector.shape_cast %515 : vector<1x16x128xbf16> to vector<16x128xbf16>
    %c7_453 = arith.constant 7 : index
    %c2_454 = arith.constant 2 : index
    %c0_455 = arith.constant 0 : index
    %517 = vector.load %arg8[%c7_453, %c2_454, %c0_455] : memref<10x18x128xbf16, #tpu.memory_space<vmem>>, vector<1x16x128xbf16>
    %518 = vector.shape_cast %517 : vector<1x16x128xbf16> to vector<16x128xbf16>
    %519 = tpu.concatenate %514, %516, %518 in 1 : vector<16x128xbf16>, vector<16x128xbf16>, vector<16x128xbf16> -> vector<16x384xbf16>
    %c0_456 = arith.constant 0 : index
    %c0_457 = arith.constant 0 : index
    %c0_458 = arith.constant 0 : index
    %520 = vector.load %arg5[%c0_456, %c0_457, %c0_458] : memref<3x384x128xbf16, #tpu.memory_space<vmem>>, vector<1x384x128xbf16>
    %521 = vector.shape_cast %520 : vector<1x384x128xbf16> to vector<384x128xbf16>
    %cst_459 = arith.constant dense<0.000000e+00> : vector<16x128xf32>
    %522 = tpu.matmul %519, %521, %cst_459 {dimension_numbers = #tpu.dot_dimension_numbers<[1], [0], [0], [1], [0, 0, 1, 1], [], []>} : vector<16x384xbf16>, vector<384x128xbf16>, vector<16x128xf32> -> vector<16x128xf32>
    %523 = arith.addf %512, %522 : vector<16x128xf32>
    %c8_460 = arith.constant 8 : index
    %c0_461 = arith.constant 0 : index
    %c0_462 = arith.constant 0 : index
    %524 = vector.load %arg8[%c8_460, %c0_461, %c0_462] : memref<10x18x128xbf16, #tpu.memory_space<vmem>>, vector<1x16x128xbf16>
    %525 = vector.shape_cast %524 : vector<1x16x128xbf16> to vector<16x128xbf16>
    %c8_463 = arith.constant 8 : index
    %c1_464 = arith.constant 1 : index
    %c0_465 = arith.constant 0 : index
    %526 = vector.load %arg8[%c8_463, %c1_464, %c0_465] : memref<10x18x128xbf16, #tpu.memory_space<vmem>>, vector<1x16x128xbf16>
    %527 = vector.shape_cast %526 : vector<1x16x128xbf16> to vector<16x128xbf16>
    %c8_466 = arith.constant 8 : index
    %c2_467 = arith.constant 2 : index
    %c0_468 = arith.constant 0 : index
    %528 = vector.load %arg8[%c8_466, %c2_467, %c0_468] : memref<10x18x128xbf16, #tpu.memory_space<vmem>>, vector<1x16x128xbf16>
    %529 = vector.shape_cast %528 : vector<1x16x128xbf16> to vector<16x128xbf16>
    %530 = tpu.concatenate %525, %527, %529 in 1 : vector<16x128xbf16>, vector<16x128xbf16>, vector<16x128xbf16> -> vector<16x384xbf16>
    %c1_469 = arith.constant 1 : index
    %c0_470 = arith.constant 0 : index
    %c0_471 = arith.constant 0 : index
    %531 = vector.load %arg5[%c1_469, %c0_470, %c0_471] : memref<3x384x128xbf16, #tpu.memory_space<vmem>>, vector<1x384x128xbf16>
    %532 = vector.shape_cast %531 : vector<1x384x128xbf16> to vector<384x128xbf16>
    %cst_472 = arith.constant dense<0.000000e+00> : vector<16x128xf32>
    %533 = tpu.matmul %530, %532, %cst_472 {dimension_numbers = #tpu.dot_dimension_numbers<[1], [0], [0], [1], [0, 0, 1, 1], [], []>} : vector<16x384xbf16>, vector<384x128xbf16>, vector<16x128xf32> -> vector<16x128xf32>
    %534 = arith.addf %523, %533 : vector<16x128xf32>
    %c9_473 = arith.constant 9 : index
    %c0_474 = arith.constant 0 : index
    %c0_475 = arith.constant 0 : index
    %535 = vector.load %arg8[%c9_473, %c0_474, %c0_475] : memref<10x18x128xbf16, #tpu.memory_space<vmem>>, vector<1x16x128xbf16>
    %536 = vector.shape_cast %535 : vector<1x16x128xbf16> to vector<16x128xbf16>
    %c9_476 = arith.constant 9 : index
    %c1_477 = arith.constant 1 : index
    %c0_478 = arith.constant 0 : index
    %537 = vector.load %arg8[%c9_476, %c1_477, %c0_478] : memref<10x18x128xbf16, #tpu.memory_space<vmem>>, vector<1x16x128xbf16>
    %538 = vector.shape_cast %537 : vector<1x16x128xbf16> to vector<16x128xbf16>
    %c9_479 = arith.constant 9 : index
    %c2_480 = arith.constant 2 : index
    %c0_481 = arith.constant 0 : index
    %539 = vector.load %arg8[%c9_479, %c2_480, %c0_481] : memref<10x18x128xbf16, #tpu.memory_space<vmem>>, vector<1x16x128xbf16>
    %540 = vector.shape_cast %539 : vector<1x16x128xbf16> to vector<16x128xbf16>
    %541 = tpu.concatenate %536, %538, %540 in 1 : vector<16x128xbf16>, vector<16x128xbf16>, vector<16x128xbf16> -> vector<16x384xbf16>
    %c2_482 = arith.constant 2 : index
    %c0_483 = arith.constant 0 : index
    %c0_484 = arith.constant 0 : index
    %542 = vector.load %arg5[%c2_482, %c0_483, %c0_484] : memref<3x384x128xbf16, #tpu.memory_space<vmem>>, vector<1x384x128xbf16>
    %543 = vector.shape_cast %542 : vector<1x384x128xbf16> to vector<384x128xbf16>
    %cst_485 = arith.constant dense<0.000000e+00> : vector<16x128xf32>
    %544 = tpu.matmul %541, %543, %cst_485 {dimension_numbers = #tpu.dot_dimension_numbers<[1], [0], [0], [1], [0, 0, 1, 1], [], []>} : vector<16x384xbf16>, vector<384x128xbf16>, vector<16x128xf32> -> vector<16x128xf32>
    %545 = arith.addf %534, %544 : vector<16x128xf32>
    %546 = vector.broadcast %217 : vector<1x128xf32> to vector<16x128xf32>
    %547 = arith.addf %545, %546 : vector<16x128xf32>
    %cst_486 = arith.constant 0.000000e+00 : f32
    %548 = vector.broadcast %cst_486 : f32 to vector<16x128xf32>
    %549 = arith.maximumf %547, %548 : vector<16x128xf32>
    %550 = arith.truncf %549 : vector<16x128xf32> to vector<16x128xbf16>
    %c0_487 = arith.constant 0 : index
    %c7_488 = arith.constant 7 : index
    %c0_489 = arith.constant 0 : index
    %c0_490 = arith.constant 0 : index
    %551 = vector.load %arg7[%c0_487, %c7_488, %c0_489, %c0_490] : memref<1x8x16x128xbf16, #tpu.memory_space<vmem>>, vector<1x1x16x128xbf16>
    %552 = vector.shape_cast %551 : vector<1x1x16x128xbf16> to vector<16x128xbf16>
    %553 = vector.shape_cast %550 : vector<16x128xbf16> to vector<1x1x16x128xbf16>
    tpu.vector_store %arg7[%c0_487, %c7_488, %c0_489, %c0_490], %553 {strides = array<i32>} : memref<1x8x16x128xbf16, #tpu.memory_space<vmem>>, vector<1x1x16x128xbf16>,
    return
  }
  func.func @transform_0(%arg0: i32, %arg1: i32) -> (i32, i32, i32, i32) {
    %c0_i32 = arith.constant 0 : i32
    %c0_i32_0 = arith.constant 0 : i32
    %c0_i32_1 = arith.constant 0 : i32
    %c0_i32_2 = arith.constant 0 : i32
    return %arg0, %c0_i32, %c0_i32_0, %c0_i32_1 : i32, i32, i32, i32
  }
  func.func @transform_1(%arg0: i32, %arg1: i32) -> (i32, i32) {
    %c0_i32 = arith.constant 0 : i32
    %c0_i32_0 = arith.constant 0 : i32
    %c0_i32_1 = arith.constant 0 : i32
    return %c0_i32, %c0_i32_0 : i32, i32
  }
  func.func @transform_2(%arg0: i32, %arg1: i32) -> (i32, i32) {
    %c0_i32 = arith.constant 0 : i32
    %c0_i32_0 = arith.constant 0 : i32
    %c0_i32_1 = arith.constant 0 : i32
    return %c0_i32, %c0_i32_0 : i32, i32
  }
  func.func @transform_3(%arg0: i32, %arg1: i32) -> (i32, i32, i32) {
    %c0_i32 = arith.constant 0 : i32
    %c0_i32_0 = arith.constant 0 : i32
    %c0_i32_1 = arith.constant 0 : i32
    %c0_i32_2 = arith.constant 0 : i32
    return %c0_i32, %c0_i32_0, %c0_i32_1 : i32, i32, i32
  }
  func.func @transform_4(%arg0: i32, %arg1: i32) -> (i32, i32) {
    %c0_i32 = arith.constant 0 : i32
    %c0_i32_0 = arith.constant 0 : i32
    %c0_i32_1 = arith.constant 0 : i32
    return %c0_i32, %c0_i32_0 : i32, i32
  }
  func.func @transform_5(%arg0: i32, %arg1: i32) -> (i32, i32, i32, i32) {
    %c0_i32 = arith.constant 0 : i32
    %c0_i32_0 = arith.constant 0 : i32
    %c0_i32_1 = arith.constant 0 : i32
    return %arg0, %arg1, %c0_i32, %c0_i32_0 : i32, i32, i32, i32
  }
}

module attributes {stable_mosaic.version = 11 : i64} {
  func.func @_tail_kernel(%arg0: i32, %arg1: memref<128x128xbf16, #tpu.memory_space<vmem>>, %arg2: memref<128x128xbf16, #tpu.memory_space<vmem>>, %arg3: memref<1x128xf32, #tpu.memory_space<vmem>>, %arg4: memref<128x128xbf16, #tpu.memory_space<vmem>>, %arg5: memref<128x128xbf16, #tpu.memory_space<vmem>>, %arg6: memref<1x128xf32, #tpu.memory_space<vmem>>, %arg7: memref<128x128xbf16, #tpu.memory_space<vmem>>) attributes {dimension_semantics = [#tpu.dimension_semantics<parallel>], iteration_bounds = array<i64: 4>, scalar_prefetch = 0 : i64, scratch_operands = 0 : i64, tpu.core_type = #tpu.core_type<tc>, window_params = [{transform_indices = @transform_0, window_bounds = array<i64: 128, 128>}, {pipeline_mode = #tpu.pipeline_mode<synchronous>, transform_indices = @transform_1, window_bounds = array<i64: 128, 128>}, {pipeline_mode = #tpu.pipeline_mode<synchronous>, transform_indices = @transform_2, window_bounds = array<i64: 1, 128>}, {transform_indices = @transform_3, window_bounds = array<i64: 128, 128>}, {pipeline_mode = #tpu.pipeline_mode<synchronous>, transform_indices = @transform_4, window_bounds = array<i64: 128, 128>}, {pipeline_mode = #tpu.pipeline_mode<synchronous>, transform_indices = @transform_5, window_bounds = array<i64: 1, 128>}, {transform_indices = @transform_6, window_bounds = array<i64: 128, 128>}]} {
    %c0 = arith.constant 0 : index
    %c0_0 = arith.constant 0 : index
    %0 = vector.load %arg1[%c0, %c0_0] : memref<128x128xbf16, #tpu.memory_space<vmem>>, vector<128x128xbf16>
    %c0_1 = arith.constant 0 : index
    %c0_2 = arith.constant 0 : index
    %1 = vector.load %arg2[%c0_1, %c0_2] : memref<128x128xbf16, #tpu.memory_space<vmem>>, vector<128x128xbf16>
    %cst = arith.constant dense<0.000000e+00> : vector<128x128xf32>
    %2 = tpu.matmul %0, %1, %cst {dimension_numbers = #tpu.dot_dimension_numbers<[1], [0], [0], [1], [0, 0, 1, 1], [], []>} : vector<128x128xbf16>, vector<128x128xbf16>, vector<128x128xf32> -> vector<128x128xf32>
    %c0_3 = arith.constant 0 : index
    %c0_4 = arith.constant 0 : index
    %3 = vector.load %arg3[%c0_3, %c0_4] : memref<1x128xf32, #tpu.memory_space<vmem>>, vector<1x128xf32>
    %4 = vector.broadcast %3 : vector<1x128xf32> to vector<128x128xf32>
    %5 = arith.addf %2, %4 : vector<128x128xf32>
    %c0_5 = arith.constant 0 : index
    %c0_6 = arith.constant 0 : index
    %6 = vector.load %arg4[%c0_5, %c0_6] : memref<128x128xbf16, #tpu.memory_space<vmem>>, vector<128x128xbf16>
    %c0_7 = arith.constant 0 : index
    %c0_8 = arith.constant 0 : index
    %7 = vector.load %arg5[%c0_7, %c0_8] : memref<128x128xbf16, #tpu.memory_space<vmem>>, vector<128x128xbf16>
    %cst_9 = arith.constant dense<0.000000e+00> : vector<128x128xf32>
    %8 = tpu.matmul %6, %7, %cst_9 {dimension_numbers = #tpu.dot_dimension_numbers<[1], [0], [0], [1], [0, 0, 1, 1], [], []>} : vector<128x128xbf16>, vector<128x128xbf16>, vector<128x128xf32> -> vector<128x128xf32>
    %9 = arith.addf %5, %8 : vector<128x128xf32>
    %c0_10 = arith.constant 0 : index
    %c0_11 = arith.constant 0 : index
    %10 = vector.load %arg6[%c0_10, %c0_11] : memref<1x128xf32, #tpu.memory_space<vmem>>, vector<1x128xf32>
    %11 = vector.broadcast %10 : vector<1x128xf32> to vector<128x128xf32>
    %12 = arith.addf %9, %11 : vector<128x128xf32>
    %cst_12 = arith.constant 0.000000e+00 : f32
    %13 = vector.broadcast %cst_12 : f32 to vector<128x128xf32>
    %14 = arith.maximumf %12, %13 : vector<128x128xf32>
    %15 = arith.truncf %14 : vector<128x128xf32> to vector<128x128xbf16>
    %c0_13 = arith.constant 0 : index
    %c0_14 = arith.constant 0 : index
    %16 = vector.load %arg7[%c0_13, %c0_14] : memref<128x128xbf16, #tpu.memory_space<vmem>>, vector<128x128xbf16>
    tpu.vector_store %arg7[%c0_13, %c0_14], %15 {strides = array<i32>} : memref<128x128xbf16, #tpu.memory_space<vmem>>, vector<128x128xbf16>,
    return
  }
  func.func @transform_0(%arg0: i32) -> (i32, i32) {
    %c0_i32 = arith.constant 0 : i32
    %c0_i32_0 = arith.constant 0 : i32
    return %arg0, %c0_i32 : i32, i32
  }
  func.func @transform_1(%arg0: i32) -> (i32, i32) {
    %c0_i32 = arith.constant 0 : i32
    %c0_i32_0 = arith.constant 0 : i32
    %c0_i32_1 = arith.constant 0 : i32
    return %c0_i32, %c0_i32_0 : i32, i32
  }
  func.func @transform_2(%arg0: i32) -> (i32, i32) {
    %c0_i32 = arith.constant 0 : i32
    %c0_i32_0 = arith.constant 0 : i32
    %c0_i32_1 = arith.constant 0 : i32
    return %c0_i32, %c0_i32_0 : i32, i32
  }
  func.func @transform_3(%arg0: i32) -> (i32, i32) {
    %c0_i32 = arith.constant 0 : i32
    %c0_i32_0 = arith.constant 0 : i32
    return %arg0, %c0_i32 : i32, i32
  }
  func.func @transform_4(%arg0: i32) -> (i32, i32) {
    %c0_i32 = arith.constant 0 : i32
    %c0_i32_0 = arith.constant 0 : i32
    %c0_i32_1 = arith.constant 0 : i32
    return %c0_i32, %c0_i32_0 : i32, i32
  }
  func.func @transform_5(%arg0: i32) -> (i32, i32) {
    %c0_i32 = arith.constant 0 : i32
    %c0_i32_0 = arith.constant 0 : i32
    %c0_i32_1 = arith.constant 0 : i32
    return %c0_i32, %c0_i32_0 : i32, i32
  }
  func.func @transform_6(%arg0: i32) -> (i32, i32) {
    %c0_i32 = arith.constant 0 : i32
    %c0_i32_0 = arith.constant 0 : i32
    return %arg0, %c0_i32 : i32, i32
  }
}

</mosaic_0001>

<bundles_post_ra>
// kernel: _lambda_.3
= control target key start
LH: loop header
LB: loop body
LE: loop exit
PB: predicated region body
PF: predicated region fallthrough
CT: control target
= control target key end

     0   :  { %s1076_s21 = smov 0   ;;  %s1221_s0 = inlined_call_operand.vmem [shape: bf16[512,128], index: 0, kind: input, shape index: {}]   ;;  %s1222_s1 = inlined_call_operand.vmem [shape: bf16[128,128], index: 1, kind: input, shape index: {}]   ;;  %s1223_s2 = inlined_call_operand.vmem [shape: f32[1,128], index: 2, kind: input, shape index: {}]   ;;  %s1224_s3 = inlined_call_operand.vmem [shape: bf16[512,128], index: 3, kind: input, shape index: {}]   ;;  %s1225_s4 = inlined_call_operand.vmem [shape: bf16[128,128], index: 4, kind: input, shape index: {}]   ;;  %s1226_s5 = inlined_call_operand.vmem [shape: f32[1,128], index: 5, kind: input, shape index: {}]   ;;  %s1227_s6 = inlined_call_operand.vmem [shape: bf16[512,128], index: 6, kind: output, shape index: {}]  }
   0x1 LB: > { %s787_s22 = sadd.s32 4294967295, %s1039_s21   ;;  %p791_p0 = scmp.ge.s32.totalorder %s1039_s21, 1  ;;  %s1039_s21 = sphi %s1076_s21, %s16_s21  }
   0x2   : > { %p224_p1 = scmp.lt.s32.totalorder %s1039_s21, 5 }
   0x4   : > { %p225_p2 = pnand %p791_p0, %p224_p1 }
   0x5   : > { %s792_s15 = sshll.u32 (!%p225_p2), %s787_s22, 4 }
   0x6   : > { %228 = sbr.rel (%p225_p2) target bundleno = 242 (0xf2), region = 44  ;;  %p260_p3 = scmp.lt.s32.totalorder (!%p225_p2), %s792_s15, 63 }
   0xb   : > { %v943_v0 = vld [vmem:[%s1222_s1 + $0x38] sm:$0xff]  ;;  %v942_v2 = vld [vmem:[%s1222_s1 + $0x30] sm:$0xff]  ;;  %v941_v4 = vld [vmem:[%s1222_s1 + $0x28] sm:$0xff]  ;;  %s1229_s15 = smov (!%p260_p3, %s792_s15), 63 }
   0xc   : > { %v959_v1 = vld [vmem:[%s1225_s4 + $0x38] sm:$0xff]  ;;  %409 = vmatpush.bf16.msra.mxu0 %v943_v0  ;;  %1007 = vmatpush.bf16.msra.mxu2 %v943_v0  ;;  %v958_v3 = vld [vmem:[%s1225_s4 + $0x30] sm:$0xff]  ;;  %v957_v5 = vld [vmem:[%s1225_s4 + $0x28] sm:$0xff]  ;;  %s1126_s29 = sshll.u32 %s1229_s15, 2 }
   0xd   : > { %586 = vmatpush.bf16.msra.mxu1 %v959_v1  ;;  %1015 = vmatpush.bf16.msra.mxu3 %v959_v1  ;;  %v940_v6 = vld [vmem:[%s1222_s1 + $0x20] sm:$0xff]  ;;  %v939_v8 = vld [vmem:[%s1222_s1 + $0x18] sm:$0xff]  ;;  %v938_v10 = vld [vmem:[%s1222_s1 + $0x10] sm:$0xff]  ;;  %s1135_s10 = scalar_lea.vmem %s1221_s0, %s1126_s29  ;;  %s1144_s15 = scalar_lea.vmem %s1224_s3, %s1126_s29 }
   0xe   : > { %v956_v7 = vld [vmem:[%s1225_s4 + $0x20] sm:$0xff]  ;;  %v955_v9 = vld [vmem:[%s1225_s4 + $0x18] sm:$0xff]  ;;  %v954_v11 = vld [vmem:[%s1225_s4 + $0x10] sm:$0xff]  ;;  %s1182_s22 = scalar_lea.vmem %s1227_s6, %s1126_s29 }
   0xf   : > { %v937_v12 = vld [vmem:[%s1222_s1 + $0x8] sm:$0xff]  ;;  %v936_v14 = vld [vmem:[%s1222_s1] sm:$0xff]  ;;  %v930_v24 = vld [vmem:[%s1135_s10 + $0x10] sm:$0xff] }
  0x10   : > { %410 = vmatpush.bf16.msra.mxu0 %v942_v2  ;;  %1008 = vmatpush.bf16.msra.mxu2 %v942_v2  ;;  %v953_v13 = vld [vmem:[%s1225_s4 + $0x8] sm:$0xff]  ;;  %v952_v15 = vld [vmem:[%s1225_s4] sm:$0xff]  ;;  %v934_v25 = vld [vmem:[%s1135_s10 + $0x30] sm:$0xff] }
  0x11   : > { %587 = vmatpush.bf16.msra.mxu1 %v958_v3  ;;  %1016 = vmatpush.bf16.msra.mxu3 %v958_v3  ;;  %v928_v16 = vld [vmem:[%s1135_s10] sm:$0xff]  ;;  %v929_v20 = vld [vmem:[%s1135_s10 + $0x8] sm:$0xff]  ;;  %v946_v26 = vld [vmem:[%s1144_s15 + $0x10] sm:$0xff] }
  0x12   : > { %v932_v17 = vld [vmem:[%s1135_s10 + $0x20] sm:$0xff]  ;;  %v933_v21 = vld [vmem:[%s1135_s10 + $0x28] sm:$0xff]  ;;  %v950_v27 = vld [vmem:[%s1144_s15 + $0x30] sm:$0xff] }
  0x13   : > { %v944_v18 = vld [vmem:[%s1144_s15] sm:$0xff]  ;;  %v945_v22 = vld [vmem:[%s1144_s15 + $0x8] sm:$0xff]  ;;  %v931_v28 = vld [vmem:[%s1135_s10 + $0x18] sm:$0xff] }
  0x14   : > { %411 = vmatpush.bf16.msra.mxu0 %v941_v4  ;;  %1009 = vmatpush.bf16.msra.mxu2 %v941_v4  ;;  %v948_v19 = vld [vmem:[%s1144_s15 + $0x20] sm:$0xff]  ;;  %v949_v23 = vld [vmem:[%s1144_s15 + $0x28] sm:$0xff]  ;;  %v935_v29 = vld [vmem:[%s1135_s10 + $0x38] sm:$0xff] }
  0x15   : > { %588 = vmatpush.bf16.msra.mxu1 %v957_v5  ;;  %1017 = vmatpush.bf16.msra.mxu3 %v957_v5  ;;  %v947_v30 = vld [vmem:[%s1144_s15 + $0x18] sm:$0xff]  ;;  %v1165_v32 = vld [vmem:[%s1223_s2] ss:$0 sm:$0xff] }
  0x16   : > { %v951_v31 = vld [vmem:[%s1144_s15 + $0x38] sm:$0xff]  ;;  %v1171_v38 = vld [vmem:[%s1226_s5] ss:$0 sm:$0xff] }
  0x18   : > { %412 = vmatpush.bf16.msra.mxu0 %v940_v6  ;;  %1010 = vmatpush.bf16.msra.mxu2 %v940_v6 }
  0x19   : > { %589 = vmatpush.bf16.msra.mxu1 %v956_v7  ;;  %1018 = vmatpush.bf16.msra.mxu3 %v956_v7 }
  0x1c   : > { %413 = vmatpush.bf16.msra.mxu0 %v939_v8  ;;  %1011 = vmatpush.bf16.msra.mxu2 %v939_v8 }
  0x1d   : > { %590 = vmatpush.bf16.msra.mxu1 %v955_v9  ;;  %1019 = vmatpush.bf16.msra.mxu3 %v955_v9 }
  0x20   : > { %414 = vmatpush.bf16.msra.mxu0 %v938_v10  ;;  %1012 = vmatpush.bf16.msra.mxu2 %v938_v10 }
  0x21   : > { %591 = vmatpush.bf16.msra.mxu1 %v954_v11  ;;  %1020 = vmatpush.bf16.msra.mxu3 %v954_v11 }
  0x24   : > { %415 = vmatpush.bf16.msra.mxu0 %v937_v12  ;;  %1013 = vmatpush.bf16.msra.mxu2 %v937_v12 }
  0x25   : > { %592 = vmatpush.bf16.msra.mxu1 %v953_v13  ;;  %1021 = vmatpush.bf16.msra.mxu3 %v953_v13 }
  0x28   : > { %416 = vmatpush.bf16.msra.mxu0 %v936_v14  ;;  %1014 = vmatpush.bf16.msra.mxu2 %v936_v14 }
  0x29   : > { %593 = vmatpush.bf16.msra.mxu1 %v952_v15  ;;  %1022 = vmatpush.bf16.msra.mxu3 %v952_v15 }
  0x2b   : > { %417 = vmatmul.bf16.vlgmr.msra.gmra.mxu0 %v928_v16  ;;  %437 = vmatmul.bf16.vlgmr.msra.gmra.mxu2 %v932_v17 }
  0x2c   : > { %594 = vmatmul.bf16.vlgmr.msra.gmra.mxu1 %v944_v18  ;;  %614 = vmatmul.bf16.vlgmr.msra.gmra.mxu3 %v948_v19 }
  0x3b   : > { %422 = vmatmul.bf16.gmra.mxu0 %v929_v20  ;;  %442 = vmatmul.bf16.gmra.mxu2 %v933_v21 }
  0x3c   : > { %599 = vmatmul.bf16.gmra.mxu1 %v945_v22  ;;  %619 = vmatmul.bf16.gmra.mxu3 %v949_v23 }
  0x4b   : > { %427 = vmatmul.bf16.gmra.mxu0 %v930_v24  ;;  %447 = vmatmul.bf16.gmra.mxu2 %v934_v25 }
  0x4c   : > { %604 = vmatmul.bf16.gmra.mxu1 %v946_v26  ;;  %624 = vmatmul.bf16.gmra.mxu3 %v950_v27 }
  0x5b   : > { %432 = vmatmul.bf16.gmra.mxu0 %v931_v28  ;;  %452 = vmatmul.bf16.gmra.mxu2 %v935_v29 }
  0x5c   : > { %609 = vmatmul.bf16.gmra.mxu1 %v947_v30  ;;  %629 = vmatmul.bf16.gmra.mxu3 %v951_v31 }
  0xa8   : > { %v418_v33 = vpop.f32.mrf.mxu0 }
  0xa9   : > { %v595_v34 = vpop.f32.mrf.mxu1  ;;  %v419_v35 = vadd.f32 %v1165_v32, %v418_v33 }
  0xab   : > { %v635_v37 = vadd.f32 %v595_v34, %v419_v35 }
  0xad   : > { %v655_v44 = vadd.f32 %v1171_v38, %v635_v37 }
  0xae   : > { %v438_v36 = vpop.f32.mrf.mxu2 }
  0xaf   : > { %v615_v39 = vpop.f32.mrf.mxu3  ;;  %v439_v41 = vadd.f32 %v1165_v32, %v438_v36  ;;  %v671_v49 = vmax.f32 %v655_v44, 0.0 }
  0xb0   : > { %v420_v40 = vpop.f32.mrf.mxu0 }
  0xb1   : > { %v421_v42 = vadd.f32 %v1165_v32, %v420_v40  ;;  %v597_v43 = vpop.f32.mrf.mxu1  ;;  %v643_v46 = vadd.f32 %v615_v39, %v439_v41 }
  0xb3   : > { %v636_v45 = vadd.f32 %v597_v43, %v421_v42  ;;  %v663_v54 = vadd.f32 %v1171_v38, %v643_v46 }
  0xb5   : > { %v656_v47 = vadd.f32 %v1171_v38, %v636_v45  ;;  %v679_v60 = vmax.f32 %v663_v54, 0.0 }
  0xb6   : > { %v440_v48 = vpop.f32.mrf.mxu2 }
  0xb7   : > { %v672_v50 = vmax.f32 %v656_v47, 0.0  ;;  %v441_v51 = vadd.f32 %v1165_v32, %v440_v48  ;;  %v617_v52 = vpop.f32.mrf.mxu3 }
  0xb8   : > { %v423_v53 = vpop.f32.mrf.mxu0 }
  0xb9   : > { %v963_v55 = vpack.c.bf16 %v672_v50, %v671_v49  ;;  %v644_v56 = vadd.f32 %v617_v52, %v441_v51  ;;  %v600_v57 = vpop.f32.mrf.mxu1  ;;  %v424_v59 = vadd.f32 %v1165_v32, %v423_v53 }
  0xbb   : > { %964 = vst [vmem:[%s1182_s22] sm:$0xff] %v963_v55   ;;  %v664_v58 = vadd.f32 %v1171_v38, %v644_v56  ;;  %v637_v0 = vadd.f32 %v600_v57, %v424_v59 }
  0xbd   : > { %v680_v61 = vmax.f32 %v664_v58, 0.0  ;;  %v657_v6 = vadd.f32 %v1171_v38, %v637_v0 }
  0xbe   : > { %v443_v62 = vpop.f32.mrf.mxu2 }
  0xbf   : > { %v983_v63 = vpack.c.bf16 %v680_v61, %v679_v60  ;;  %v620_v1 = vpop.f32.mrf.mxu3  ;;  %v444_v3 = vadd.f32 %v1165_v32, %v443_v62  ;;  %v673_v11 = vmax.f32 %v657_v6, 0.0 }
  0xc0   : > { %v425_v2 = vpop.f32.mrf.mxu0 }
  0xc1   : > { %1003 = vst [vmem:[%s1182_s22 + $0x20] sm:$0xff] %v983_v63   ;;  %v426_v4 = vadd.f32 %v1165_v32, %v425_v2  ;;  %v602_v5 = vpop.f32.mrf.mxu1  ;;  %v645_v8 = vadd.f32 %v620_v1, %v444_v3 }
  0xc3   : > { %v638_v7 = vadd.f32 %v602_v5, %v426_v4  ;;  %v665_v16 = vadd.f32 %v1171_v38, %v645_v8 }
  0xc5   : > { %v658_v9 = vadd.f32 %v1171_v38, %v638_v7  ;;  %v681_v22 = vmax.f32 %v665_v16, 0.0 }
  0xc6   : > { %v445_v10 = vpop.f32.mrf.mxu2 }
  0xc7   : > { %v674_v12 = vmax.f32 %v658_v9, 0.0  ;;  %v446_v13 = vadd.f32 %v1165_v32, %v445_v10  ;;  %v622_v14 = vpop.f32.mrf.mxu3 }
  0xc8   : > { %v428_v15 = vpop.f32.mrf.mxu0 }
  0xc9   : > { %v968_v17 = vpack.c.bf16 %v674_v12, %v673_v11  ;;  %v646_v18 = vadd.f32 %v622_v14, %v446_v13  ;;  %v605_v19 = vpop.f32.mrf.mxu1  ;;  %v429_v21 = vadd.f32 %v1165_v32, %v428_v15 }
  0xcb   : > { %1000 = vst [vmem:[%s1182_s22 + $0x8] sm:$0xff] %v968_v17   ;;  %v666_v20 = vadd.f32 %v1171_v38, %v646_v18  ;;  %v639_v26 = vadd.f32 %v605_v19, %v429_v21 }
  0xcd   : > { %v682_v23 = vmax.f32 %v666_v20, 0.0  ;;  %v659_v33 = vadd.f32 %v1171_v38, %v639_v26 }
  0xce   : > { %v448_v24 = vpop.f32.mrf.mxu2 }
  0xcf   : > { %v988_v25 = vpack.c.bf16 %v682_v23, %v681_v22  ;;  %v625_v27 = vpop.f32.mrf.mxu3  ;;  %v449_v29 = vadd.f32 %v1165_v32, %v448_v24  ;;  %v675_v39 = vmax.f32 %v659_v33, 0.0 }
  0xd0   : > { %v430_v28 = vpop.f32.mrf.mxu0 }
  0xd1   : > { %1004 = vst [vmem:[%s1182_s22 + $0x28] sm:$0xff] %v988_v25   ;;  %v431_v30 = vadd.f32 %v1165_v32, %v430_v28  ;;  %v607_v31 = vpop.f32.mrf.mxu1  ;;  %v647_v35 = vadd.f32 %v625_v27, %v449_v29 }
  0xd3   : > { %v640_v34 = vadd.f32 %v607_v31, %v431_v30  ;;  %v667_v44 = vadd.f32 %v1171_v38, %v647_v35 }
  0xd5   : > { %v660_v36 = vadd.f32 %v1171_v38, %v640_v34  ;;  %v683_v50 = vmax.f32 %v667_v44, 0.0 }
  0xd6   : > { %v450_v37 = vpop.f32.mrf.mxu2 }
  0xd7   : > { %v676_v40 = vmax.f32 %v660_v36, 0.0  ;;  %v451_v41 = vadd.f32 %v1165_v32, %v450_v37  ;;  %v627_v42 = vpop.f32.mrf.mxu3 }
  0xd8   : > { %v433_v43 = vpop.f32.mrf.mxu0 }
  0xd9   : > { %v973_v45 = vpack.c.bf16 %v676_v40, %v675_v39  ;;  %v648_v46 = vadd.f32 %v627_v42, %v451_v41  ;;  %v610_v47 = vpop.f32.mrf.mxu1  ;;  %v434_v49 = vadd.f32 %v1165_v32, %v433_v43 }
  0xdb   : > { %1001 = vst [vmem:[%s1182_s22 + $0x10] sm:$0xff] %v973_v45   ;;  %v668_v48 = vadd.f32 %v1171_v38, %v648_v46  ;;  %v641_v54 = vadd.f32 %v610_v47, %v434_v49 }
  0xdd   : > { %v684_v51 = vmax.f32 %v668_v48, 0.0  ;;  %v661_v60 = vadd.f32 %v1171_v38, %v641_v54 }
  0xde   : > { %v453_v52 = vpop.f32.mrf.mxu2 }
  0xdf   : > { %v993_v53 = vpack.c.bf16 %v684_v51, %v683_v50  ;;  %v630_v55 = vpop.f32.mrf.mxu3  ;;  %v454_v57 = vadd.f32 %v1165_v32, %v453_v52  ;;  %v677_v1 = vmax.f32 %v661_v60, 0.0 }
  0xe0   : > { %v435_v56 = vpop.f32.mrf.mxu0 }
  0xe1   : > { %1005 = vst [vmem:[%s1182_s22 + $0x30] sm:$0xff] %v993_v53   ;;  %v436_v58 = vadd.f32 %v1165_v32, %v435_v56  ;;  %v612_v59 = vpop.f32.mrf.mxu1  ;;  %v649_v62 = vadd.f32 %v630_v55, %v454_v57 }
  0xe3   : > { %v642_v61 = vadd.f32 %v612_v59, %v436_v58  ;;  %v669_v5 = vadd.f32 %v1171_v38, %v649_v62 }
  0xe5   : > { %v662_v63 = vadd.f32 %v1171_v38, %v642_v61  ;;  %v685_v9 = vmax.f32 %v669_v5, 0.0 }
  0xe6   : > { %v455_v0 = vpop.f32.mrf.mxu2 }
  0xe7   : > { %v678_v2 = vmax.f32 %v662_v63, 0.0  ;;  %v456_v3 = vadd.f32 %v1165_v32, %v455_v0  ;;  %v632_v4 = vpop.f32.mrf.mxu3 }
  0xe9   : > { %v978_v6 = vpack.c.bf16 %v678_v2, %v677_v1  ;;  %v650_v7 = vadd.f32 %v632_v4, %v456_v3 }
  0xeb   : > { %1002 = vst [vmem:[%s1182_s22 + $0x18] sm:$0xff] %v978_v6   ;;  %v670_v8 = vadd.f32 %v1171_v38, %v650_v7 }
  0xed   : > { %v686_v10 = vmax.f32 %v670_v8, 0.0 }
  0xef   : > { %v998_v11 = vpack.c.bf16 %v686_v10, %v685_v9 }
  0xf1   : > { %1006 = vst [vmem:[%s1182_s22 + $0x38] sm:$0xff] %v998_v11  }
  0xf2 PF: > { %s16_s21 = sadd.s32 1, %s1039_s21  }
  0xf3   : > { %p13_p4 = scmp.ge.s32.totalorder %s16_s21, 6  }
  0xf5   :  { %15 = sbr.rel (!%p13_p4) target bundleno = 1 (0x1), region = 77 }

// kernel: _lambda_.2
= control target key start
LH: loop header
LB: loop body
LE: loop exit
PB: predicated region body
PF: predicated region fallthrough
CT: control target
= control target key end

     0   :  { %s11869_s18 = smov 0   ;;  %s11871_s19 = smov 0   ;;  %s14588_s0 = inlined_call_operand.vmem [shape: bf16[2,16,16,128], index: 0, kind: input, shape index: {}]   ;;  %s14589_s1 = inlined_call_operand.vmem [shape: bf16[128,128], index: 1, kind: input, shape index: {}]   ;;  %s14590_s2 = inlined_call_operand.vmem [shape: f32[1,128], index: 2, kind: input, shape index: {}]   ;;  %s14591_s3 = inlined_call_operand.vmem [shape: bf16[3,384,128], index: 3, kind: input, shape index: {}]   ;;  %s14592_s4 = inlined_call_operand.vmem [shape: f32[1,128], index: 4, kind: input, shape index: {}]   ;;  %s14593_s5 = inlined_call_operand.vmem [shape: bf16[2,16,16,128], index: 5, kind: output, shape index: {}]  }
   0x1   :  { %14597 = sst [smem:[#allocation8_spill]] %s14588_s0  ;;  %s11873_s20 = smov 0  }
   0x2   :  { %14598 = sst [smem:[#allocation9_spill]] %s14589_s1  ;;  %s11875_s21 = smov 0  }
   0x3   :  { %14599 = sst [smem:[#allocation10_spill]] %s14593_s5  ;;  %s11877_s22 = smov 0  }
   0x4 LB: > { %14600 = sst [smem:[#allocation3_spill]] %s11829_s20  ;;  %s24_s23 = sadd.s32 1, %s11829_s20  ;;  %s11837_s22 = sphi %s11877_s22, %s15_s22   ;;  %s11833_s21 = sphi %s11875_s21, %s14630_s21   ;;  %s11829_s20 = sphi %s11873_s20, %s14629_s20   ;;  %s11825_s19 = sphi %s11871_s19, %s14628_s19   ;;  %s11821_s18 = sphi %s11869_s18, %s14627_s18  }
   0x5   : > { %14601 = sst [smem:[#allocation4_spill]] %s11833_s21  ;;  %s27_s24 = sadd.s32 1, %s11833_s21 }
   0x6   : > { %14602 = sst [smem:[#allocation5_spill]] %s11837_s22  ;;  %p25_p0 = scmp.ge.s32.totalorder %s24_s23, 2 }
   0x7   : > { %p7714_p1 = scmp.ge.s32.totalorder %s11837_s22, 1  ;;  %p201_p2 = scmp.lt.s32.totalorder %s11837_s22, 5 }
   0x8   : > { %s14632_s23 = smov (%p25_p0, %s24_s23), 0  ;;  %s14634_s24 = smov (!%p25_p0, %s27_s24), %s11833_s21 }
   0x9   : > { %14603 = sst [smem:[#allocation6_spill]] %s14632_s23  ;;  %p202_p3 = pnand %p7714_p1, %p201_p2 }
   0xa   : > { %p29_p4 = scmp.ge.s32.totalorder %s14634_s24, 2  ;;  %s14605_s1 = sld [smem:[#allocation9_spill]] (!%p202_p3) }
   0xb   : > { %205 = sbr.rel (%p202_p3) target bundleno = 882 (0x372), region = 40  ;;  %p234_p5 = scmp.lt.s32.totalorder (!%p202_p3), %s11825_s19, 1 }
   0xc   : > { %s14636_s24 = smov (%p29_p4, %s14634_s24), 0  ;;  %s11904_s27 = sshll.u32 (!%p202_p3), %s11821_s18, 3 }
   0xd   : > { %14604 = sst [smem:[#allocation7_spill]] %s14636_s24  ;;  %s11907_s28 = sadd.s32 (!%p202_p3), 4294967295, %s11904_s27 }
   0xe   : > { %p335_p6 = scmp.gt.s32.totalorder (!%p202_p3), %s11907_s28, 0  ;;  %p242_p7 = scmp.lt.s32.totalorder (!%p202_p3), %s11904_s27, 15 }
   0xf   : > { %p7723_p8 = scmp.lt.s32.totalorder (!%p202_p3), %s11907_s28, 15  ;;  %p459_p9 = scmp.gt.s32.totalorder (!%p202_p3), %s11904_s27, 0 }
  0x10   : > { %v11902_v0 = vld [vmem:[%s14605_s1 + $0x38] sm:$0xff]  ;;  %v11914_v1 = vld [vmem:[%s14605_s1 + $0x30] sm:$0xff]  ;;  %s14638_s19 = smov (!%p234_p5, %s11825_s19), 1  ;;  %v11929_v2 = vld [vmem:[%s14605_s1 + $0x28] sm:$0xff]  ;;  %s11939_s12 = sadd.s32 1, %s11904_s27  ;;  %vm253_vm0 = vcmask 1040384  }
  0x11   : > { %401 = vmatpush.bf16.msra.mxu0 %v11902_v0  ;;  %474 = vmatpush.bf16.msra.mxu1 %v11902_v0  ;;  %s7719_s6 = sshll.u32 %s14638_s19, 5  ;;  %v11946_v3 = vld [vmem:[%s14605_s1 + $0x20] sm:$0xff]  ;;  %p530_p10 = scmp.gt.s32.totalorder %s11939_s12, 0  ;;  %v11963_v4 = vld [vmem:[%s14605_s1 + $0x18] sm:$0xff]  ;;  %v11982_v5 = vld [vmem:[%s14605_s1 + $0x10] sm:$0xff]  ;;  %vm450_vm7 = vcmask 1043456  }
  0x12   : > { %545 = vmatpush.bf16.msra.mxu2 %v11902_v0  ;;  %616 = vmatpush.bf16.msra.mxu3 %v11902_v0  ;;  %s336_s9 = scalar_select %p335_p6, %s11907_s28, 0  ;;  %v11999_v6 = vld [vmem:[%s14605_s1 + $0x8] sm:$0xff]  ;;  %v12010_v7 = vld [vmem:[%s14605_s1] sm:$0xff]  ;;  %v11043_v14 = vld [vmem:[%s14591_s3 + $0xf8] sm:$0xff]  ;;  %vm254_vm1 = vsmask.f32 256 }
  0x13   : > { %s243_s10 = scalar_select %p242_p7, %s11904_s27, 15  ;;  %v11051_v15 = vld [vmem:[%s14591_s3 + $0x138] sm:$0xff]  ;;  %v11042_v16 = vld [vmem:[%s14591_s3 + $0xf0] sm:$0xff]  ;;  %v11041_v18 = vld [vmem:[%s14591_s3 + $0xe8] sm:$0xff]  ;;  %vm286_vm3 = vsmask.f32 7938 }
  0x14   : > { %s14640_s9 = smov (!%p7723_p8, %s336_s9), 15  ;;  %p7779_p11 = scmp.lt.s32.totalorder %s11939_s12, 15  ;;  %v11050_v17 = vld [vmem:[%s14591_s3 + $0x130] sm:$0xff]  ;;  %v11049_v19 = vld [vmem:[%s14591_s3 + $0x128] sm:$0xff]  ;;  %v11040_v20 = vld [vmem:[%s14591_s3 + $0xe0] sm:$0xff]  ;;  %vm1128_vm12 = vcmask 1046528  }
  0x15   : > { %402 = vmatpush.bf16.msra.mxu0 %v11914_v1  ;;  %475 = vmatpush.bf16.msra.mxu1 %v11914_v1  ;;  %s7718_s11 = sshll.u32 %s243_s10, 1  ;;  %s11974_s26 = sadd.s32 2, %s11904_s27  ;;  %v11048_v21 = vld [vmem:[%s14591_s3 + $0x120] sm:$0xff]  ;;  %v11039_v22 = vld [vmem:[%s14591_s3 + $0xd8] sm:$0xff]  ;;  %v11038_v24 = vld [vmem:[%s14591_s3 + $0xd0] sm:$0xff] }
  0x16   : > { %546 = vmatpush.bf16.msra.mxu2 %v11914_v1  ;;  %617 = vmatpush.bf16.msra.mxu3 %v11914_v1  ;;  %s11948_s15 = sadd.s32 %s7719_s6, %s7718_s11  ;;  %p601_p12 = scmp.gt.s32.totalorder %s11974_s26, 0  ;;  %v256_v23 = vld [vmem:[#allocation2] sm:$0x1]  ;;  %vm12112_vm2 = vmand %vm253_vm0, %vm254_vm1  ;;  %v11019_v27 = vld [vmem:[%s14591_s3 + $0x38] sm:$0xff]  ;;  %vm428_vm10 = vsmask.f32 4368 }
  0x17   : > { %s460_s16 = scalar_select %p459_p9, %s11904_s27, 0  ;;  %v257_v26 = vsel %vm12112_vm2, 0, %v256_v23  ;;  %v11059_v28 = vld [vmem:[%s14591_s3 + $0x178] sm:$0xff]  ;;  %v11018_v29 = vld [vmem:[%s14591_s3 + $0x30] sm:$0xff]  ;;  %v11017_v31 = vld [vmem:[%s14591_s3 + $0x28] sm:$0xff] }
  0x18   : > { %s531_s25 = scalar_select %p530_p10, %s11939_s12, 0  ;;  %258 = vst [vmem:[#allocation2] sm:$0x1] %v257_v26  ;;  %v11058_v30 = vld [vmem:[%s14591_s3 + $0x170] sm:$0xff]  ;;  %v11057_v32 = vld [vmem:[%s14591_s3 + $0x168] sm:$0xff]  ;;  %v11016_v33 = vld [vmem:[%s14591_s3 + $0x20] sm:$0xff] }
  0x19   : > { %403 = vmatpush.bf16.msra.mxu0 %v11929_v2  ;;  %476 = vmatpush.bf16.msra.mxu1 %v11929_v2  ;;  %s14642_s16 = smov (!%p242_p7, %s460_s16), 15  ;;  %s10963_s6 = sshll.u32 %s14638_s19, 7  ;;  %v11056_v34 = vld [vmem:[%s14591_s3 + $0x160] sm:$0xff]  ;;  %v11015_v35 = vld [vmem:[%s14591_s3 + $0x18] sm:$0xff]  ;;  %v11014_v37 = vld [vmem:[%s14591_s3 + $0x10] sm:$0xff] }
  0x1a   : > { %547 = vmatpush.bf16.msra.mxu2 %v11929_v2  ;;  %618 = vmatpush.bf16.msra.mxu3 %v11929_v2  ;;  %p7791_p13 = scmp.lt.s32.totalorder %s11974_s26, 15  ;;  %s14644_s25 = smov (!%p7779_p11, %s531_s25), 15  ;;  %v11055_v36 = vld [vmem:[%s14591_s3 + $0x158] sm:$0xff]  ;;  %v11013_v38 = vld [vmem:[%s14591_s3 + $0x8] sm:$0xff]  ;;  %v11054_v40 = vld [vmem:[%s14591_s3 + $0x150] sm:$0xff] }
  0x1b   : > { %s602_s7 = scalar_select %p601_p12, %s11974_s26, 0  ;;  %v11047_v39 = vld [vmem:[%s14591_s3 + $0x118] sm:$0xff]  ;;  %v11037_v43 = vld [vmem:[%s14591_s3 + $0xc8] sm:$0xff]  ;;  %v11012_v44 = vld [vmem:[%s14591_s3] sm:$0xff]  ;;  %vm1111_vm13 = vsmask.f32 7424 }
  0x1c   : > { %s14606_s0 = sld [smem:[#allocation8_spill]]  ;;  %s10974_s14 = sshll.u32 %s14640_s9, 3  ;;  %v11075_v46 = vld [vmem:[%s14591_s3 + $0x1f8] sm:$0xff]  ;;  %v11046_v47 = vld [vmem:[%s14591_s3 + $0x110] sm:$0xff]  ;;  %v11053_v48 = vld [vmem:[%s14591_s3 + $0x148] sm:$0xff] }
  0x1d   : > { %404 = vmatpush.bf16.msra.mxu0 %v11946_v3  ;;  %477 = vmatpush.bf16.msra.mxu1 %v11946_v3  ;;  %s10978_s17 = sshll.u32 %s14642_s16, 3  ;;  %s14646_s7 = smov (!%p7791_p13, %s602_s7), 15  ;;  %v259_v49 = vld [vmem:[#allocation2 + $0xc] sm:$0x1]  ;;  %v11036_v51 = vld [vmem:[%s14591_s3 + $0xc0] sm:$0xff]  ;;  %v11027_v53 = vld [vmem:[%s14591_s3 + $0x78] sm:$0xff] }
  0x1e   : > { %548 = vmatpush.bf16.msra.mxu2 %v11946_v3  ;;  %619 = vmatpush.bf16.msra.mxu3 %v11946_v3  ;;  %s10982_s18 = sshll.u32 %s14644_s25, 3  ;;  %s10986_s29 = sshll.u32 %s14646_s7, 3  ;;  %v260_v52 = vsel %vm12112_vm2, 0, %v259_v49  ;;  %v11074_v54 = vld [vmem:[%s14591_s3 + $0x1f0] sm:$0xff]  ;;  %v11045_v55 = vld [vmem:[%s14591_s3 + $0x108] sm:$0xff]  ;;  %v11052_v56 = vld [vmem:[%s14591_s3 + $0x140] sm:$0xff] }
  0x1f   : > { %s12029_s25 = sadd.s32 4, %s11904_s27  ;;  %s12033_s7 = sadd.s32 3, %s11904_s27  ;;  %261 = vst [vmem:[#allocation2 + $0xc] sm:$0x1] %v260_v52  ;;  %vm12226_vm4 = vmand %vm253_vm0, %vm286_vm3  ;;  %v11067_v58 = vld [vmem:[%s14591_s3 + $0x1b8] sm:$0xff]  ;;  %v11026_v59 = vld [vmem:[%s14591_s3 + $0x70] sm:$0xff] }
  0x20   : > { %p743_p0 = scmp.gt.s32.totalorder %s12029_s25, 0  ;;  %p672_p1 = scmp.gt.s32.totalorder %s12033_s7, 0  ;;  %v11073_v60 = vld [vmem:[%s14591_s3 + $0x1e8] sm:$0xff]  ;;  %v291_v61 = vld [vmem:[#allocation2 + $0x14] sm:$0x1]  ;;  %v11044_v63 = vld [vmem:[%s14591_s3 + $0x100] sm:$0xff] }
  0x21   : > { %405 = vmatpush.bf16.msra.mxu0 %v11963_v4  ;;  %478 = vmatpush.bf16.msra.mxu1 %v11963_v4  ;;  %p7815_p2 = scmp.lt.s32.totalorder %s12029_s25, 15  ;;  %p7803_p3 = scmp.lt.s32.totalorder %s12033_s7, 15  ;;  %v292_v62 = vsel %vm12226_vm4, 0, %v291_v61  ;;  %v11031_v26 = vld [vmem:[%s14591_s3 + $0x98] sm:$0xff]  ;;  %vm12372_vm8 = vmand %vm450_vm7, %vm286_vm3  ;;  %v11168_v25 = vld [vmem:[%s14591_s3 + $0x60] sm:$0xff] }
  0x22   : > { %549 = vmatpush.bf16.msra.mxu2 %v11963_v4  ;;  %620 = vmatpush.bf16.msra.mxu3 %v11963_v4  ;;  %s11992_s11 = scalar_lea.vmem %s14606_s0, %s10963_s6  ;;  %s12174_s6 = sadd.s32 7, %s11904_s27  ;;  %293 = vst [vmem:[#allocation2 + $0x14] sm:$0x1] %v292_v62  ;;  %vm12388_vm11 = vmor %vm254_vm1, %vm428_vm10 }
  0x23   : > { %s341_s8 = scalar_lea.vmem %s11992_s11, %s10974_s14  ;;  %s465_s10 = scalar_lea.vmem %s11992_s11, %s10978_s17 }
  0x24   : > { %s536_s9 = scalar_lea.vmem %s11992_s11, %s10982_s18  ;;  %s607_s16 = scalar_lea.vmem %s11992_s11, %s10986_s29  ;;  %v10975_v8 = vld [vmem:[%s341_s8] sm:$0xff] }
  0x25   : > { %406 = vmatpush.bf16.msra.mxu0 %v11982_v5  ;;  %479 = vmatpush.bf16.msra.mxu1 %v11982_v5  ;;  %v10979_v9 = vld [vmem:[%s465_s10] sm:$0xff]  ;;  %s744_s19 = scalar_select %p743_p0, %s12029_s25, 0 }
  0x26   : > { %550 = vmatpush.bf16.msra.mxu2 %v11982_v5  ;;  %621 = vmatpush.bf16.msra.mxu3 %v11982_v5  ;;  %v10983_v10 = vld [vmem:[%s536_s9] sm:$0xff]  ;;  %s673_s13 = scalar_select %p672_p1, %s12033_s7, 0  ;;  %v522_v61 = vld [vmem:[#allocation2 + $0xc] sm:$0xf] }
  0x27   : > { %v10987_v11 = vld [vmem:[%s607_s16] sm:$0xff]  ;;  %s14648_s19 = smov (!%p7815_p2, %s744_s19), 15  ;;  %p956_p9 = scmp.gt.s32.totalorder %s12174_s6, 0 }
  0x28   : > { %s14650_s13 = smov (!%p7803_p3, %s673_s13), 15  ;;  %s10994_s14 = sshll.u32 %s14648_s19, 3 }
  0x29   : > { %407 = vmatpush.bf16.msra.mxu0 %v11999_v6  ;;  %480 = vmatpush.bf16.msra.mxu1 %v11999_v6  ;;  %s10990_s17 = sshll.u32 %s14650_s13, 3  ;;  %s749_s18 = scalar_lea.vmem %s11992_s11, %s10994_s14 }
  0x2a   : > { %551 = vmatpush.bf16.msra.mxu2 %v11999_v6  ;;  %622 = vmatpush.bf16.msra.mxu3 %v11999_v6  ;;  %s678_s29 = scalar_lea.vmem %s11992_s11, %s10990_s17  ;;  %v10995_v12 = vld [vmem:[%s749_s18] sm:$0xff]  ;;  %s12141_s14 = sadd.s32 5, %s11904_s27 }
  0x2b   : > { %v10991_v13 = vld [vmem:[%s678_s29] sm:$0xff]  ;;  %p814_p4 = scmp.gt.s32.totalorder %s12141_s14, 0  ;;  %s12158_s19 = sadd.s32 6, %s11904_s27 }
  0x2c   : > { %p7827_p5 = scmp.lt.s32.totalorder %s12141_s14, 15  ;;  %s12162_s13 = sadd.s32 8, %s11904_s27 }
  0x2d   : > { %408 = vmatpush.bf16.msra.mxu0 %v12010_v7  ;;  %481 = vmatpush.bf16.msra.mxu1 %v12010_v7  ;;  %s815_s16 = scalar_select %p814_p4, %s12141_s14, 0 }
  0x2e   : > { %552 = vmatpush.bf16.msra.mxu2 %v12010_v7  ;;  %623 = vmatpush.bf16.msra.mxu3 %v12010_v7  ;;  %p885_p6 = scmp.gt.s32.totalorder %s12158_s19, 0  ;;  %p1027_p7 = scmp.gt.s32.totalorder %s12162_s13, 0 }
  0x2f   : > { %s14652_s16 = smov (!%p7827_p5, %s815_s16), 15  ;;  %p7839_p8 = scmp.lt.s32.totalorder %s12158_s19, 15 }
  0x30   : > { %409 = vmatmul.bf16.vlgmr.msra.gmra.mxu0 %v10975_v8  ;;  %482 = vmatmul.bf16.vlgmr.msra.gmra.mxu1 %v10979_v9  ;;  %s886_s8 = scalar_select %p885_p6, %s12158_s19, 0  ;;  %v11034_v8 = vld [vmem:[%s14591_s3 + $0xb0] sm:$0xff]  ;;  %v11065_v9 = vld [vmem:[%s14591_s3 + $0x1a8] sm:$0xff] }
  0x31   : > { %758 = vmatpush.bf16.msrb.mxu1 %v11902_v0  ;;  %687 = vmatpush.bf16.msrb.mxu0 %v11902_v0  ;;  %s1028_s10 = scalar_select %p1027_p7, %s12162_s13, 0 }
  0x32   : > { %553 = vmatmul.bf16.vlgmr.msra.gmra.mxu2 %v10983_v10  ;;  %900 = vmatpush.bf16.msrb.mxu3 %v11902_v0  ;;  %p7863_p10 = scmp.lt.s32.totalorder %s12162_s13, 15  ;;  %s14654_s8 = smov (!%p7839_p8, %s886_s8), 15  ;;  %v11024_v10 = vld [vmem:[%s14591_s3 + $0x60] sm:$0xff] }
  0x33   : > { %624 = vmatmul.bf16.vlgmr.msra.gmra.mxu3 %v10987_v11  ;;  %829 = vmatpush.bf16.msrb.mxu2 %v11902_v0  ;;  %p7851_p11 = scmp.lt.s32.totalorder %s12174_s6, 15  ;;  %s10998_s17 = sshll.u32 %s14652_s16, 3  ;;  %v11071_v11 = vld [vmem:[%s14591_s3 + $0x1d8] sm:$0xff] }
  0x34   : > { %s957_s9 = scalar_select %p956_p9, %s12174_s6, 0 }
  0x35   : > { %759 = vmatpush.bf16.msrb.mxu1 %v11914_v1  ;;  %688 = vmatpush.bf16.msrb.mxu0 %v11914_v1  ;;  %s14656_s10 = smov (!%p7863_p10, %s1028_s10), 15  ;;  %s11002_s18 = sshll.u32 %s14654_s8, 3 }
  0x36   : > { %901 = vmatpush.bf16.msrb.mxu3 %v11914_v1  ;;  %s14658_s9 = smov (!%p7851_p11, %s957_s9), 15  ;;  %s11010_s29 = sshll.u32 %s14656_s10, 3 }
  0x37   : > { %830 = vmatpush.bf16.msrb.mxu2 %v11914_v1  ;;  %s820_s30 = scalar_lea.vmem %s11992_s11, %s10998_s17  ;;  %s891_s0 = scalar_lea.vmem %s11992_s11, %s11002_s18 }
  0x38   : > { %s1033_s1 = scalar_lea.vmem %s11992_s11, %s11010_s29  ;;  %s11006_s24 = sshll.u32 %s14658_s9, 3  ;;  %v10999_v41 = vld [vmem:[%s820_s30] sm:$0xff] }
  0x39   : > { %760 = vmatpush.bf16.msrb.mxu1 %v11929_v2  ;;  %689 = vmatpush.bf16.msrb.mxu0 %v11929_v2  ;;  %v11003_v42 = vld [vmem:[%s891_s0] sm:$0xff]  ;;  %s962_s23 = scalar_lea.vmem %s11992_s11, %s11006_s24  ;;  %p490_p12 = scmp.ge.s32.totalorder %s11904_s27, 0 }
  0x3a   : > { %902 = vmatpush.bf16.msrb.mxu3 %v11929_v2  ;;  %v11011_v45 = vld [vmem:[%s1033_s1] sm:$0xff]  ;;  %p491_p13 = scmp.lt.s32.totalorder %s11904_s27, 16  ;;  %p417_p0 = scmp.ge.s32.totalorder %s11907_s28, 0 }
  0x3b   : > { %831 = vmatpush.bf16.msrb.mxu2 %v11929_v2  ;;  %v11007_v50 = vld [vmem:[%s962_s23] sm:$0xff]  ;;  %p418_p1 = scmp.lt.s32.totalorder %s11907_s28, 16  ;;  %p561_p4 = scmp.ge.s32.totalorder %s11939_s12, 0 }
  0x3c   : > { %p12280_p2 = pnand %p491_p13, %p490_p12  ;;  %p562_p5 = scmp.lt.s32.totalorder %s11939_s12, 16 }
  0x3d   : > { %761 = vmatpush.bf16.msrb.mxu1 %v11946_v3  ;;  %690 = vmatpush.bf16.msrb.mxu0 %v11946_v3  ;;  %p12286_p3 = pnand %p418_p1, %p417_p0  ;;  %p632_p7 = scmp.ge.s32.totalorder %s11974_s26, 0 }
  0x3e   : > { %903 = vmatpush.bf16.msrb.mxu3 %v11946_v3  ;;  %s7778_s8 = scalar_select %p12280_p2, 0, 1 }
  0x3f   : > { %832 = vmatpush.bf16.msrb.mxu2 %v11946_v3  ;;  %s7766_s10 = scalar_select %p12286_p3, 0, 1 }
  0x40   : > { %p12345_p6 = pnand %p562_p5, %p561_p4  ;;  %p633_p8 = scmp.lt.s32.totalorder %s11974_s26, 16 }
  0x41   : > { %762 = vmatpush.bf16.msrb.mxu1 %v11963_v4  ;;  %691 = vmatpush.bf16.msrb.mxu0 %v11963_v4  ;;  %v422_v23 = vstv %s7766_s10  ;;  %p703_p10 = scmp.ge.s32.totalorder %s12033_s7, 0  ;;  %p704_p11 = scmp.lt.s32.totalorder %s12033_s7, 16 }
  0x42   : > { %904 = vmatpush.bf16.msrb.mxu3 %v11963_v4  ;;  %vm423_vm5 = vcmp.eq.s32.totalorder %v422_v23, 1  ;;  %s7790_s5 = scalar_select %p12345_p6, 0, 1 }
  0x43   : > { %833 = vmatpush.bf16.msrb.mxu2 %v11963_v4  ;;  %p12424_p9 = pnand %p633_p8, %p632_p7  ;;  %p774_p12 = scmp.ge.s32.totalorder %s12029_s25, 0 }
  0x44   : > { %v566_v52 = vstv %s7790_s5  ;;  %p775_p13 = scmp.lt.s32.totalorder %s12029_s25, 16  ;;  %p12572_p0 = pnand %p704_p11, %p703_p10 }
  0x45   : > { %763 = vmatpush.bf16.msrb.mxu1 %v11982_v5  ;;  %692 = vmatpush.bf16.msrb.mxu0 %v11982_v5  ;;  %vm567_vm9 = vcmp.eq.s32.totalorder %v566_v52, 1  ;;  %s7802_s22 = scalar_select %p12424_p9, 0, 1 }
  0x46   : > { %905 = vmatpush.bf16.msrb.mxu3 %v11982_v5  ;;  %p12597_p1 = pnand %p775_p13, %p774_p12  ;;  %p987_p2 = scmp.ge.s32.totalorder %s12174_s6, 0 }
  0x47   : > { %834 = vmatpush.bf16.msrb.mxu2 %v11982_v5  ;;  %s7814_s24 = scalar_select %p12572_p0, 0, 1 }
  0x48   : > { %s7826_s30 = scalar_select %p12597_p1, 0, 1 }
  0x49   : > { %764 = vmatpush.bf16.msrb.mxu1 %v11999_v6  ;;  %693 = vmatpush.bf16.msrb.mxu0 %v11999_v6  ;;  %p988_p3 = scmp.lt.s32.totalorder %s12174_s6, 16  ;;  %p845_p4 = scmp.ge.s32.totalorder %s12141_s14, 0 }
  0x4a   : > { %906 = vmatpush.bf16.msrb.mxu3 %v11999_v6  ;;  %p846_p6 = scmp.lt.s32.totalorder %s12141_s14, 16  ;;  %p916_p7 = scmp.ge.s32.totalorder %s12158_s19, 0 }
  0x4b   : > { %835 = vmatpush.bf16.msrb.mxu2 %v11999_v6  ;;  %p12720_p5 = pnand %p988_p3, %p987_p2  ;;  %p917_p8 = scmp.lt.s32.totalorder %s12158_s19, 16 }
  0x4c   : > { %p1058_p9 = scmp.ge.s32.totalorder %s12162_s13, 0  ;;  %p1059_p10 = scmp.lt.s32.totalorder %s12162_s13, 16 }
  0x4d   : > { %765 = vmatpush.bf16.msrb.mxu1 %v12010_v7  ;;  %694 = vmatpush.bf16.msrb.mxu0 %v12010_v7  ;;  %s7862_s27 = scalar_select %p12720_p5, 0, 1 }
  0x4e   : > { %907 = vmatpush.bf16.msrb.mxu3 %v12010_v7  ;;  %p12765_p11 = pnand %p846_p6, %p845_p4  ;;  %p12785_p12 = pnand %p917_p8, %p916_p7 }
  0x4f   : > { %836 = vmatpush.bf16.msrb.mxu2 %v12010_v7  ;;  %p12799_p13 = pnand %p1059_p10, %p1058_p9  ;;  %s7720_s7 = sshll.u32 %s11948_s15, 2 }
  0x50   : > { %766 = vmatmul.bf16.vlgmr.msrb.gmra.mxu1 %v10995_v12  ;;  %695 = vmatmul.bf16.vlgmr.msrb.gmra.mxu0 %v10991_v13  ;;  %v294_v12 = vld [vmem:[#allocation2 + $0x20] sm:$0x1]  ;;  %v11033_v13 = vld [vmem:[%s14591_s3 + $0xa8] sm:$0xff]  ;;  %s7838_s13 = scalar_select %p12765_p11, 0, 1 }
  0x51   : > { %1042 = vmatpush.bf16.msra.mxu1 %v11902_v0  ;;  %971 = vmatpush.bf16.msra.mxu0 %v11902_v0  ;;  %v11035_v0 = vld [vmem:[%s14591_s3 + $0xb8] sm:$0xff]  ;;  %s7874_s11 = scalar_select %p12799_p13, 0, 1 }
  0x52   : > { %1421 = vmatpush.bf16.msra.mxu3 %v11051_v15  ;;  %837 = vmatmul.bf16.vlgmr.msrb.gmra.mxu2 %v10999_v41  ;;  %v295_v15 = vsel %vm12226_vm4, 0, %v294_v12 }
  0x53   : > { %1407 = vmatpush.bf16.msra.mxu2 %v11043_v14  ;;  %908 = vmatmul.bf16.vlgmr.msrb.gmra.mxu3 %v11003_v42  ;;  %v11064_v14 = vld [vmem:[%s14591_s3 + $0x1a0] sm:$0xff]  ;;  %296 = vst [vmem:[#allocation2 + $0x20] sm:$0x1] %v295_v15 }
  0x55   : > { %1043 = vmatpush.bf16.msra.mxu1 %v11914_v1  ;;  %972 = vmatpush.bf16.msra.mxu0 %v11914_v1  ;;  %v11066_v1 = vld [vmem:[%s14591_s3 + $0x1b0] sm:$0xff] }
  0x56   : > { %1422 = vmatpush.bf16.msra.mxu3 %v11050_v17  ;;  %v11070_v17 = vld [vmem:[%s14591_s3 + $0x1d0] sm:$0xff] }
  0x57   : > { %1408 = vmatpush.bf16.msra.mxu2 %v11042_v16  ;;  %v11023_v16 = vld [vmem:[%s14591_s3 + $0x58] sm:$0xff] }
  0x59   : > { %1044 = vmatpush.bf16.msra.mxu1 %v11929_v2  ;;  %973 = vmatpush.bf16.msra.mxu0 %v11929_v2  ;;  %v262_v2 = vld [vmem:[#allocation2 + $0x18] sm:$0x1] }
  0x5a   : > { %1423 = vmatpush.bf16.msra.mxu3 %v11049_v19  ;;  %v11063_v19 = vld [vmem:[%s14591_s3 + $0x198] sm:$0xff] }
  0x5b   : > { %1409 = vmatpush.bf16.msra.mxu2 %v11041_v18  ;;  %v11032_v18 = vld [vmem:[%s14591_s3 + $0xa0] sm:$0xff] }
  0x5d   : > { %1045 = vmatpush.bf16.msra.mxu1 %v11946_v3  ;;  %974 = vmatpush.bf16.msra.mxu0 %v11946_v3  ;;  %v11025_v3 = vld [vmem:[%s14591_s3 + $0x68] sm:$0xff] }
  0x5e   : > { %1424 = vmatpush.bf16.msra.mxu3 %v11048_v21  ;;  %v11069_v21 = vld [vmem:[%s14591_s3 + $0x1c8] sm:$0xff] }
  0x5f   : > { %1410 = vmatpush.bf16.msra.mxu2 %v11040_v20  ;;  %v11022_v20 = vld [vmem:[%s14591_s3 + $0x50] sm:$0xff] }
  0x61   : > { %1046 = vmatpush.bf16.msra.mxu1 %v11963_v4  ;;  %975 = vmatpush.bf16.msra.mxu0 %v11963_v4  ;;  %v11072_v4 = vld [vmem:[%s14591_s3 + $0x1e0] sm:$0xff] }
  0x62   : > { %1425 = vmatpush.bf16.msra.mxu3 %v11047_v39 }
  0x63   : > { %1411 = vmatpush.bf16.msra.mxu2 %v11039_v22  ;;  %v12323_v22 = vld [vmem:[%s14590_s2] ss:$0 sm:$0xff] }
  0x65   : > { %1047 = vmatpush.bf16.msra.mxu1 %v11982_v5  ;;  %976 = vmatpush.bf16.msra.mxu0 %v11982_v5  ;;  %v263_v5 = vsel %vm12112_vm2, 0, %v262_v2 }
  0x66   : > { %1426 = vmatpush.bf16.msra.mxu3 %v11046_v47  ;;  %264 = vst [vmem:[#allocation2 + $0x18] sm:$0x1] %v263_v5 }
  0x67   : > { %1412 = vmatpush.bf16.msra.mxu2 %v11038_v24  ;;  %v495_v24 = vstv %s7778_s8 }
  0x68   : > { %vm496_vm6 = vcmp.eq.s32.totalorder %v495_v24, 1  ;;  %v11199_v24 = vld [vmem:[%s14591_s3 + $0x158] sm:$0xff] }
  0x69   : > { %1048 = vmatpush.bf16.msra.mxu1 %v11999_v6  ;;  %977 = vmatpush.bf16.msra.mxu0 %v11999_v6  ;;  %v288_v6 = vld [vmem:[#allocation2 + $0x8] sm:$0x1] }
  0x6a   : > { %1427 = vmatpush.bf16.msra.mxu3 %v11045_v55 }
  0x6b   : > { %1413 = vmatpush.bf16.msra.mxu2 %v11037_v43 }
  0x6d   : > { %1049 = vmatpush.bf16.msra.mxu1 %v12010_v7  ;;  %978 = vmatpush.bf16.msra.mxu0 %v12010_v7  ;;  %v289_v7 = vsel %vm12226_vm4, 0, %v288_v6 }
  0x6e   : > { %1428 = vmatpush.bf16.msra.mxu3 %v11044_v63  ;;  %290 = vst [vmem:[#allocation2 + $0x8] sm:$0x1] %v289_v7 }
  0x6f   : > { %1414 = vmatpush.bf16.msra.mxu2 %v11036_v51 }
  0x70   : > { %1050 = vmatmul.bf16.vlgmr.msra.gmra.mxu1 %v11011_v45  ;;  %979 = vmatmul.bf16.vlgmr.msra.gmra.mxu0 %v11007_v50  ;;  %v11060_v45 = vld [vmem:[%s14591_s3 + $0x180] sm:$0xff] }
  0x71   : > { %1593 = vmatpush.bf16.msrb.mxu1 %v11019_v27  ;;  %1435 = vmatpush.bf16.msrb.mxu0 %v11059_v28  ;;  %v11062_v27 = vld [vmem:[%s14591_s3 + $0x190] sm:$0xff] }
  0x72   : > { %1621 = vmatpush.bf16.msrb.mxu3 %v11035_v0 }
  0x73   : > { %1607 = vmatpush.bf16.msrb.mxu2 %v11027_v53 }
  0x75   : > { %1594 = vmatpush.bf16.msrb.mxu1 %v11018_v29  ;;  %1436 = vmatpush.bf16.msrb.mxu0 %v11058_v30  ;;  %v11021_v30 = vld [vmem:[%s14591_s3 + $0x48] sm:$0xff] }
  0x76   : > { %1622 = vmatpush.bf16.msrb.mxu3 %v11034_v8 }
  0x77   : > { %1608 = vmatpush.bf16.msrb.mxu2 %v11026_v59 }
  0x79   : > { %1595 = vmatpush.bf16.msrb.mxu1 %v11017_v31  ;;  %1437 = vmatpush.bf16.msrb.mxu0 %v11057_v32  ;;  %v11068_v31 = vld [vmem:[%s14591_s3 + $0x1c0] sm:$0xff] }
  0x7a   : > { %1623 = vmatpush.bf16.msrb.mxu3 %v11033_v13 }
  0x7b   : > { %1609 = vmatpush.bf16.msrb.mxu2 %v11025_v3 }
  0x7d   : > { %1596 = vmatpush.bf16.msrb.mxu1 %v11016_v33  ;;  %1438 = vmatpush.bf16.msrb.mxu0 %v11056_v34 }
  0x7e   : > { %1624 = vmatpush.bf16.msrb.mxu3 %v11032_v18 }
  0x7f   : > { %1610 = vmatpush.bf16.msrb.mxu2 %v11024_v10 }
  0x81   : > { %1597 = vmatpush.bf16.msrb.mxu1 %v11015_v35  ;;  %1439 = vmatpush.bf16.msrb.mxu0 %v11055_v36  ;;  %v11030_v36 = vld [vmem:[%s14591_s3 + $0x90] sm:$0xff] }
  0x82   : > { %1625 = vmatpush.bf16.msrb.mxu3 %v11031_v26  ;;  %v456_v26 = vld [vmem:[#allocation2 + $0x8] sm:$0x1] }
  0x83   : > { %1611 = vmatpush.bf16.msrb.mxu2 %v11023_v16 }
  0x85   : > { %1598 = vmatpush.bf16.msrb.mxu1 %v11014_v37  ;;  %1440 = vmatpush.bf16.msrb.mxu0 %v11054_v40  ;;  %v11061_v37 = vld [vmem:[%s14591_s3 + $0x188] sm:$0xff] }
  0x86   : > { %1626 = vmatpush.bf16.msrb.mxu3 %v11030_v36  ;;  %v526_v36 = vld [vmem:[#allocation2 + $0x14] sm:$0x1] }
  0x87   : > { %1612 = vmatpush.bf16.msrb.mxu2 %v11022_v20 }
  0x89   : > { %1599 = vmatpush.bf16.msrb.mxu1 %v11013_v38  ;;  %1441 = vmatpush.bf16.msrb.mxu0 %v11053_v48  ;;  %v11020_v38 = vld [vmem:[%s14591_s3 + $0x40] sm:$0xff] }
  0x8b   : > { %1613 = vmatpush.bf16.msrb.mxu2 %v11021_v30 }
  0x8d   : > { %1600 = vmatpush.bf16.msrb.mxu1 %v11012_v44  ;;  %1442 = vmatpush.bf16.msrb.mxu0 %v11052_v56  ;;  %v11029_v44 = vld [vmem:[%s14591_s3 + $0x88] sm:$0xff]  ;;  %v452_v56 = vld [vmem:[#allocation2] sm:$0xf] }
  0x8e   : > { %1627 = vmatpush.bf16.msrb.mxu3 %v11029_v44 }
  0x8f   : > { %1614 = vmatpush.bf16.msrb.mxu2 %v11020_v38 }
  0x91   : > { %1875 = vmatpush.bf16.msra.mxu1 %v11075_v46  ;;  %1861 = vmatpush.bf16.msra.mxu0 %v11067_v58 }
  0x95   : > { %1876 = vmatpush.bf16.msra.mxu1 %v11074_v54  ;;  %1862 = vmatpush.bf16.msra.mxu0 %v11066_v1  ;;  %v11028_v1 = vld [vmem:[%s14591_s3 + $0x80] sm:$0xff] }
  0x96   : > { %1628 = vmatpush.bf16.msrb.mxu3 %v11028_v1 }
  0x99   : > { %1877 = vmatpush.bf16.msra.mxu1 %v11073_v60  ;;  %1863 = vmatpush.bf16.msra.mxu0 %v11065_v9 }
  0x9d   : > { %1878 = vmatpush.bf16.msra.mxu1 %v11072_v4  ;;  %1864 = vmatpush.bf16.msra.mxu0 %v11064_v14 }
  0xa1   : > { %1879 = vmatpush.bf16.msra.mxu1 %v11071_v11  ;;  %1865 = vmatpush.bf16.msra.mxu0 %v11063_v19 }
  0xa5   : > { %1880 = vmatpush.bf16.msra.mxu1 %v11070_v17  ;;  %1866 = vmatpush.bf16.msra.mxu0 %v11062_v27 }
  0xa9   : > { %1881 = vmatpush.bf16.msra.mxu1 %v11069_v21  ;;  %1867 = vmatpush.bf16.msra.mxu0 %v11061_v37  ;;  %v593_v21 = vld [vmem:[#allocation2 + $0x18] sm:$0xf] }
  0xad   : > { %v410_v28 = vpop.f32.mrf.mxu0  ;;  %v483_v29 = vpop.f32.mrf.mxu1  ;;  %1882 = vmatpush.bf16.msra.mxu1 %v11068_v31  ;;  %1868 = vmatpush.bf16.msra.mxu0 %v11060_v45 }
  0xae   : > { %v411_v32 = vadd.f32 %v12323_v22, %v410_v28  ;;  %v484_v33 = vadd.f32 %v12323_v22, %v483_v29 }
  0xb0   : > { %v415_v34 = vmax.f32 %v411_v32, 0.0  ;;  %v488_v35 = vmax.f32 %v484_v33, 0.0 }
  0xb2   : > { %v424_v39 = vsel %vm423_vm5, %v415_v34, 0.0  ;;  %v497_v40 = vsel %vm496_vm6, %v488_v35, 0.0 }
  0xb3   : > { %v426_v41 = vpack.c.bf16 %v424_v39, %v424_v39  ;;  %v499_v42 = vpack.c.bf16 %v497_v40, %v497_v40 }
  0xb5   : > { %v554_v43 = vpop.f32.mrf.mxu2  ;;  %v431_v46 = vshrl.u32 %v426_v41, 16  ;;  %v434_v47 = vshll.u32 %v426_v41, 16  ;;  %v502_v48 = vshrl.u32 %v499_v42, 16  ;;  %v412_v49 = vpop.f32.mrf.mxu0  ;;  %v505_v59 = vshll.u32 %v499_v42, 16 }
  0xb6   : > { %v485_v50 = vpop.f32.mrf.mxu1  ;;  %v555_v51 = vadd.f32 %v12323_v22, %v554_v43  ;;  %v413_v53 = vadd.f32 %v12323_v22, %v412_v49 }
  0xb7   : > { %v486_v54 = vadd.f32 %v12323_v22, %v485_v50  ;;  %v433_v55 = vrot.slane %v431_v46, 7  ;;  %v504_v58 = vrot.slane %v502_v48, 7  ;;  %v597_v48 = vld [vmem:[#allocation2 + $0x20] sm:$0x1] }
  0xb8   : > { %v559_v62 = vmax.f32 %v555_v51, 0.0  ;;  %v416_v63 = vmax.f32 %v413_v53, 0.0  ;;  %v11131_v51 = vld [vmem:[%s14591_s3 + $0x178] sm:$0xff] }
  0xb9   : > { %v489_v0 = vmax.f32 %v486_v54, 0.0  ;;  %v436_v2 = vor.u32 %v434_v47, %v433_v55  ;;  %v507_v3 = vor.u32 %v505_v59, %v504_v58  ;;  %v437_v19 = vrot.slane %v433_v55, 4  ;;  %v11130_v59 = vld [vmem:[%s14591_s3 + $0x170] sm:$0xff] }
  0xba   : > { %v568_v4 = vsel %vm567_vm9, %v559_v62, 0.0  ;;  %v425_v5 = vsel %vm423_vm5, %v416_v63, 0.0  ;;  %v508_v33 = vrot.slane %v504_v58, 4  ;;  %v11083_v63 = vld [vmem:[%s14591_s3 + $0x238] sm:$0xff] }
  0xbb   : > { %v498_v6 = vsel %vm496_vm6, %v489_v0, 0.0  ;;  %v453_v7 = vsel %vm12372_vm8, %v436_v2, %v452_v56  ;;  %v523_v8 = vsel %vm12372_vm8, %v507_v3, %v522_v61  ;;  %v570_v9 = vpack.c.bf16 %v568_v4, %v568_v4  ;;  %v11129_v3 = vld [vmem:[%s14591_s3 + $0x168] sm:$0xff] }
  0xbc   : > { %v427_v10 = vpack.c.bf16 %v425_v5, %v425_v5  ;;  %454 = vst [vmem:[#allocation2] sm:$0xf] %v453_v7  ;;  %v500_v11 = vpack.c.bf16 %v498_v6, %v498_v6  ;;  %v11123_v6 = vld [vmem:[%s14591_s3 + $0x138] sm:$0xff] }
  0xbd   : > { %v556_v12 = vpop.f32.mrf.mxu2  ;;  %524 = vst [vmem:[#allocation2 + $0xc] sm:$0xf] %v523_v8  ;;  %v573_v13 = vshrl.u32 %v570_v9, 16  ;;  %v576_v14 = vshll.u32 %v570_v9, 16 }
  0xbe   : > { %v439_v15 = vshrl.u32 %v427_v10, 16  ;;  %v442_v16 = vshll.u32 %v427_v10, 16  ;;  %v510_v17 = vshrl.u32 %v500_v11, 16  ;;  %v557_v18 = vadd.f32 %v12323_v22, %v556_v12  ;;  %v11082_v10 = vld [vmem:[%s14591_s3 + $0x230] sm:$0xff] }
  0xbf   : > { %v575_v20 = vrot.slane %v573_v13, 7  ;;  %v513_v28 = vshll.u32 %v500_v11, 16 }
  0xc0   : > { %v441_v23 = vrot.slane %v439_v15, 7  ;;  %v512_v27 = vrot.slane %v510_v17, 7  ;;  %v560_v29 = vmax.f32 %v557_v18, 0.0 }
  0xc1   : > { %v578_v30 = vor.u32 %v576_v14, %v575_v20  ;;  %v579_v46 = vrot.slane %v575_v20, 4  ;;  %v11128_v20 = vld [vmem:[%s14591_s3 + $0x160] sm:$0xff] }
  0xc2   : > { %v444_v31 = vor.u32 %v442_v16, %v441_v23  ;;  %v446_v32 = vrot.slane %v441_v23, 4  ;;  %v515_v34 = vor.u32 %v513_v28, %v512_v27  ;;  %v517_v35 = vrot.slane %v512_v27, 4  ;;  %v11115_v28 = vld [vmem:[%s14591_s3 + $0xf8] sm:$0xff] }
  0xc3   : > { %v569_v37 = vsel %vm567_vm9, %v560_v29, 0.0  ;;  %v594_v38 = vsel %vm12372_vm8, %v578_v30, %v593_v21  ;;  %v11122_v30 = vld [vmem:[%s14591_s3 + $0x130] sm:$0xff] }
  0xc4   : > { %v445_v39 = vsel %vm12388_vm11, %v437_v19, %v444_v31  ;;  %v457_v40 = vsel %vm12112_vm2, %v446_v32, %v456_v26  ;;  %v571_v41 = vpack.c.bf16 %v569_v37, %v569_v37  ;;  %595 = vst [vmem:[#allocation2 + $0x18] sm:$0xf] %v594_v38  ;;  %v516_v42 = vsel %vm12388_vm11, %v508_v33, %v515_v34  ;;  %v11764_v55 = vld [vmem:[#allocation2 + $0xc] sm:$0xe]  ;;  %v265_v38 = vld [vmem:[#allocation2 + $0x24] sm:$0x1] }
  0xc5   : > { %455 = vst [vmem:[#allocation2 + $0x4] sm:$0xf] %v445_v39  ;;  %v527_v43 = vsel %vm12112_vm2, %v517_v35, %v526_v36  ;;  %v11081_v31 = vld [vmem:[%s14591_s3 + $0x228] sm:$0xff]  ;;  %v625_v39 = vpop.f32.mrf.mxu3 }
  0xc6   : > { %v581_v44 = vshrl.u32 %v571_v41, 16  ;;  %v584_v45 = vshll.u32 %v571_v41, 16  ;;  %458 = vst [vmem:[#allocation2 + $0x8] sm:$0x1] %v457_v40  ;;  %v12464_v40 = vstv %s7802_s22  ;;  %v11114_v41 = vld [vmem:[%s14591_s3 + $0xf0] sm:$0xff] }
  0xc7   : > { %525 = vst [vmem:[#allocation2 + $0x10] sm:$0xf] %v516_v42  ;;  %vm638_vm14 = vcmp.eq.s32.totalorder %v12464_v40, 1  ;;  %s7850_s22 = scalar_select %p12785_p12, 0, 1 }
  0xc8   : > { %v583_v47 = vrot.slane %v581_v44, 7  ;;  %528 = vst [vmem:[#allocation2 + $0x14] sm:$0x1] %v527_v43  ;;  %v11127_v43 = vld [vmem:[%s14591_s3 + $0x158] sm:$0xff]  ;;  %v266_v44 = vsel %vm12112_vm2, 0, %v265_v38 }
  0xc9   : > { %267 = vst [vmem:[#allocation2 + $0x24] sm:$0x1] %v266_v44  ;;  %v11110_v44 = vld [vmem:[%s14591_s3 + $0xd0] sm:$0xff] }
  0xca   : > { %v586_v49 = vor.u32 %v584_v45, %v583_v47  ;;  %v588_v50 = vrot.slane %v583_v47, 4  ;;  %v626_v45 = vadd.f32 %v12323_v22, %v625_v39  ;;  %v11080_v47 = vld [vmem:[%s14591_s3 + $0x220] sm:$0xff]  ;;  %v11139_v39 = vld [vmem:[%s14591_s3 + $0x1b8] sm:$0xff] }
  0xcc   : > { %v587_v52 = vsel %vm12388_vm11, %v579_v46, %v586_v49  ;;  %v598_v53 = vsel %vm12112_vm2, %v588_v50, %v597_v48  ;;  %v12410_v54 = vld [vmem:[#allocation2] sm:$0xff]   ;;  %v11121_v46 = vld [vmem:[%s14591_s3 + $0x128] sm:$0xff]  ;;  %v630_v49 = vmax.f32 %v626_v45, 0.0 }
  0xcd   : > { %596 = vst [vmem:[#allocation2 + $0x1c] sm:$0xf] %v587_v52  ;;  %1601 = vmatmul.bf16.vlgmr.msrb.gmra.mxu1 %v12410_v54  ;;  %v1100_v62 = vld [vmem:[#allocation2 + $0x8] sm:$0x1]  ;;  %v1115_v18 = vshll.u32 %v12410_v54, 16  ;;  %v1113_v35 = vshrl.u32 %v12410_v54, 16 }
  0xce   : > { %599 = vst [vmem:[#allocation2 + $0x20] sm:$0x1] %v598_v53  ;;  %2250 = vmatpush.bf16.msrb.mxu1 %v11131_v51  ;;  %v1181_v56 = vld [vmem:[#allocation2 + $0xc] sm:$0xff]   ;;  %v1109_v4 = vunpack.c.l.b16 %v1100_v62  ;;  %v11676_v52 = vld [vmem:[#allocation2] sm:$0xf0] }
  0xcf   : > { %v11763_v58 = vld [vmem:[#allocation2 + $0xc] sm:$0xf0]  ;;  %v1183_v61 = vld [vmem:[#allocation2 + $0x14] sm:$0x1]  ;;  %1415 = vmatmul.bf16.vlgmr.msra.gmra.mxu2 %v1181_v56  ;;  %v1197_v7 = vshll.u32 %v1181_v56, 16  ;;  %v1195_v14 = vshrl.u32 %v1181_v56, 16 }
  0xd0   : > { %v1192_v0 = vunpack.c.l.b16 %v1183_v61  ;;  %v11765_v1 = vor.u32 %v11764_v55, %v11763_v58  ;;  %1889 = vmatpush.bf16.msra.mxu2 %v11083_v63  ;;  %v12443_v23 = vpack.c.b16 %v1109_v4, %v1109_v4  ;;  %v1117_v36 = vrot.slane %v1115_v18, 1  ;;  %v11677_v53 = vld [vmem:[#allocation2] sm:$0xe]  ;;  %v11113_v54 = vld [vmem:[%s14591_s3 + $0xe8] sm:$0xff]  ;;  %v11126_v62 = vld [vmem:[%s14591_s3 + $0x150] sm:$0xff] }
  0xd1   : > { %v1199_v15 = vrot.slane %v1197_v7, 1  ;;  %v639_v56 = vsel %vm638_vm14, %v630_v49, 0.0  ;;  %v11120_v58 = vld [vmem:[%s14591_s3 + $0x120] sm:$0xff]  ;;  %v11678_v63 = vor.u32 %v11677_v53, %v11676_v52  ;;  %v297_v4 = vld [vmem:[#allocation2 + $0x2c] sm:$0x1]  ;;  %v11091_v49 = vld [vmem:[%s14591_s3 + $0x38] sm:$0xff] }
  0xd2   : > { %2251 = vmatpush.bf16.msrb.mxu1 %v11130_v59  ;;  %v1193_v2 = vpack.c.b16 %v1192_v0, %v1192_v0  ;;  %v1210_v5 = vrot.slane %v11765_v1, 1  ;;  %v1120_v37 = vshll.u32 %v12443_v23, 16  ;;  %v1118_v50 = vor.u32 %v1117_v36, %v1113_v35  ;;  %v11079_v59 = vld [vmem:[%s14591_s3 + $0x218] sm:$0xff]  ;;  %v664_v18 = vld [vmem:[#allocation2 + $0x24] sm:$0xf]  ;;  %v11117_v45 = vld [vmem:[%s14591_s3 + $0x108] sm:$0xff] }
  0xd3   : > { %v1200_v26 = vor.u32 %v1199_v15, %v1195_v14  ;;  %v641_v61 = vpack.c.bf16 %v639_v56, %v639_v56  ;;  %v11125_v15 = vld [vmem:[%s14591_s3 + $0x148] sm:$0xff] }
  0xd4   : > { %v12431_v8 = vld [vmem:[#allocation2 + $0x18] sm:$0xff]   ;;  %v1211_v9 = vrot.slane %v1193_v2, 1  ;;  %v1202_v11 = vshll.u32 %v1193_v2, 16  ;;  %1890 = vmatpush.bf16.msra.mxu2 %v11082_v10  ;;  %v1122_v51 = vrot.slane %v1120_v37, 1  ;;  %v298_v10 = vsel %vm12226_vm4, 0, %v297_v4  ;;  %v11124_v37 = vld [vmem:[%s14591_s3 + $0x140] sm:$0xff] }
  0xd5   : > { %v1637_v12 = vld [vmem:[#allocation2 + $0x20] sm:$0x1]  ;;  %v1651_v13 = vshll.u32 %v12431_v8, 16  ;;  %v1649_v17 = vshrl.u32 %v12431_v8, 16  ;;  %v644_v2 = vshrl.u32 %v641_v61, 16 }
  0xd6   : > { %v1646_v16 = vunpack.c.l.b16 %v1637_v12  ;;  %v1212_v19 = vsel %vm1128_vm12, %v1210_v5, %v1211_v9  ;;  %2252 = vmatpush.bf16.msrb.mxu1 %v11129_v3  ;;  %v1204_v27 = vrot.slane %v1202_v11, 1  ;;  %v1999_v55 = vld [vmem:[#allocation2 + $0x20] sm:$0x1]  ;;  %v1123_v0 = vsel %vm1111_vm13, %v1118_v50, %v1122_v51  ;;  %v627_v5 = vpop.f32.mrf.mxu3  ;;  %v11682_v7 = vld [vmem:[#allocation2 + $0x18] sm:$0xf0] }
  0xd7   : > { %v1653_v21 = vrot.slane %v1651_v13, 1  ;;  %1443 = vmatmul.bf16.vlgmr.msrb.gmra.mxu0 %v1212_v19  ;;  %v2008_v1 = vunpack.c.l.b16 %v1999_v55  ;;  %v647_v3 = vshll.u32 %v641_v61, 16  ;;  %v11683_v9 = vld [vmem:[#allocation2 + $0x18] sm:$0xe]  ;;  %v628_v11 = vadd.f32 %v12323_v22, %v627_v5  ;;  %v11078_v13 = vld [vmem:[%s14591_s3 + $0x210] sm:$0xff]  ;;  %v11108_v4 = vld [vmem:[%s14591_s3 + $0xc0] sm:$0xff] }
  0xd8   : > { %v12450_v29 = vpack.c.b16 %v1646_v16, %v1646_v16  ;;  %2236 = vmatpush.bf16.msrb.mxu0 %v11123_v6  ;;  %v1205_v32 = vsel %vm1111_vm13, %v1200_v26, %v1204_v27  ;;  %1891 = vmatpush.bf16.msra.mxu2 %v11081_v31  ;;  %v11112_v6 = vld [vmem:[%s14591_s3 + $0xe0] sm:$0xff]  ;;  %v11119_v12 = vld [vmem:[%s14591_s3 + $0x118] sm:$0xff]  ;;  %v12511_v14 = vrot.slane %v644_v2, 7  ;;  %299 = vst [vmem:[#allocation2 + $0x2c] sm:$0x1] %v298_v10  ;;  %v1129_v16 = vrot.slane %v11678_v63, 1 }
  0xd9   : > { %v12459_v33 = vor.u32 %v1653_v21, %v1649_v17  ;;  %1429 = vmatmul.bf16.vlgmr.msra.gmra.mxu3 %v1205_v32  ;;  %v1130_v17 = vrot.slane %v12443_v23, 1  ;;  %v631_v19 = vmax.f32 %v628_v11, 0.0  ;;  %v11684_v21 = vor.u32 %v11683_v9, %v11682_v7  ;;  %v11679_v26 = vld [vmem:[#allocation2 + $0x18] sm:$0xf0]  ;;  %v11680_v27 = vld [vmem:[#allocation2 + $0x18] sm:$0xe] }
  0xda   : > { %v1656_v34 = vshll.u32 %v12450_v29, 16  ;;  %2253 = vmatpush.bf16.msrb.mxu1 %v11128_v20  ;;  %2222 = vmatpush.bf16.msra.mxu3 %v11115_v28  ;;  %v12517_v20 = vpack.c.b16 %v2008_v1, %v2008_v1  ;;  %v649_v28 = vor.u32 %v647_v3, %v12511_v14  ;;  %v11118_v23 = vld [vmem:[%s14591_s3 + $0x110] sm:$0xff]  ;;  %v11077_v32 = vld [vmem:[%s14591_s3 + $0x208] sm:$0xff]  ;;  %v11681_v38 = vor.u32 %v11680_v27, %v11679_v26  ;;  %v11107_v63 = vld [vmem:[%s14591_s3 + $0xb8] sm:$0xff] }
  0xdb   : > { %v640_v31 = vsel %vm638_vm14, %v631_v19, 0.0  ;;  %v1131_v36 = vsel %vm1128_vm12, %v1129_v16, %v1130_v17  ;;  %v2026_v40 = vrot.slane %v11684_v21, 1  ;;  %v1665_v51 = vrot.slane %v12450_v29, 1  ;;  %v11116_v29 = vld [vmem:[%s14591_s3 + $0x100] sm:$0xff]  ;;  %v11137_v2 = vld [vmem:[%s14591_s3 + $0x1a8] sm:$0xff]  ;;  %v11099_v5 = vld [vmem:[%s14591_s3 + $0x78] sm:$0xff]  ;;  %v767_v21 = vpop.f32.mrf.mxu1 }
  0xdc   : > { %v1658_v42 = vrot.slane %v1656_v34, 1  ;;  %2237 = vmatpush.bf16.msrb.mxu0 %v11122_v30  ;;  %1892 = vmatpush.bf16.msra.mxu2 %v11080_v47  ;;  %v11111_v30 = vld [vmem:[%s14591_s3 + $0xd8] sm:$0xff]  ;;  %v665_v34 = vsel %vm12372_vm8, %v649_v28, %v664_v18  ;;  %v642_v35 = vpack.c.bf16 %v640_v31, %v640_v31  ;;  %v650_v47 = vrot.slane %v12511_v14, 4  ;;  %v11089_v7 = vld [vmem:[%s14591_s3 + $0x28] sm:$0xff]  ;;  %v11136_v10 = vld [vmem:[%s14591_s3 + $0x1a0] sm:$0xff] }
  0xdd   : > { %666 = vst [vmem:[#allocation2 + $0x24] sm:$0xf] %v665_v34  ;;  %v1664_v50 = vrot.slane %v11681_v38, 1  ;;  %v2018_v55 = vshll.u32 %v12517_v20, 16  ;;  %v268_v11 = vld [vmem:[#allocation2 + $0x30] sm:$0x1]  ;;  %v12641_v26 = vstv %s7826_s30  ;;  %v768_v31 = vadd.f32 %v12323_v22, %v767_v21 }
  0xde   : > { %v1659_v48 = vsel %vm1111_vm13, %v12459_v33, %v1658_v42  ;;  %2223 = vmatpush.bf16.msra.mxu3 %v11114_v41  ;;  %2254 = vmatpush.bf16.msrb.mxu1 %v11127_v43  ;;  %v2027_v41 = vrot.slane %v12517_v20, 1  ;;  %v652_v42 = vshrl.u32 %v642_v35, 16  ;;  %v655_v43 = vshll.u32 %v642_v35, 16  ;;  %v11105_v16 = vld [vmem:[%s14591_s3 + $0xa8] sm:$0xff]  ;;  %v11088_v17 = vld [vmem:[%s14591_s3 + $0x20] sm:$0xff]  ;;  %v11135_v19 = vld [vmem:[%s14591_s3 + $0x198] sm:$0xff] }
  0xdf   : > { %1883 = vmatmul.bf16.vlgmr.msra.gmra.mxu1 %v1659_v48  ;;  %1615 = vmatmul.bf16.vlgmr.msrb.gmra.mxu2 %v1123_v0  ;;  %v668_v52 = vld [vmem:[#allocation2 + $0x2c] sm:$0x1]  ;;  %v11090_v0 = vld [vmem:[%s14591_s3 + $0x30] sm:$0xff]  ;;  %v1666_v1 = vsel %vm1128_vm12, %v1664_v50, %v1665_v51  ;;  %v2020_v3 = vrot.slane %v2018_v55, 1  ;;  %v271_v20 = vld [vmem:[#allocation2 + $0x3c] sm:$0x1] }
  0xe0   : > { %2238 = vmatpush.bf16.msrb.mxu0 %v11121_v46  ;;  %1893 = vmatpush.bf16.msra.mxu2 %v11079_v59  ;;  %v11076_v46 = vld [vmem:[%s14591_s3 + $0x200] sm:$0xff]  ;;  %v654_v48 = vrot.slane %v652_v42, 7  ;;  %v2028_v53 = vsel %vm1128_vm12, %v2026_v40, %v2027_v41  ;;  %v11109_v59 = vld [vmem:[%s14591_s3 + $0xc8] sm:$0xff]  ;;  %v12645_v28 = vld [vmem:[#allocation2 + $0xc] sm:$0xf0]  ;;  %vm780_vm0 = vcmp.eq.s32.totalorder %v12641_v26, 1 }
  0xe1   : > { %v2021_v9 = vsel %vm1111_vm13, %v12459_v33, %v2020_v3  ;;  %v11098_v33 = vld [vmem:[%s14591_s3 + $0x70] sm:$0xff]  ;;  %v11104_v34 = vld [vmem:[%s14591_s3 + $0xa0] sm:$0xff]  ;;  %v11087_v35 = vld [vmem:[%s14591_s3 + $0x18] sm:$0xff] }
  0xe2   : > { %2224 = vmatpush.bf16.msra.mxu3 %v11113_v54  ;;  %2255 = vmatpush.bf16.msrb.mxu1 %v11126_v62  ;;  %v11138_v54 = vld [vmem:[%s14591_s3 + $0x1b0] sm:$0xff]  ;;  %v657_v56 = vor.u32 %v655_v43, %v654_v48  ;;  %v300_v40 = vld [vmem:[#allocation2 + $0x38] sm:$0x1]  ;;  %v11101_v26 = vld [vmem:[%s14591_s3 + $0x88] sm:$0xff] }
  0xe3   : > { %v12643_v27 = vld [vmem:[#allocation2 + $0xc] sm:$0xff]   ;;  %v301_v43 = vsel %vm12226_vm4, 0, %v300_v40  ;;  %v11103_v50 = vld [vmem:[%s14591_s3 + $0x98] sm:$0xff] }
  0xe4   : > { %2239 = vmatpush.bf16.msrb.mxu0 %v11120_v58  ;;  %1894 = vmatpush.bf16.msra.mxu2 %v11078_v13  ;;  %v659_v58 = vrot.slane %v654_v48, 4  ;;  %v658_v61 = vsel %vm12388_vm11, %v650_v47, %v657_v56  ;;  %v269_v13 = vsel %vm12112_vm2, 0, %v268_v11  ;;  %v12674_v47 = vld [vmem:[#allocation2 + $0xc] sm:$0xe]  ;;  %302 = vst [vmem:[#allocation2 + $0x38] sm:$0x1] %v301_v43 }
  0xe5   : > { %667 = vst [vmem:[#allocation2 + $0x28] sm:$0xf] %v658_v61  ;;  %v11086_v51 = vld [vmem:[%s14591_s3 + $0x10] sm:$0xff]  ;;  %v303_v61 = vld [vmem:[#allocation2 + $0x44] sm:$0x1]  ;;  %v11095_v3 = vld [vmem:[%s14591_s3 + $0x58] sm:$0xff] }
  0xe6   : > { %2225 = vmatpush.bf16.msra.mxu3 %v11112_v6  ;;  %2256 = vmatpush.bf16.msrb.mxu1 %v11125_v15  ;;  %v669_v62 = vsel %vm12112_vm2, %v659_v58, %v668_v52  ;;  %v11106_v6 = vld [vmem:[%s14591_s3 + $0xb0] sm:$0xff]  ;;  %v12625_v15 = vstv %s7814_s24  ;;  %270 = vst [vmem:[#allocation2 + $0x30] sm:$0x1] %v269_v13  ;;  %v11132_v11 = vld [vmem:[%s14591_s3 + $0x180] sm:$0xff]  ;;  %v1930_v40 = vshrl.u32 %v12643_v27, 16 }
  0xe7   : > { %1869 = vmatmul.bf16.vlgmr.msra.gmra.mxu0 %v12431_v8  ;;  %670 = vst [vmem:[#allocation2 + $0x2c] sm:$0x1] %v669_v62  ;;  %vm709_vm15 = vcmp.eq.s32.totalorder %v12625_v15, 1  ;;  %v769_v62 = vpop.f32.mrf.mxu1  ;;  %v11195_v15 = vld [vmem:[%s14591_s3 + $0x138] sm:$0xff] }
  0xe8   : > { %2240 = vmatpush.bf16.msrb.mxu0 %v11119_v12  ;;  %1895 = vmatpush.bf16.msra.mxu2 %v11077_v32  ;;  %v696_v12 = vpop.f32.mrf.mxu0 }
  0xe9   : > { %1629 = vmatmul.bf16.vlgmr.msrb.gmra.mxu3 %v1131_v36  ;;  %v697_v14 = vadd.f32 %v12323_v22, %v696_v12  ;;  %v772_v36 = vmax.f32 %v768_v31, 0.0 }
  0xea   : > { %2226 = vmatpush.bf16.msra.mxu3 %v11111_v30  ;;  %2257 = vmatpush.bf16.msrb.mxu1 %v11124_v37  ;;  %v11134_v37 = vld [vmem:[%s14591_s3 + $0x190] sm:$0xff] }
  0xeb   : > { %v701_v18 = vmax.f32 %v697_v14, 0.0  ;;  %v781_v42 = vsel %vm780_vm0, %v772_v36, 0.0  ;;  %v739_v31 = vld [vmem:[#allocation2 + $0x38] sm:$0x1] }
  0xec   : > { %2241 = vmatpush.bf16.msrb.mxu0 %v11118_v23  ;;  %1896 = vmatpush.bf16.msra.mxu2 %v11076_v46  ;;  %v11097_v23 = vld [vmem:[%s14591_s3 + $0x68] sm:$0xff]  ;;  %v1918_v46 = vld [vmem:[#allocation2 + $0x14] sm:$0x1] }
  0xed   : > { %v710_v30 = vsel %vm709_vm15, %v701_v18, 0.0  ;;  %v735_v52 = vld [vmem:[#allocation2 + $0x30] sm:$0xf] }
  0xee   : > { %2675 = vmatpush.bf16.msra.mxu1 %v11139_v39  ;;  %2227 = vmatpush.bf16.msra.mxu3 %v11110_v44  ;;  %v712_v32 = vpack.c.bf16 %v710_v30, %v710_v30 }
  0xef   : > { %2258 = vmatmul.bf16.vlgmr.msrb.gmra.mxu1 %v2028_v53  ;;  %1897 = vmatmul.bf16.vlgmr.msra.gmra.mxu2 %v1666_v1  ;;  %v304_v1 = vsel %vm12226_vm4, 0, %v303_v61  ;;  %v11193_v61 = vld [vmem:[%s14591_s3 + $0x128] sm:$0xff] }
  0xf0   : > { %2242 = vmatpush.bf16.msrb.mxu0 %v11117_v45  ;;  %2408 = vmatpush.bf16.msrb.mxu2 %v11091_v49  ;;  %v715_v38 = vshrl.u32 %v712_v32, 16  ;;  %v718_v39 = vshll.u32 %v712_v32, 16  ;;  %v698_v41 = vpop.f32.mrf.mxu0  ;;  %v11096_v45 = vld [vmem:[%s14591_s3 + $0x60] sm:$0xff]  ;;  %v783_v49 = vpack.c.bf16 %v781_v42, %v781_v42  ;;  %305 = vst [vmem:[#allocation2 + $0x44] sm:$0x1] %v304_v1  ;;  %v11093_v42 = vld [vmem:[%s14591_s3 + $0x48] sm:$0xff] }
  0xf1   : > { %v699_v44 = vadd.f32 %v12323_v22, %v698_v41  ;;  %v11092_v1 = vld [vmem:[%s14591_s3 + $0x40] sm:$0xff] }
  0xf2   : > { %2676 = vmatpush.bf16.msra.mxu1 %v11138_v54  ;;  %2228 = vmatpush.bf16.msra.mxu3 %v11109_v59  ;;  %v12676_v48 = vrot.slane %v715_v38, 7  ;;  %v11133_v54 = vld [vmem:[%s14591_s3 + $0x188] sm:$0xff]  ;;  %v786_v56 = vshrl.u32 %v783_v49, 16  ;;  %v789_v58 = vshll.u32 %v783_v49, 16 }
  0xf3   : > { %v702_v53 = vmax.f32 %v699_v44, 0.0  ;;  %v12689_v59 = vld [vmem:[#allocation2 + $0x24] sm:$0xff]  }
  0xf4   : > { %2243 = vmatpush.bf16.msrb.mxu0 %v11116_v29  ;;  %2409 = vmatpush.bf16.msrb.mxu2 %v11090_v0  ;;  %v720_v55 = vor.u32 %v718_v39, %v12676_v48  ;;  %v12691_v29 = vld [vmem:[#allocation2 + $0x24] sm:$0xf0] }
  0xf5   : > { %v711_v0 = vsel %vm709_vm15, %v702_v53, 0.0  ;;  %v12779_v49 = vld [vmem:[#allocation2 + $0x24] sm:$0xf0] }
  0xf6   : > { %2677 = vmatpush.bf16.msra.mxu1 %v11137_v2  ;;  %2229 = vmatpush.bf16.msra.mxu3 %v11108_v4  ;;  %v770_v2 = vadd.f32 %v12323_v22, %v769_v62  ;;  %v11102_v4 = vld [vmem:[%s14591_s3 + $0x90] sm:$0xff]  ;;  %v11085_v22 = vld [vmem:[%s14591_s3 + $0x8] sm:$0xff] }
  0xf7   : > { %2244 = vmatmul.bf16.vlgmr.msrb.gmra.mxu0 %v2021_v9 }
  0xf8   : > { %2436 = vmatpush.bf16.msra.mxu0 %v11107_v63  ;;  %2410 = vmatpush.bf16.msrb.mxu2 %v11089_v7  ;;  %v1927_v63 = vunpack.c.l.b16 %v1918_v46  ;;  %v713_v7 = vpack.c.bf16 %v711_v0, %v711_v0 }
  0xf9   : > { %2230 = vmatmul.bf16.vlgmr.msra.gmra.mxu3 %v12431_v8  ;;  %v272_v8 = vsel %vm12112_vm2, 0, %v271_v20  ;;  %v721_v20 = vrot.slane %v12676_v48, 4  ;;  %v12777_v48 = vld [vmem:[#allocation2 + $0x24] sm:$0xff]  }
  0xfa   : > { %2422 = vmatpush.bf16.msrb.mxu3 %v11099_v5  ;;  %2678 = vmatpush.bf16.msra.mxu1 %v11136_v10  ;;  %273 = vst [vmem:[#allocation2 + $0x3c] sm:$0x1] %v272_v8  ;;  %v736_v5 = vsel %vm12372_vm8, %v720_v55, %v735_v52  ;;  %v773_v10 = vmax.f32 %v770_v2, 0.0  ;;  %v723_v13 = vshrl.u32 %v713_v7, 16  ;;  %v726_v14 = vshll.u32 %v713_v7, 16  ;;  %v11084_v8 = vld [vmem:[%s14591_s3] sm:$0xff] }
  0xfb   : > { %737 = vst [vmem:[#allocation2 + $0x30] sm:$0xf] %v736_v5  ;;  %v810_v52 = vld [vmem:[#allocation2 + $0x44] sm:$0x1]  ;;  %v11186_v7 = vld [vmem:[%s14591_s3 + $0xf0] sm:$0xff] }
  0xfc   : > { %2437 = vmatpush.bf16.msra.mxu0 %v11106_v6  ;;  %2411 = vmatpush.bf16.msrb.mxu2 %v11088_v17  ;;  %v12706_v6 = vrot.slane %v786_v56, 7  ;;  %v1932_v17 = vshll.u32 %v12643_v27, 16  ;;  %v782_v18 = vsel %vm780_vm0, %v773_v10, 0.0  ;;  %v725_v30 = vrot.slane %v723_v13, 7 }
  0xfd   : > { %v2464_v13 = vshrl.u32 %v12689_v59, 16 }
  0xfe   : > { %2423 = vmatpush.bf16.msrb.mxu3 %v11098_v33  ;;  %2679 = vmatpush.bf16.msra.mxu1 %v11135_v19  ;;  %v791_v12 = vor.u32 %v789_v58, %v12706_v6  ;;  %v12728_v33 = vpack.c.b16 %v1927_v63, %v1927_v63  ;;  %v11094_v19 = vld [vmem:[%s14591_s3 + $0x50] sm:$0xff]  ;;  %v728_v32 = vor.u32 %v726_v14, %v725_v30  ;;  %v1934_v41 = vrot.slane %v1932_v17, 1  ;;  %v2811_v58 = vld [vmem:[#allocation2 + $0x2c] sm:$0x1] }
  0xff   : > { %v792_v43 = vrot.slane %v12706_v6, 4  ;;  %v2820_v0 = vunpack.c.l.b16 %v2811_v58  ;;  %v2825_v14 = vshll.u32 %v12777_v48, 16  ;;  %v11185_v17 = vld [vmem:[%s14591_s3 + $0xe8] sm:$0xff]  ;;  %v11190_v58 = vld [vmem:[%s14591_s3 + $0x110] sm:$0xff] }
 0x100   : > { %2438 = vmatpush.bf16.msra.mxu0 %v11105_v16  ;;  %2412 = vmatpush.bf16.msrb.mxu2 %v11087_v35  ;;  %v11768_v16 = vor.u32 %v12674_v47, %v12645_v28  ;;  %v784_v28 = vpack.c.bf16 %v782_v18, %v782_v18  ;;  %v1946_v39 = vrot.slane %v12728_v33, 1  ;;  %v729_v44 = vsel %vm12388_vm11, %v721_v20, %v728_v32  ;;  %v2452_v47 = vld [vmem:[#allocation2 + $0x2c] sm:$0x1]  ;;  %v11144_v18 = vld [vmem:[%s14591_s3 + $0x1e0] sm:$0xff]  ;;  %v909_v32 = vpop.f32.mrf.mxu3 }
 0x101   : > { %v806_v9 = vld [vmem:[#allocation2 + $0x3c] sm:$0xf]  ;;  %738 = vst [vmem:[#allocation2 + $0x34] sm:$0xf] %v729_v44  ;;  %v2461_v53 = vunpack.c.l.b16 %v2452_v47  ;;  %v1937_v62 = vshll.u32 %v12728_v33, 16  ;;  %v1935_v5 = vor.u32 %v1934_v41, %v1930_v40  ;;  %v12829_v6 = vpack.c.b16 %v2820_v0, %v2820_v0  ;;  %v980_v33 = vpop.f32.mrf.mxu0  ;;  %v1051_v44 = vpop.f32.mrf.mxu1 }
 0x102   : > { %2424 = vmatpush.bf16.msrb.mxu3 %v11097_v23  ;;  %2680 = vmatpush.bf16.msra.mxu1 %v11134_v37  ;;  %v807_v21 = vsel %vm12372_vm8, %v791_v12, %v806_v9  ;;  %v11147_v23 = vld [vmem:[%s14591_s3 + $0x1f8] sm:$0xff]  ;;  %v794_v35 = vshrl.u32 %v784_v28, 16  ;;  %v797_v36 = vshll.u32 %v784_v28, 16  ;;  %v11194_v37 = vld [vmem:[%s14591_s3 + $0x130] sm:$0xff]  ;;  %v1945_v38 = vrot.slane %v11768_v16, 1  ;;  %v838_v28 = vpop.f32.mrf.mxu2 }
 0x103   : > { %808 = vst [vmem:[#allocation2 + $0x3c] sm:$0xf] %v807_v21  ;;  %v12811_v63 = vpack.c.b16 %v2461_v53, %v2461_v53  ;;  %v1939_v12 = vrot.slane %v1937_v62, 1  ;;  %v11154_v16 = vld [vmem:[%s14591_s3 + $0x230] sm:$0xff]  ;;  %v12861_v20 = vld [vmem:[%s14590_s2] ss:$0 sm:$0xff]  ;;  %v12883_v40 = vstv %s7838_s13 }
 0x104   : > { %2439 = vmatpush.bf16.msra.mxu0 %v11104_v34  ;;  %2413 = vmatpush.bf16.msrb.mxu2 %v11086_v51  ;;  %v730_v34 = vrot.slane %v725_v30, 4  ;;  %v796_v46 = vrot.slane %v794_v35, 7  ;;  %v11187_v51 = vld [vmem:[%s14591_s3 + $0xf8] sm:$0xff]  ;;  %v1947_v10 = vsel %vm1128_vm12, %v1945_v38, %v1946_v39  ;;  %v981_v21 = vadd.f32 %v12861_v20, %v980_v33  ;;  %v277_v39 = vld [vmem:[#allocation2 + $0x54] sm:$0x1]  ;;  %s14625_s13 = sld [smem:[#allocation10_spill]] }
 0x105   : > { %v2471_v9 = vshll.u32 %v12811_v63, 16  ;;  %v12867_v30 = vstv %s7862_s27  ;;  %v839_v38 = vadd.f32 %v12861_v20, %v838_v28  ;;  %v278_v41 = vsel %vm12112_vm2, 0, %v277_v39  ;;  %v11143_v53 = vld [vmem:[%s14591_s3 + $0x1d8] sm:$0xff] }
 0x106   : > { %2425 = vmatpush.bf16.msrb.mxu3 %v11096_v45  ;;  %2681 = vmatpush.bf16.msra.mxu1 %v11133_v54  ;;  %v740_v45 = vsel %vm12112_vm2, %v730_v34, %v739_v31  ;;  %v11146_v54 = vld [vmem:[%s14591_s3 + $0x1f0] sm:$0xff]  ;;  %v799_v55 = vor.u32 %v797_v36, %v796_v46  ;;  %v801_v56 = vrot.slane %v796_v46, 4  ;;  %v2823_v31 = vshrl.u32 %v12777_v48, 16  ;;  %v11191_v34 = vld [vmem:[%s14591_s3 + $0x118] sm:$0xff]  ;;  %279 = vst [vmem:[#allocation2 + $0x54] sm:$0x1] %v278_v41 }
 0x107   : > { %741 = vst [vmem:[#allocation2 + $0x38] sm:$0x1] %v740_v45  ;;  %v12874_v35 = vrot.slane %v2471_v9, 1  ;;  %v985_v36 = vmax.f32 %v981_v21, 0.0  ;;  %vm993_vm1 = vcmp.eq.s32.totalorder %v12867_v30, 1  ;;  %v2827_v45 = vrot.slane %v2825_v14, 1 }
 0x108   : > { %2440 = vmatpush.bf16.msra.mxu0 %v11103_v50  ;;  %2414 = vmatpush.bf16.msrb.mxu2 %v11085_v22  ;;  %v11100_v50 = vld [vmem:[%s14591_s3 + $0x80] sm:$0xff]  ;;  %v800_v2 = vsel %vm12388_vm11, %v792_v43, %v799_v55  ;;  %v11145_v22 = vld [vmem:[%s14591_s3 + $0x1e8] sm:$0xff]  ;;  %vm851_vm3 = vcmp.eq.s32.totalorder %v12883_v40, 1  ;;  %v11183_v14 = vld [vmem:[%s14591_s3 + $0xd8] sm:$0xff] }
 0x109   : > { %809 = vst [vmem:[#allocation2 + $0x40] sm:$0xf] %v800_v2  ;;  %v283_v43 = vld [vmem:[#allocation2 + $0x6c] sm:$0x1]  ;;  %v994_v47 = vsel %vm993_vm1, %v985_v36, 0.0 }
 0x10a   : > { %2426 = vmatpush.bf16.msrb.mxu3 %v11095_v3  ;;  %2682 = vmatpush.bf16.msra.mxu1 %v11132_v11  ;;  %v811_v3 = vsel %vm12112_vm2, %v801_v56, %v810_v52  ;;  %v11192_v11 = vld [vmem:[%s14591_s3 + $0x120] sm:$0xff]  ;;  %v12905_v56 = vstv %s7850_s22  ;;  %v284_v0 = vsel %vm12112_vm2, 0, %v283_v43  ;;  %v306_v21 = vld [vmem:[#allocation2 + $0x50] sm:$0x1]  ;;  %v309_v30 = vld [vmem:[#allocation2 + $0x5c] sm:$0x1]  ;;  %s13421_s6 = scalar_lea.vmem %s14625_s13, %s7720_s7 }
 0x10b   : > { %812 = vst [vmem:[#allocation2 + $0x44] sm:$0x1] %v811_v3  ;;  %v11184_v52 = vld [vmem:[%s14591_s3 + $0xe0] sm:$0xff]  ;;  %vm922_vm5 = vcmp.eq.s32.totalorder %v12905_v56, 1  ;;  %v307_v43 = vsel %vm12226_vm4, 0, %v306_v21 }
 0x10c   : > { %2441 = vmatpush.bf16.msra.mxu0 %v11102_v4  ;;  %2415 = vmatpush.bf16.msrb.mxu2 %v11084_v8  ;;  %v11155_v4 = vld [vmem:[%s14591_s3 + $0x238] sm:$0xff]  ;;  %285 = vst [vmem:[#allocation2 + $0x6c] sm:$0x1] %v284_v0 }
 0x10d   : > { %2683 = vmatmul.bf16.vlgmr.msra.gmra.mxu1 %v12689_v59  ;;  %308 = vst [vmem:[#allocation2 + $0x50] sm:$0x1] %v307_v43  ;;  %v11179_v0 = vld [vmem:[%s14591_s3 + $0xb8] sm:$0xff] }
 0x10e   : > { %3048 = vmatpush.bf16.msrb.mxu1 %v11195_v15  ;;  %2427 = vmatpush.bf16.msrb.mxu3 %v11094_v19  ;;  %v280_v15 = vld [vmem:[#allocation2 + $0x60] sm:$0x1] }
 0x10f   : > { %2416 = vmatmul.bf16.vlgmr.msrb.gmra.mxu2 %v12643_v27  ;;  %v2466_v27 = vshll.u32 %v12689_v59, 16  ;;  %v2830_v59 = vshll.u32 %v12829_v6, 16  ;;  %v281_v19 = vsel %vm12112_vm2, 0, %v280_v15 }
 0x110   : > { %2442 = vmatpush.bf16.msra.mxu0 %v11101_v26  ;;  %2689 = vmatpush.bf16.msra.mxu2 %v11147_v23  ;;  %v1940_v26 = vsel %vm1111_vm13, %v1935_v5, %v1939_v12  ;;  %282 = vst [vmem:[#allocation2 + $0x60] sm:$0x1] %v281_v19  ;;  %v274_v23 = vld [vmem:[#allocation2 + $0x48] sm:$0x1] }
 0x111   : > { %v2468_v8 = vrot.slane %v2466_v27, 1  ;;  %v12888_v46 = vrot.slane %v2830_v59, 1  ;;  %v312_v27 = vld [vmem:[#allocation2 + $0x68] sm:$0x1] }
 0x112   : > { %3049 = vmatpush.bf16.msrb.mxu1 %v11194_v37  ;;  %2428 = vmatpush.bf16.msrb.mxu3 %v11093_v42  ;;  %v275_v37 = vsel %vm12112_vm2, 0, %v274_v23  ;;  %v910_v42 = vadd.f32 %v12861_v20, %v909_v32  ;;  %v313_v12 = vsel %vm12226_vm4, 0, %v312_v27  ;;  %v2828_v23 = vor.u32 %v2827_v45, %v2823_v31  ;;  %v11182_v31 = vld [vmem:[%s14591_s3 + $0xd0] sm:$0xff]  ;;  %v11141_v45 = vld [vmem:[%s14591_s3 + $0x1c8] sm:$0xff] }
 0x113   : > { %276 = vst [vmem:[#allocation2 + $0x48] sm:$0x1] %v275_v37  ;;  %v2469_v2 = vor.u32 %v2468_v8, %v2464_v13  ;;  %v840_v13 = vpop.f32.mrf.mxu2  ;;  %v11151_v8 = vld [vmem:[%s14591_s3 + $0x218] sm:$0xff]  ;;  %v911_v37 = vpop.f32.mrf.mxu3  ;;  %v11181_v27 = vld [vmem:[%s14591_s3 + $0xc8] sm:$0xff] }
 0x114   : > { %2443 = vmatpush.bf16.msra.mxu0 %v11100_v50  ;;  %2690 = vmatpush.bf16.msra.mxu2 %v11146_v54  ;;  %v843_v50 = vmax.f32 %v839_v38, 0.0  ;;  %v996_v54 = vpack.c.bf16 %v994_v47, %v994_v47  ;;  %v914_v55 = vmax.f32 %v910_v42, 0.0  ;;  %314 = vst [vmem:[#allocation2 + $0x68] sm:$0x1] %v313_v12  ;;  %v841_v28 = vadd.f32 %v12861_v20, %v840_v13  ;;  %v11188_v47 = vld [vmem:[%s14591_s3 + $0x100] sm:$0xff] }
 0x115   : > { %v315_v12 = vld [vmem:[#allocation2 + $0x74] sm:$0x1]  ;;  %v11140_v13 = vld [vmem:[%s14591_s3 + $0x1c0] sm:$0xff] }
 0x116   : > { %3050 = vmatpush.bf16.msrb.mxu1 %v11193_v61  ;;  %2429 = vmatpush.bf16.msrb.mxu3 %v11092_v1  ;;  %v12910_v61 = vld [vmem:[#allocation2 + $0x24] sm:$0xe]  ;;  %v852_v62 = vsel %vm851_vm3, %v843_v50, 0.0  ;;  %v1052_v1 = vadd.f32 %v12861_v20, %v1051_v44  ;;  %v999_v3 = vshrl.u32 %v996_v54, 16  ;;  %v923_v9 = vsel %vm922_vm5, %v914_v55, 0.0  ;;  %v1053_v44 = vpop.f32.mrf.mxu1 }
 0x117   : > { %2444 = vmatmul.bf16.vlgmr.msra.gmra.mxu0 %v1947_v10  ;;  %v854_v5 = vpack.c.bf16 %v852_v62, %v852_v62  ;;  %v1019_v59 = vld [vmem:[#allocation2 + $0x60] sm:$0xf]  ;;  %v12967_v50 = vsel %vm1111_vm13, %v2469_v2, %v12874_v35  ;;  %v844_v62 = vmax.f32 %v841_v28, 0.0  ;;  %v912_v35 = vadd.f32 %v12861_v20, %v911_v37 }
 0x118   : > { %3034 = vmatpush.bf16.msrb.mxu0 %v11187_v51  ;;  %2691 = vmatpush.bf16.msra.mxu2 %v11145_v22  ;;  %v11153_v51 = vld [vmem:[%s14591_s3 + $0x228] sm:$0xff]  ;;  %v11152_v22 = vld [vmem:[%s14591_s3 + $0x220] sm:$0xff]  ;;  %v1056_v10 = vmax.f32 %v1052_v1, 0.0  ;;  %v12933_v15 = vrot.slane %v999_v3, 7  ;;  %v11150_v1 = vld [vmem:[%s14591_s3 + $0x210] sm:$0xff]  ;;  %v316_v40 = vsel %vm12226_vm4, 0, %v315_v12 }
 0x119   : > { %2430 = vmatmul.bf16.vlgmr.msrb.gmra.mxu3 %v1940_v26  ;;  %v857_v33 = vshrl.u32 %v854_v5, 16  ;;  %v11189_v26 = vld [vmem:[%s14591_s3 + $0x108] sm:$0xff]  ;;  %v915_v21 = vmax.f32 %v912_v35, 0.0  ;;  %317 = vst [vmem:[#allocation2 + $0x74] sm:$0x1] %v316_v40 }
 0x11a   : > { %2703 = vmatpush.bf16.msra.mxu3 %v11155_v4  ;;  %3051 = vmatpush.bf16.msrb.mxu1 %v11192_v11  ;;  %v1002_v4 = vshll.u32 %v996_v54, 16  ;;  %v12926_v11 = vstv %s7874_s11  ;;  %v877_v38 = vld [vmem:[#allocation2 + $0x48] sm:$0xf]  ;;  %v948_v54 = vld [vmem:[#allocation2 + $0x54] sm:$0xf]  ;;  %v1005_v28 = vrot.slane %v12933_v15, 4 }
 0x11b   : > { %vm1064_vm6 = vcmp.eq.s32.totalorder %v12926_v11, 1  ;;  %v1023_v37 = vld [vmem:[#allocation2 + $0x68] sm:$0x1]  ;;  %v11202_v11 = vld [vmem:[%s14591_s3 + $0x170] sm:$0xff]  ;;  %v2730_v40 = vld [vmem:[#allocation2 + $0x20] sm:$0x1] }
 0x11c   : > { %3035 = vmatpush.bf16.msrb.mxu0 %v11186_v7  ;;  %2692 = vmatpush.bf16.msra.mxu2 %v11144_v18  ;;  %v982_v7 = vpop.f32.mrf.mxu0  ;;  %v11142_v18 = vld [vmem:[%s14591_s3 + $0x1d0] sm:$0xff]  ;;  %v1004_v32 = vor.u32 %v1002_v4, %v12933_v15  ;;  %v1065_v41 = vsel %vm1064_vm6, %v1056_v10, 0.0  ;;  %v11149_v15 = vld [vmem:[%s14591_s3 + $0x208] sm:$0xff] }
 0x11d   : > { %v983_v19 = vadd.f32 %v12861_v20, %v982_v7  ;;  %v1067_v55 = vpack.c.bf16 %v1065_v41, %v1065_v41  ;;  %v2833_v7 = vsel %vm1111_vm13, %v2828_v23, %v12888_v46  ;;  %v853_v46 = vsel %vm851_vm3, %v844_v62, 0.0  ;;  %v11178_v23 = vld [vmem:[%s14591_s3 + $0xb0] sm:$0xff] }
 0x11e   : > { %2704 = vmatpush.bf16.msra.mxu3 %v11154_v16  ;;  %3052 = vmatpush.bf16.msrb.mxu1 %v11191_v34  ;;  %v860_v16 = vshll.u32 %v854_v5, 16  ;;  %v12950_v34 = vrot.slane %v857_v33, 7  ;;  %v1054_v5 = vadd.f32 %v12861_v20, %v1053_v44  ;;  %v11171_v44 = vld [vmem:[%s14591_s3 + $0x78] sm:$0xff] }
 0x11f   : > { %v986_v42 = vmax.f32 %v983_v19, 0.0  ;;  %v1073_v10 = vshll.u32 %v1067_v55, 16  ;;  %v310_v19 = vsel %vm12226_vm4, 0, %v309_v30  ;;  %v11163_v30 = vld [vmem:[%s14591_s3 + $0x38] sm:$0xff] }
 0x120   : > { %3036 = vmatpush.bf16.msrb.mxu0 %v11185_v17  ;;  %v925_v17 = vpack.c.bf16 %v923_v9, %v923_v9  ;;  %2693 = vmatpush.bf16.msra.mxu2 %v11143_v53  ;;  %v1070_v9 = vshrl.u32 %v1067_v55, 16  ;;  %311 = vst [vmem:[#allocation2 + $0x5c] sm:$0x1] %v310_v19  ;;  %v11148_v55 = vld [vmem:[%s14591_s3 + $0x200] sm:$0xff] }
 0x122   : > { %2705 = vmatpush.bf16.msra.mxu3 %v11153_v51  ;;  %3053 = vmatpush.bf16.msrb.mxu1 %v11190_v58  ;;  %v928_v36 = vshrl.u32 %v925_v17, 16  ;;  %v931_v39 = vshll.u32 %v925_v17, 16  ;;  %v1020_v51 = vsel %vm12372_vm8, %v1004_v32, %v1019_v59  ;;  %v995_v58 = vsel %vm993_vm1, %v986_v42, 0.0  ;;  %v11203_v17 = vld [vmem:[%s14591_s3 + $0x178] sm:$0xff] }
 0x123   : > { %1021 = vst [vmem:[#allocation2 + $0x60] sm:$0xf] %v1020_v51  ;;  %v997_v4 = vpack.c.bf16 %v995_v58, %v995_v58  ;;  %v855_v59 = vpack.c.bf16 %v853_v46, %v853_v46  ;;  %v863_v32 = vrot.slane %v12950_v34, 4  ;;  %v924_v42 = vsel %vm922_vm5, %v915_v21, 0.0  ;;  %v11177_v51 = vld [vmem:[%s14591_s3 + $0xa8] sm:$0xff]  ;;  %v11175_v21 = vld [vmem:[%s14591_s3 + $0x98] sm:$0xff] }
 0x124   : > { %3037 = vmatpush.bf16.msrb.mxu0 %v11184_v52  ;;  %v862_v52 = vor.u32 %v860_v16, %v12950_v34  ;;  %v12972_v53 = vrot.slane %v928_v36, 7  ;;  %2694 = vmatpush.bf16.msra.mxu2 %v11142_v18  ;;  %v13004_v18 = vrot.slane %v1070_v9, 7  ;;  %v11180_v34 = vld [vmem:[%s14591_s3 + $0xc0] sm:$0xff]  ;;  %v926_v56 = vpack.c.bf16 %v924_v42, %v924_v42  ;;  %v13116_v42 = vld [vmem:[#allocation2 + $0x18] sm:$0xff]  }
 0x125   : > { %v1007_v33 = vshrl.u32 %v997_v4, 16  ;;  %v1010_v16 = vshll.u32 %v997_v4, 16 }
 0x126   : > { %2706 = vmatpush.bf16.msra.mxu3 %v11152_v22  ;;  %3054 = vmatpush.bf16.msrb.mxu1 %v11189_v26  ;;  %v878_v2 = vsel %vm12372_vm8, %v862_v52, %v877_v38  ;;  %v933_v3 = vor.u32 %v931_v39, %v12972_v53  ;;  %v11771_v22 = vor.u32 %v12910_v61, %v12691_v29  ;;  %v865_v38 = vshrl.u32 %v855_v59, 16 }
 0x127   : > { %879 = vst [vmem:[#allocation2 + $0x48] sm:$0xf] %v878_v2  ;;  %v1009_v26 = vrot.slane %v1007_v33, 7  ;;  %v1075_v36 = vor.u32 %v1073_v10, %v13004_v18  ;;  %v868_v39 = vshll.u32 %v855_v59, 16  ;;  %v936_v35 = vshrl.u32 %v926_v56, 16  ;;  %v11176_v10 = vld [vmem:[%s14591_s3 + $0xa0] sm:$0xff] }
 0x128   : > { %3038 = vmatpush.bf16.msrb.mxu0 %v11183_v14  ;;  %v949_v20 = vsel %vm12372_vm8, %v933_v3, %v948_v54  ;;  %v1090_v14 = vld [vmem:[#allocation2 + $0x6c] sm:$0xf]  ;;  %2695 = vmatpush.bf16.msra.mxu2 %v11141_v45  ;;  %v867_v45 = vrot.slane %v865_v38, 7  ;;  %v881_v54 = vld [vmem:[#allocation2 + $0x50] sm:$0x1]  ;;  %v2480_v2 = vrot.slane %v12811_v63, 1 }
 0x129   : > { %950 = vst [vmem:[#allocation2 + $0x54] sm:$0xf] %v949_v20  ;;  %v1012_v57 = vor.u32 %v1010_v16, %v1009_v26  ;;  %v1014_v41 = vrot.slane %v1009_v26, 4  ;;  %v934_v29 = vrot.slane %v12972_v53, 4  ;;  %v11162_v16 = vld [vmem:[%s14591_s3 + $0x30] sm:$0xff] }
 0x12a   : > { %2707 = vmatpush.bf16.msra.mxu3 %v11151_v8  ;;  %3055 = vmatpush.bf16.msrb.mxu1 %v11188_v47  ;;  %v1057_v8 = vmax.f32 %v1054_v5, 0.0  ;;  %v870_v58 = vor.u32 %v868_v39, %v867_v45  ;;  %v872_v62 = vrot.slane %v867_v45, 4  ;;  %v11170_v5 = vld [vmem:[%s14591_s3 + $0x70] sm:$0xff]  ;;  %v11773_v38 = vld [vmem:[#allocation2 + $0x24] sm:$0xe]  ;;  %v11173_v39 = vld [vmem:[%s14591_s3 + $0x88] sm:$0xff] }
 0x12b   : > { %v1013_v52 = vsel %vm12388_vm11, %v1005_v28, %v1012_v57  ;;  %v1024_v60 = vsel %vm12112_vm2, %v1014_v41, %v1023_v37  ;;  %v11161_v28 = vld [vmem:[%s14591_s3 + $0x28] sm:$0xff]  ;;  %v11174_v26 = vld [vmem:[%s14591_s3 + $0x90] sm:$0xff]  ;;  %v11159_v57 = vld [vmem:[%s14591_s3 + $0x18] sm:$0xff] }
 0x12c   : > { %3039 = vmatpush.bf16.msrb.mxu0 %v11182_v31  ;;  %v1066_v43 = vsel %vm1064_vm6, %v1057_v8, 0.0  ;;  %2696 = vmatpush.bf16.msra.mxu2 %v11140_v13  ;;  %v1091_v31 = vsel %vm12372_vm8, %v1075_v36, %v1090_v14  ;;  %1022 = vst [vmem:[#allocation2 + $0x64] sm:$0xf] %v1013_v52  ;;  %v871_v63 = vsel %vm12388_vm11, %v863_v32, %v870_v58  ;;  %v1094_v13 = vld [vmem:[#allocation2 + $0x74] sm:$0x1]  ;;  %v11160_v8 = vld [vmem:[%s14591_s3 + $0x20] sm:$0xff] }
 0x12d   : > { %v1068_v47 = vpack.c.bf16 %v1066_v43, %v1066_v43  ;;  %3056 = vmatmul.bf16.vlgmr.msrb.gmra.mxu1 %v2833_v7  ;;  %1092 = vst [vmem:[#allocation2 + $0x6c] sm:$0xf] %v1091_v31  ;;  %v882_v61 = vsel %vm12112_vm2, %v872_v62, %v881_v54  ;;  %v1076_v7 = vrot.slane %v13004_v18, 4  ;;  %v11200_v18 = vld [vmem:[%s14591_s3 + $0x160] sm:$0xff]  ;;  %v11687_v32 = vld [vmem:[#allocation2 + $0x18] sm:$0xe]  ;;  %v11774_v52 = vor.u32 %v11773_v38, %v12779_v49 }
 0x12e   : > { %3248 = vmatpush.bf16.msra.mxu1 %v11179_v0  ;;  %2708 = vmatpush.bf16.msra.mxu3 %v11150_v1  ;;  %v939_v0 = vshll.u32 %v926_v56, 16  ;;  %v2479_v1 = vrot.slane %v11771_v22, 1  ;;  %1025 = vst [vmem:[#allocation2 + $0x68] sm:$0x1] %v1024_v60  ;;  %v952_v22 = vld [vmem:[#allocation2 + $0x5c] sm:$0x1] }
 0x12f   : > { %2697 = vmatmul.bf16.vlgmr.msra.gmra.mxu2 %v12967_v50  ;;  %v1078_v3 = vshrl.u32 %v1068_v47, 16  ;;  %v1081_v4 = vshll.u32 %v1068_v47, 16  ;;  %v11201_v50 = vld [vmem:[%s14591_s3 + $0x168] sm:$0xff]  ;;  %880 = vst [vmem:[#allocation2 + $0x4c] sm:$0xf] %v871_v63  ;;  %v11167_v36 = vld [vmem:[%s14591_s3 + $0x58] sm:$0xff] }
 0x130   : > { %3040 = vmatpush.bf16.msrb.mxu0 %v11181_v27  ;;  %3062 = vmatpush.bf16.msrb.mxu2 %v11203_v17  ;;  %v938_v27 = vrot.slane %v936_v35, 7  ;;  %883 = vst [vmem:[#allocation2 + $0x50] sm:$0x1] %v882_v61  ;;  %v2481_v20 = vsel %vm1128_vm12, %v2479_v1, %v2480_v2  ;;  %v11198_v37 = vld [vmem:[%s14591_s3 + $0x150] sm:$0xff]  ;;  %v11259_v45 = vld [vmem:[%s14591_s3 + $0xf8] sm:$0xff]  ;;  %v2744_v56 = vshll.u32 %v13116_v42, 16 }
 0x131   : > { %v1080_v9 = vrot.slane %v1078_v3, 7  ;;  %v11166_v43 = vld [vmem:[%s14591_s3 + $0x50] sm:$0xff]  ;;  %v11165_v60 = vld [vmem:[%s14591_s3 + $0x48] sm:$0xff]  ;;  %v11196_v54 = vld [vmem:[%s14591_s3 + $0x140] sm:$0xff]  ;;  %v2742_v58 = vshrl.u32 %v13116_v42, 16  ;;  %v2838_v1 = vrot.slane %v11774_v52, 1 }
 0x132   : > { %3249 = vmatpush.bf16.msra.mxu1 %v11178_v23  ;;  %2709 = vmatpush.bf16.msra.mxu3 %v11149_v15  ;;  %v941_v53 = vor.u32 %v939_v0, %v938_v27  ;;  %v943_v12 = vrot.slane %v938_v27, 4  ;;  %v11686_v23 = vld [vmem:[#allocation2 + $0x18] sm:$0xf0]  ;;  %v2739_v15 = vunpack.c.l.b16 %v2730_v40  ;;  %v11158_v47 = vld [vmem:[%s14591_s3 + $0x10] sm:$0xff]  ;;  %v2746_v62 = vrot.slane %v2744_v56, 1  ;;  %v11157_v3 = vld [vmem:[%s14591_s3 + $0x8] sm:$0xff] }
 0x133   : > { %v1083_v14 = vor.u32 %v1081_v4, %v1080_v9  ;;  %v1085_v33 = vrot.slane %v1080_v9, 4  ;;  %v11688_v41 = vor.u32 %v11687_v32, %v11686_v23  ;;  %v11258_v49 = vld [vmem:[%s14591_s3 + $0xf0] sm:$0xff]  ;;  %v2839_v2 = vrot.slane %v12829_v6, 1  ;;  %v11164_v4 = vld [vmem:[%s14591_s3 + $0x40] sm:$0xff]  ;;  %v11219_v27 = vld [vmem:[%s14591_s3 + $0x1f8] sm:$0xff] }
 0x134   : > { %3041 = vmatpush.bf16.msrb.mxu0 %v11180_v34  ;;  %3063 = vmatpush.bf16.msrb.mxu2 %v11202_v11  ;;  %v942_v46 = vsel %vm12388_vm11, %v934_v29, %v941_v53  ;;  %v953_v17 = vsel %vm12112_vm2, %v943_v12, %v952_v22  ;;  %v11197_v34 = vld [vmem:[%s14591_s3 + $0x148] sm:$0xff]  ;;  %v2740_v31 = vpack.c.b16 %v2739_v15, %v2739_v15  ;;  %v11210_v6 = vld [vmem:[%s14591_s3 + $0x1b0] sm:$0xff]  ;;  %v11156_v61 = vld [vmem:[%s14591_s3] sm:$0xff] }
 0x135   : > { %951 = vst [vmem:[#allocation2 + $0x58] sm:$0xf] %v942_v46  ;;  %v1084_v59 = vsel %vm12388_vm11, %v1076_v7, %v1083_v14  ;;  %v1095_v19 = vsel %vm12112_vm2, %v1085_v33, %v1094_v13  ;;  %v2757_v11 = vrot.slane %v11688_v41, 1  ;;  %v2840_v63 = vsel %vm1128_vm12, %v2838_v1, %v2839_v2  ;;  %v11226_v7 = vld [vmem:[%s14591_s3 + $0x230] sm:$0xff]  ;;  %v11209_v9 = vld [vmem:[%s14591_s3 + $0x1a8] sm:$0xff]  ;;  %v11208_v13 = vld [vmem:[%s14591_s3 + $0x1a0] sm:$0xff] }
 0x136   : > { %3250 = vmatpush.bf16.msra.mxu1 %v11177_v51  ;;  %2710 = vmatpush.bf16.msra.mxu3 %v11148_v55  ;;  %954 = vst [vmem:[#allocation2 + $0x5c] sm:$0x1] %v953_v17  ;;  %v2758_v51 = vrot.slane %v2740_v31, 1  ;;  %v11211_v55 = vld [vmem:[%s14591_s3 + $0x1b8] sm:$0xff]  ;;  %v2749_v35 = vshll.u32 %v2740_v31, 16  ;;  %v11218_v53 = vld [vmem:[%s14591_s3 + $0x1f0] sm:$0xff] }
 0x137   : > { %3042 = vmatmul.bf16.vlgmr.msrb.gmra.mxu0 %v12777_v48  ;;  %v11169_v48 = vld [vmem:[%s14591_s3 + $0x68] sm:$0xff]  ;;  %1093 = vst [vmem:[#allocation2 + $0x70] sm:$0xf] %v1084_v59  ;;  %v11224_v33 = vld [vmem:[%s14591_s3 + $0x220] sm:$0xff]  ;;  %v11254_v46 = vld [vmem:[%s14591_s3 + $0xd0] sm:$0xff] }
 0x138   : > { %3234 = vmatpush.bf16.msra.mxu0 %v11171_v44  ;;  %3064 = vmatpush.bf16.msrb.mxu2 %v11201_v50  ;;  %1096 = vst [vmem:[#allocation2 + $0x74] sm:$0x1] %v1095_v19  ;;  %v11172_v44 = vld [vmem:[%s14591_s3 + $0x80] sm:$0xff]  ;;  %v2759_v0 = vsel %vm1128_vm12, %v2757_v11, %v2758_v51  ;;  %v2747_v50 = vor.u32 %v2746_v62, %v2742_v58  ;;  %v2751_v29 = vrot.slane %v2749_v35, 1  ;;  %v11225_v12 = vld [vmem:[%s14591_s3 + $0x228] sm:$0xff]  ;;  %v11206_v59 = vld [vmem:[%s14591_s3 + $0x190] sm:$0xff] }
 0x139   : > { %2711 = vmatmul.bf16.vlgmr.msra.gmra.mxu3 %v2481_v20  ;;  %v11255_v20 = vld [vmem:[%s14591_s3 + $0xd8] sm:$0xff]  ;;  %v11217_v14 = vld [vmem:[%s14591_s3 + $0x1e8] sm:$0xff]  ;;  %v11689_v15 = vld [vmem:[#allocation2 + $0x30] sm:$0xf0] }
 0x13a   : > { %3220 = vmatpush.bf16.msrb.mxu3 %v11163_v30  ;;  %3251 = vmatpush.bf16.msra.mxu1 %v11176_v10  ;;  %v11227_v30 = vld [vmem:[%s14591_s3 + $0x238] sm:$0xff]  ;;  %v2752_v22 = vsel %vm1111_vm13, %v2747_v50, %v2751_v29  ;;  %v11256_v10 = vld [vmem:[%s14591_s3 + $0xe0] sm:$0xff]  ;;  %v11253_v19 = vld [vmem:[%s14591_s3 + $0xc8] sm:$0xff] }
 0x13b   : > { %v11205_v40 = vld [vmem:[%s14591_s3 + $0x188] sm:$0xff]  ;;  %v11235_v51 = vld [vmem:[%s14591_s3 + $0x38] sm:$0xff] }
 0x13c   : > { %3235 = vmatpush.bf16.msra.mxu0 %v11170_v5  ;;  %3065 = vmatpush.bf16.msrb.mxu2 %v11200_v18  ;;  %v11257_v5 = vld [vmem:[%s14591_s3 + $0xe8] sm:$0xff]  ;;  %v11223_v18 = vld [vmem:[%s14591_s3 + $0x218] sm:$0xff] }
 0x13d   : > { %v11221_v41 = vld [vmem:[%s14591_s3 + $0x208] sm:$0xff] }
 0x13e   : > { %3221 = vmatpush.bf16.msrb.mxu3 %v11162_v16  ;;  %3252 = vmatpush.bf16.msra.mxu1 %v11175_v21  ;;  %v11207_v16 = vld [vmem:[%s14591_s3 + $0x198] sm:$0xff]  ;;  %v11213_v56 = vld [vmem:[%s14591_s3 + $0x1c8] sm:$0xff] }
 0x13f   : > { %v11215_v21 = vld [vmem:[%s14591_s3 + $0x1d8] sm:$0xff]  ;;  %v11265_v29 = vld [vmem:[%s14591_s3 + $0x128] sm:$0xff] }
 0x140   : > { %3236 = vmatpush.bf16.msra.mxu0 %v11169_v48  ;;  %3066 = vmatpush.bf16.msrb.mxu2 %v11199_v24  ;;  %v11216_v48 = vld [vmem:[%s14591_s3 + $0x1e0] sm:$0xff]  ;;  %v11222_v24 = vld [vmem:[%s14591_s3 + $0x210] sm:$0xff] }
 0x142   : > { %3222 = vmatpush.bf16.msrb.mxu3 %v11161_v28  ;;  %3253 = vmatpush.bf16.msra.mxu1 %v11174_v26  ;;  %v3264_v28 = vld [vmem:[#allocation2 + $0x38] sm:$0x1] }
 0x143   : > { %v3273_v38 = vunpack.c.l.b16 %v3264_v28  ;;  %v11272_v28 = vld [vmem:[%s14591_s3 + $0x160] sm:$0xff] }
 0x144   : > { %3237 = vmatpush.bf16.msra.mxu0 %v11168_v25  ;;  %3067 = vmatpush.bf16.msrb.mxu2 %v11198_v37  ;;  %v11624_v37 = vld [vmem:[#allocation2 + $0x30] sm:$0xff]  }
 0x145   : > { %v3274_v31 = vpack.c.b16 %v3273_v38, %v3273_v38  ;;  %v3635_v11 = vshrl.u32 %v11624_v37, 16 }
 0x146   : > { %3223 = vmatpush.bf16.msrb.mxu3 %v11160_v8  ;;  %3254 = vmatpush.bf16.msra.mxu1 %v11173_v39  ;;  %v11252_v8 = vld [vmem:[%s14591_s3 + $0xc0] sm:$0xff]  ;;  %v11214_v39 = vld [vmem:[%s14591_s3 + $0x1d0] sm:$0xff] }
 0x147   : > { %v3292_v62 = vrot.slane %v3274_v31, 1  ;;  %v3283_v35 = vshll.u32 %v3274_v31, 16 }
 0x148   : > { %3238 = vmatpush.bf16.msra.mxu0 %v11167_v36  ;;  %3068 = vmatpush.bf16.msrb.mxu2 %v11197_v34  ;;  %v11243_v36 = vld [vmem:[%s14591_s3 + $0x78] sm:$0xff] }
 0x149   : > { %v11267_v34 = vld [vmem:[%s14591_s3 + $0x138] sm:$0xff] }
 0x14a   : > { %3224 = vmatpush.bf16.msrb.mxu3 %v11159_v57  ;;  %3255 = vmatpush.bf16.msra.mxu1 %v11172_v44  ;;  %v13229_v26 = vpop.f32.mrf.mxu1  ;;  %v11690_v57 = vld [vmem:[#allocation2 + $0x30] sm:$0xe] }
 0x14b   : > { %v11242_v44 = vld [vmem:[%s14591_s3 + $0x70] sm:$0xff] }
 0x14c   : > { %3239 = vmatpush.bf16.msra.mxu0 %v11166_v43  ;;  %3069 = vmatpush.bf16.msrb.mxu2 %v11196_v54  ;;  %v3637_v43 = vshll.u32 %v11624_v37, 16 }
 0x14d   : > { %3256 = vmatmul.bf16.vlgmr.msra.gmra.mxu1 %v2759_v0  ;;  %v11212_v0 = vld [vmem:[%s14591_s3 + $0x1c0] sm:$0xff] }
 0x14e   : > { %3846 = vmatpush.bf16.msrb.mxu1 %v11259_v45  ;;  %3225 = vmatpush.bf16.msrb.mxu3 %v11158_v47  ;;  %v11691_v45 = vor.u32 %v11690_v57, %v11689_v15  ;;  %v11220_v47 = vld [vmem:[%s14591_s3 + $0x200] sm:$0xff]  ;;  %v11271_v15 = vld [vmem:[%s14591_s3 + $0x158] sm:$0xff] }
 0x14f   : > { %3070 = vmatmul.bf16.vlgmr.msrb.gmra.mxu2 %v2840_v63  ;;  %v11240_v63 = vld [vmem:[%s14591_s3 + $0x60] sm:$0xff] }
 0x150   : > { %3240 = vmatpush.bf16.msra.mxu0 %v11165_v60  ;;  %3487 = vmatpush.bf16.msra.mxu2 %v11211_v55  ;;  %v3639_v60 = vrot.slane %v3637_v43, 1  ;;  %v11266_v55 = vld [vmem:[%s14591_s3 + $0x130] sm:$0xff]  ;;  %v3291_v58 = vrot.slane %v11691_v45, 1  ;;  %v11261_v45 = vld [vmem:[%s14591_s3 + $0x108] sm:$0xff] }
 0x152   : > { %3847 = vmatpush.bf16.msrb.mxu1 %v11258_v49  ;;  %3226 = vmatpush.bf16.msrb.mxu3 %v11157_v3  ;;  %v13207_v17 = vpop.f32.mrf.mxu2  ;;  %v11241_v49 = vld [vmem:[%s14591_s3 + $0x68] sm:$0xff]  ;;  %v13281_v1 = vpop.f32.mrf.mxu1  ;;  %v11275_v3 = vld [vmem:[%s14591_s3 + $0x178] sm:$0xff]  ;;  %v3293_v50 = vsel %vm1128_vm12, %v3291_v58, %v3292_v62 }
 0x154   : > { %3241 = vmatpush.bf16.msra.mxu0 %v11164_v4  ;;  %3488 = vmatpush.bf16.msra.mxu2 %v11210_v6  ;;  %v13224_v25 = vpop.f32.mrf.mxu0  ;;  %v11234_v4 = vld [vmem:[%s14591_s3 + $0x30] sm:$0xff]  ;;  %v13291_v6 = vld [vmem:[#allocation2 + $0x24] sm:$0xf0] }
 0x156   : > { %3848 = vmatpush.bf16.msrb.mxu1 %v11257_v5  ;;  %3227 = vmatpush.bf16.msrb.mxu3 %v11156_v61  ;;  %v13293_v5 = vor.u32 %v3639_v60, %v3635_v11  ;;  %v3285_v61 = vrot.slane %v3283_v35, 1 }
 0x157   : > { %3242 = vmatmul.bf16.vlgmr.msra.gmra.mxu0 %v2752_v22  ;;  %v3542_v22 = vld [vmem:[#allocation2 + $0x2c] sm:$0x1] }
 0x158   : > { %3515 = vmatpush.bf16.msrb.mxu0 %v11227_v30  ;;  %3489 = vmatpush.bf16.msra.mxu2 %v11209_v9  ;;  %v13289_v30 = vld [vmem:[#allocation2 + $0x24] sm:$0xff]   ;;  %v3286_v9 = vsel %vm1111_vm13, %v13293_v5, %v3285_v61  ;;  %v11298_v61 = vld [vmem:[%s14591_s3 + $0x230] sm:$0xff] }
 0x159   : > { %3228 = vmatmul.bf16.vlgmr.msrb.gmra.mxu3 %v13116_v42  ;;  %v11204_v42 = vld [vmem:[%s14591_s3 + $0x180] sm:$0xff]  ;;  %v3554_v57 = vshrl.u32 %v13289_v30, 16 }
 0x15a   : > { %3501 = vmatpush.bf16.msra.mxu3 %v11219_v27  ;;  %3849 = vmatpush.bf16.msrb.mxu1 %v11256_v10  ;;  %v13239_v32 = vpop.f32.mrf.mxu2  ;;  %v11274_v27 = vld [vmem:[%s14591_s3 + $0x170] sm:$0xff] }
 0x15c   : > { %3516 = vmatpush.bf16.msrb.mxu0 %v11226_v7  ;;  %3490 = vmatpush.bf16.msra.mxu2 %v11208_v13  ;;  %v13237_v23 = vpop.f32.mrf.mxu3  ;;  %v13268_v52 = vpop.f32.mrf.mxu0  ;;  %v11233_v7 = vld [vmem:[%s14591_s3 + $0x28] sm:$0xff] }
 0x15d   : > { %v1431_v13 = vadd.f32 %v13237_v23, %v13207_v17  ;;  %v11263_v17 = vld [vmem:[%s14591_s3 + $0x118] sm:$0xff] }
 0x15e   : > { %3502 = vmatpush.bf16.msra.mxu3 %v11218_v53  ;;  %3850 = vmatpush.bf16.msrb.mxu1 %v11255_v20  ;;  %v11264_v53 = vld [vmem:[%s14591_s3 + $0x120] sm:$0xff]  ;;  %v11231_v23 = vld [vmem:[%s14591_s3 + $0x18] sm:$0xff] }
 0x160   : > { %3517 = vmatpush.bf16.msrb.mxu0 %v11225_v12  ;;  %3491 = vmatpush.bf16.msra.mxu2 %v11207_v16  ;;  %v11239_v12 = vld [vmem:[%s14591_s3 + $0x58] sm:$0xff]  ;;  %v11232_v16 = vld [vmem:[%s14591_s3 + $0x20] sm:$0xff] }
 0x162   : > { %3503 = vmatpush.bf16.msra.mxu3 %v11217_v14  ;;  %3851 = vmatpush.bf16.msrb.mxu1 %v11254_v46  ;;  %v13270_v54 = vpop.f32.mrf.mxu2  ;;  %v11273_v14 = vld [vmem:[%s14591_s3 + $0x168] sm:$0xff]  ;;  %v3623_v46 = vld [vmem:[#allocation2 + $0x38] sm:$0x1] }
 0x164   : > { %3518 = vmatpush.bf16.msrb.mxu0 %v11224_v33  ;;  %3492 = vmatpush.bf16.msra.mxu2 %v11206_v59  ;;  %v1432_v2 = vpop.f32.mrf.mxu3  ;;  %v1870_v20 = vpop.f32.mrf.mxu0  ;;  %v3551_v33 = vunpack.c.l.b16 %v3542_v22  ;;  %v11238_v59 = vld [vmem:[%s14591_s3 + $0x50] sm:$0xff]  ;;  %v11269_v22 = vld [vmem:[%s14591_s3 + $0x148] sm:$0xff] }
 0x166   : > { %3504 = vmatpush.bf16.msra.mxu3 %v11216_v48  ;;  %3852 = vmatpush.bf16.msrb.mxu1 %v11253_v19  ;;  %v1884_v48 = vpop.f32.mrf.mxu1  ;;  %v1445_v19 = vadd.f32 %v13224_v25, %v1431_v13  ;;  %v11228_v13 = vld [vmem:[%s14591_s3] sm:$0xff] }
 0x168   : > { %3519 = vmatpush.bf16.msrb.mxu0 %v11223_v18  ;;  %3493 = vmatpush.bf16.msra.mxu2 %v11205_v40  ;;  %v3556_v40 = vshll.u32 %v13289_v30, 16 }
 0x16a   : > { %3505 = vmatpush.bf16.msra.mxu3 %v11215_v21  ;;  %3853 = vmatpush.bf16.msrb.mxu1 %v11252_v8  ;;  %v1618_v10 = vpop.f32.mrf.mxu2  ;;  %v1433_v21 = vadd.f32 %v1432_v2, %v13239_v32  ;;  %v3632_v8 = vunpack.c.l.b16 %v3623_v46  ;;  %v11262_v32 = vld [vmem:[%s14591_s3 + $0x110] sm:$0xff]  ;;  %v11229_v2 = vld [vmem:[%s14591_s3 + $0x8] sm:$0xff] }
 0x16c   : > { %3520 = vmatpush.bf16.msrb.mxu0 %v11222_v24  ;;  %3494 = vmatpush.bf16.msra.mxu2 %v11204_v42  ;;  %v1630_v18 = vpop.f32.mrf.mxu3  ;;  %v13335_v24 = vpack.c.b16 %v3551_v33, %v3551_v33  ;;  %v1447_v38 = vadd.f32 %v13268_v52, %v1433_v21  ;;  %v13354_v43 = vpack.c.b16 %v3632_v8, %v3632_v8  ;;  %v1872_v31 = vpop.f32.mrf.mxu0  ;;  %v11250_v33 = vld [vmem:[%s14591_s3 + $0xb0] sm:$0xff] }
 0x16d   : > { %3854 = vmatmul.bf16.vlgmr.msrb.gmra.mxu1 %v11624_v37 }
 0x16e   : > { %4046 = vmatpush.bf16.msra.mxu1 %v11243_v36  ;;  %3506 = vmatpush.bf16.msra.mxu3 %v11214_v39  ;;  %v11237_v36 = vld [vmem:[%s14591_s3 + $0x48] sm:$0xff]  ;;  %v1603_v39 = vadd.f32 %v13229_v26, %v1445_v19  ;;  %v3561_v42 = vshll.u32 %v13335_v24, 16  ;;  %v11230_v26 = vld [vmem:[%s14591_s3 + $0x10] sm:$0xff]  ;;  %v1605_v11 = vadd.f32 %v13281_v1, %v1447_v38  ;;  %v1886_v52 = vpop.f32.mrf.mxu1  ;;  %v3642_v58 = vshll.u32 %v13354_v43, 16  ;;  %v13377_v1 = vld [vmem:[%s14592_s4] ss:$0 sm:$0xff] }
 0x16f   : > { %3495 = vmatmul.bf16.vlgmr.msra.gmra.mxu2 %v11624_v37  ;;  %v1885_v37 = vadd.f32 %v1884_v48, %v1870_v20  ;;  %v1887_v62 = vadd.f32 %v1886_v52, %v1872_v31  ;;  %v11291_v20 = vld [vmem:[%s14591_s3 + $0x1f8] sm:$0xff]  ;;  %v11281_v38 = vld [vmem:[%s14591_s3 + $0x1a8] sm:$0xff] }
 0x170   : > { %3521 = vmatpush.bf16.msrb.mxu0 %v11221_v41  ;;  %3860 = vmatpush.bf16.msrb.mxu2 %v11267_v34  ;;  %v3558_v41 = vrot.slane %v3556_v40, 1  ;;  %v1617_v34 = vadd.f32 %v13270_v54, %v1603_v39  ;;  %v11270_v54 = vld [vmem:[%s14591_s3 + $0x150] sm:$0xff]  ;;  %v1619_v35 = vadd.f32 %v1618_v10, %v1605_v11  ;;  %v11283_v19 = vld [vmem:[%s14591_s3 + $0x1b8] sm:$0xff]  ;;  %v11296_v40 = vld [vmem:[%s14591_s3 + $0x220] sm:$0xff] }
 0x171   : > { %v11694_v10 = vld [vmem:[#allocation2 + $0x30] sm:$0xe]  ;;  %v13451_v39 = vld [vmem:[#allocation2 + $0x3c] sm:$0xff]   ;;  %v11293_v11 = vld [vmem:[%s14591_s3 + $0x208] sm:$0xff] }
 0x172   : > { %4047 = vmatpush.bf16.msra.mxu1 %v11242_v44  ;;  %3507 = vmatpush.bf16.msra.mxu3 %v11213_v56  ;;  %v1898_v25 = vpop.f32.mrf.mxu2  ;;  %v11236_v56 = vld [vmem:[%s14591_s3 + $0x40] sm:$0xff]  ;;  %v11287_v31 = vld [vmem:[%s14591_s3 + $0x1d8] sm:$0xff] }
 0x173   : > { %v1899_v44 = vadd.f32 %v1898_v25, %v1885_v37  ;;  %v11282_v25 = vld [vmem:[%s14591_s3 + $0x1b0] sm:$0xff]  ;;  %v11295_v37 = vld [vmem:[%s14591_s3 + $0x218] sm:$0xff] }
 0x174   : > { %3522 = vmatpush.bf16.msrb.mxu0 %v11220_v47  ;;  %3861 = vmatpush.bf16.msrb.mxu2 %v11266_v55  ;;  %v1631_v47 = vadd.f32 %v1630_v18, %v1617_v34  ;;  %v1632_v60 = vpop.f32.mrf.mxu3  ;;  %v3559_v55 = vor.u32 %v3558_v41, %v3554_v57  ;;  %v11268_v18 = vld [vmem:[%s14591_s3 + $0x140] sm:$0xff]  ;;  %v11294_v34 = vld [vmem:[%s14591_s3 + $0x210] sm:$0xff] }
 0x175   : > { %v11288_v57 = vld [vmem:[%s14591_s3 + $0x1e0] sm:$0xff] }
 0x176   : > { %4048 = vmatpush.bf16.msra.mxu1 %v11241_v49  ;;  %3508 = vmatpush.bf16.msra.mxu3 %v11212_v0  ;;  %v3563_v49 = vrot.slane %v3561_v42, 1  ;;  %v1903_v0 = vadd.f32 %v1899_v44, %v1631_v47  ;;  %v4076_v41 = vld [vmem:[#allocation2 + $0x44] sm:$0x1]  ;;  %v11776_v42 = vld [vmem:[#allocation2 + $0x3c] sm:$0xe]  ;;  %v11246_v47 = vld [vmem:[%s14591_s3 + $0x90] sm:$0xff] }
 0x177   : > { %3523 = vmatmul.bf16.vlgmr.msrb.gmra.mxu0 %v3293_v50  ;;  %v1633_v50 = vadd.f32 %v1632_v60, %v1619_v35  ;;  %v11280_v44 = vld [vmem:[%s14591_s3 + $0x1a0] sm:$0xff]  ;;  %v11278_v35 = vld [vmem:[%s14591_s3 + $0x190] sm:$0xff] }
 0x178   : > { %4032 = vmatpush.bf16.msra.mxu0 %v11235_v51  ;;  %3862 = vmatpush.bf16.msrb.mxu2 %v11265_v29  ;;  %v11299_v51 = vld [vmem:[%s14591_s3 + $0x238] sm:$0xff] }
 0x179   : > { %3509 = vmatmul.bf16.vlgmr.msra.gmra.mxu3 %v3286_v9  ;;  %v11693_v9 = vld [vmem:[#allocation2 + $0x30] sm:$0xf0] }
 0x17a   : > { %3874 = vmatpush.bf16.msrb.mxu3 %v11275_v3  ;;  %4049 = vmatpush.bf16.msra.mxu1 %v11240_v63  ;;  %v1900_v3 = vpop.f32.mrf.mxu2  ;;  %v11251_v63 = vld [vmem:[%s14591_s3 + $0xb8] sm:$0xff]  ;;  %v11695_v46 = vor.u32 %v11694_v10, %v11693_v9  ;;  %v3570_v10 = vrot.slane %v13335_v24, 1  ;;  %v11330_v24 = vld [vmem:[%s14591_s3 + $0xf0] sm:$0xff] }
 0x17b   : > { %v1901_v29 = vadd.f32 %v1900_v3, %v1887_v62  ;;  %v4090_v62 = vshll.u32 %v13451_v39, 16 }
 0x17c   : > { %4033 = vmatpush.bf16.msra.mxu0 %v11234_v4  ;;  %3863 = vmatpush.bf16.msrb.mxu2 %v11264_v53  ;;  %v11260_v4 = vld [vmem:[%s14591_s3 + $0x100] sm:$0xff]  ;;  %v1908_v53 = vadd.f32 %v13377_v1, %v1903_v0  ;;  %v3650_v8 = vrot.slane %v11695_v46, 1  ;;  %v2259_v46 = vpop.f32.mrf.mxu1 }
 0x17e   : > { %3875 = vmatpush.bf16.msrb.mxu3 %v11274_v27  ;;  %4050 = vmatpush.bf16.msra.mxu1 %v11239_v12  ;;  %v3564_v27 = vsel %vm1111_vm13, %v3559_v55, %v3563_v49  ;;  %v1904_v12 = vadd.f32 %v1901_v29, %v1633_v50  ;;  %v11245_v55 = vld [vmem:[%s14591_s3 + $0x88] sm:$0xff]  ;;  %v11292_v49 = vld [vmem:[%s14591_s3 + $0x200] sm:$0xff]  ;;  %v11331_v29 = vld [vmem:[%s14591_s3 + $0xf8] sm:$0xff] }
 0x17f   : > { %v11244_v50 = vld [vmem:[%s14591_s3 + $0x80] sm:$0xff] }
 0x180   : > { %4034 = vmatpush.bf16.msra.mxu0 %v11233_v7  ;;  %3864 = vmatpush.bf16.msrb.mxu2 %v11263_v17  ;;  %v3644_v7 = vrot.slane %v3642_v58, 1  ;;  %v1910_v17 = vmax.f32 %v1908_v53, 0.0  ;;  %v11307_v58 = vld [vmem:[%s14591_s3 + $0x38] sm:$0xff]  ;;  %v11277_v53 = vld [vmem:[%s14591_s3 + $0x188] sm:$0xff] }
 0x182   : > { %3876 = vmatpush.bf16.msrb.mxu3 %v11273_v14  ;;  %4051 = vmatpush.bf16.msra.mxu1 %v11238_v59  ;;  %v1909_v14 = vadd.f32 %v13377_v1, %v1904_v12  ;;  %v3645_v48 = vsel %vm1111_vm13, %v13293_v5, %v3644_v7  ;;  %v11290_v5 = vld [vmem:[%s14591_s3 + $0x1f0] sm:$0xff]  ;;  %v11284_v12 = vld [vmem:[%s14591_s3 + $0x1c0] sm:$0xff] }
 0x184   : > { %4035 = vmatpush.bf16.msra.mxu0 %v11232_v16  ;;  %3865 = vmatpush.bf16.msrb.mxu2 %v11262_v32  ;;  %v11297_v16 = vld [vmem:[%s14591_s3 + $0x228] sm:$0xff]  ;;  %v1911_v59 = vmax.f32 %v1909_v14, 0.0 }
 0x185   : > { %v11289_v32 = vld [vmem:[%s14591_s3 + $0x1e8] sm:$0xff] }
 0x186   : > { %3877 = vmatpush.bf16.msrb.mxu3 %v11272_v28  ;;  %4052 = vmatpush.bf16.msra.mxu1 %v11237_v36  ;;  %v11599_v21 = vpack.c.bf16 %v1911_v59, %v1910_v17  ;;  %v11249_v28 = vld [vmem:[%s14591_s3 + $0xa8] sm:$0xff]  ;;  %v11339_v17 = vld [vmem:[%s14591_s3 + $0x138] sm:$0xff]  ;;  %v2245_v59 = vpop.f32.mrf.mxu0 }
 0x187   : > { %v11305_v14 = vld [vmem:[%s14591_s3 + $0x28] sm:$0xff] }
 0x188   : > { %4036 = vmatpush.bf16.msra.mxu0 %v11231_v23  ;;  %3866 = vmatpush.bf16.msrb.mxu2 %v11261_v45  ;;  %v3651_v23 = vrot.slane %v13354_v43, 1  ;;  %11600 = vst [vmem:[%s13421_s6] sm:$0xff] %v11599_v21   ;;  %v11247_v43 = vld [vmem:[%s14591_s3 + $0x98] sm:$0xff]  ;;  %v11779_v45 = vld [vmem:[#allocation2 + $0x24] sm:$0xe]  ;;  %v11329_v21 = vld [vmem:[%s14591_s3 + $0xe8] sm:$0xff] }
 0x189   : > { %v11780_v3 = vor.u32 %v11779_v45, %v13291_v6  ;;  %v11306_v6 = vld [vmem:[%s14591_s3 + $0x30] sm:$0xff]  ;;  %v11301_v45 = vld [vmem:[%s14591_s3 + $0x8] sm:$0xff] }
 0x18a   : > { %3878 = vmatpush.bf16.msrb.mxu3 %v11271_v15  ;;  %4053 = vmatpush.bf16.msra.mxu1 %v11236_v56  ;;  %v3652_v36 = vsel %vm1128_vm12, %v3650_v8, %v3651_v23  ;;  %v11775_v15 = vld [vmem:[#allocation2 + $0x3c] sm:$0xf0]  ;;  %v13468_v56 = vpop.f32.mrf.mxu3  ;;  %v11338_v8 = vld [vmem:[%s14591_s3 + $0x130] sm:$0xff]  ;;  %v11345_v23 = vld [vmem:[%s14591_s3 + $0x168] sm:$0xff] }
 0x18b   : > { %v11777_v60 = vor.u32 %v11776_v42, %v11775_v15  ;;  %v3569_v9 = vrot.slane %v11780_v3, 1  ;;  %v11327_v15 = vld [vmem:[%s14591_s3 + $0xd8] sm:$0xff]  ;;  %v11334_v3 = vld [vmem:[%s14591_s3 + $0x110] sm:$0xff] }
 0x18c   : > { %4037 = vmatpush.bf16.msra.mxu0 %v11230_v26  ;;  %3867 = vmatpush.bf16.msrb.mxu2 %v11260_v4  ;;  %v4085_v26 = vunpack.c.l.b16 %v4076_v41  ;;  %v11285_v4 = vld [vmem:[%s14591_s3 + $0x1c8] sm:$0xff]  ;;  %v11336_v41 = vld [vmem:[%s14591_s3 + $0x120] sm:$0xff] }
 0x18d   : > { %4054 = vmatmul.bf16.vlgmr.msra.gmra.mxu1 %v3564_v27  ;;  %v4103_v0 = vrot.slane %v11777_v60, 1  ;;  %v13575_v42 = vld [vmem:[#allocation2 + $0x3c] sm:$0xff]  }
 0x18e   : > { %4327 = vmatpush.bf16.msrb.mxu1 %v11299_v51  ;;  %3879 = vmatpush.bf16.msrb.mxu3 %v11270_v54  ;;  %v11279_v51 = vld [vmem:[%s14591_s3 + $0x198] sm:$0xff]  ;;  %v4086_v52 = vpack.c.b16 %v4085_v26, %v4085_v26  ;;  %v11286_v54 = vld [vmem:[%s14591_s3 + $0x1d0] sm:$0xff]  ;;  %v2246_v26 = vadd.f32 %v2245_v59, %v13468_v56  ;;  %v11361_v59 = vld [vmem:[%s14591_s3 + $0x1e8] sm:$0xff] }
 0x18f   : > { %3868 = vmatmul.bf16.vlgmr.msrb.gmra.mxu2 %v3645_v48  ;;  %v3571_v48 = vsel %vm1128_vm12, %v3569_v9, %v3570_v10  ;;  %v11342_v56 = vld [vmem:[%s14591_s3 + $0x150] sm:$0xff]  ;;  %v4449_v10 = vshll.u32 %v13575_v42, 16 }
 0x190   : > { %4038 = vmatpush.bf16.msra.mxu0 %v11229_v2  ;;  %4060 = vmatpush.bf16.msra.mxu2 %v11251_v63  ;;  %v4104_v2 = vrot.slane %v4086_v52, 1  ;;  %v4088_v63 = vshrl.u32 %v13451_v39, 16  ;;  %v4095_v27 = vshll.u32 %v4086_v52, 16  ;;  %v11782_v52 = vld [vmem:[#allocation2 + $0x3c] sm:$0xe] }
 0x192   : > { %4328 = vmatpush.bf16.msrb.mxu1 %v11298_v61  ;;  %3880 = vmatpush.bf16.msrb.mxu3 %v11269_v22  ;;  %v4092_v61 = vrot.slane %v4090_v62, 1  ;;  %v13509_v7 = vpop.f32.mrf.mxu3  ;;  %v4105_v22 = vsel %vm1128_vm12, %v4103_v0, %v4104_v2 }
 0x194   : > { %4039 = vmatpush.bf16.msra.mxu0 %v11228_v13  ;;  %4061 = vmatpush.bf16.msra.mxu2 %v11250_v33  ;;  %v13519_v13 = vpop.f32.mrf.mxu2  ;;  %v4093_v33 = vor.u32 %v4092_v61, %v4088_v63  ;;  %v11324_v61 = vld [vmem:[%s14591_s3 + $0xc0] sm:$0xff] }
 0x196   : > { %4329 = vmatpush.bf16.msrb.mxu1 %v11297_v16  ;;  %3881 = vmatpush.bf16.msrb.mxu3 %v11268_v18  ;;  %v4097_v16 = vrot.slane %v4095_v27, 1  ;;  %v11276_v18 = vld [vmem:[%s14591_s3 + $0x180] sm:$0xff]  ;;  %v11315_v27 = vld [vmem:[%s14591_s3 + $0x78] sm:$0xff] }
 0x197   : > { %4040 = vmatmul.bf16.vlgmr.msra.gmra.mxu0 %v13289_v30  ;;  %v11248_v30 = vld [vmem:[%s14591_s3 + $0xa0] sm:$0xff] }
 0x198   : > { %4313 = vmatpush.bf16.msrb.mxu0 %v11291_v20  ;;  %4062 = vmatpush.bf16.msra.mxu2 %v11249_v28  ;;  %v11347_v20 = vld [vmem:[%s14591_s3 + $0x178] sm:$0xff]  ;;  %v11304_v28 = vld [vmem:[%s14591_s3 + $0x20] sm:$0xff] }
 0x199   : > { %3882 = vmatmul.bf16.vlgmr.msrb.gmra.mxu3 %v3652_v36 }
 0x19a   : > { %4299 = vmatpush.bf16.msra.mxu3 %v11283_v19  ;;  %4330 = vmatpush.bf16.msrb.mxu1 %v11296_v40  ;;  %v11346_v19 = vld [vmem:[%s14591_s3 + $0x170] sm:$0xff] }
 0x19c   : > { %4314 = vmatpush.bf16.msrb.mxu0 %v11290_v5  ;;  %4063 = vmatpush.bf16.msra.mxu2 %v11248_v30  ;;  %v4098_v5 = vsel %vm1111_vm13, %v4093_v33, %v4097_v16  ;;  %v2431_v40 = vpop.f32.mrf.mxu3  ;;  %v2419_v36 = vpop.f32.mrf.mxu2  ;;  %v11337_v30 = vld [vmem:[%s14591_s3 + $0x128] sm:$0xff] }
 0x19e   : > { %4300 = vmatpush.bf16.msra.mxu3 %v11282_v25  ;;  %4331 = vmatpush.bf16.msrb.mxu1 %v11295_v37  ;;  %v11328_v25 = vld [vmem:[%s14591_s3 + $0xe0] sm:$0xff]  ;;  %v2261_v37 = vpop.f32.mrf.mxu1 }
 0x1a0   : > { %4315 = vmatpush.bf16.msrb.mxu0 %v11289_v32  ;;  %4064 = vmatpush.bf16.msra.mxu2 %v11247_v43  ;;  %v11303_v32 = vld [vmem:[%s14591_s3 + $0x18] sm:$0xff]  ;;  %v13577_v43 = vld [vmem:[#allocation2 + $0x3c] sm:$0xf0] }
 0x1a1   : > { %v11783_v9 = vor.u32 %v11782_v52, %v13577_v43 }
 0x1a2   : > { %4301 = vmatpush.bf16.msra.mxu3 %v11281_v38  ;;  %4332 = vmatpush.bf16.msrb.mxu1 %v11294_v34  ;;  %v11344_v38 = vld [vmem:[%s14591_s3 + $0x160] sm:$0xff] }
 0x1a4   : > { %4316 = vmatpush.bf16.msrb.mxu0 %v11288_v57  ;;  %4065 = vmatpush.bf16.msra.mxu2 %v11246_v47  ;;  %v2247_v57 = vpop.f32.mrf.mxu0  ;;  %v2433_v34 = vpop.f32.mrf.mxu3 }
 0x1a6   : > { %4302 = vmatpush.bf16.msra.mxu3 %v11280_v44  ;;  %4333 = vmatpush.bf16.msrb.mxu1 %v11293_v11  ;;  %v11343_v44 = vld [vmem:[%s14591_s3 + $0x158] sm:$0xff]  ;;  %v2684_v60 = vpop.f32.mrf.mxu1 }
 0x1a7   : > { %v11335_v11 = vld [vmem:[%s14591_s3 + $0x118] sm:$0xff] }
 0x1a8   : > { %4317 = vmatpush.bf16.msrb.mxu0 %v11287_v31  ;;  %4066 = vmatpush.bf16.msra.mxu2 %v11245_v55  ;;  %v11326_v31 = vld [vmem:[%s14591_s3 + $0xd0] sm:$0xff]  ;;  %v2260_v55 = vadd.f32 %v2259_v46, %v2246_v26  ;;  %v11355_v46 = vld [vmem:[%s14591_s3 + $0x1b8] sm:$0xff] }
 0x1aa   : > { %4303 = vmatpush.bf16.msra.mxu3 %v11279_v51  ;;  %4334 = vmatpush.bf16.msrb.mxu1 %v11292_v49  ;;  %v4435_v51 = vld [vmem:[#allocation2 + $0x44] sm:$0x1]  ;;  %v11325_v49 = vld [vmem:[%s14591_s3 + $0xc8] sm:$0xff]  ;;  %v2418_v2 = vadd.f32 %v13519_v13, %v2260_v55  ;;  %v13623_v13 = vld [vmem:[#allocation2 + $0x30] sm:$0xff]  }
 0x1ab   : > { %v4444_v0 = vunpack.c.l.b16 %v4435_v51  ;;  %v11359_v51 = vld [vmem:[%s14591_s3 + $0x1d8] sm:$0xff] }
 0x1ac   : > { %4318 = vmatpush.bf16.msrb.mxu0 %v11286_v54  ;;  %4067 = vmatpush.bf16.msra.mxu2 %v11244_v50  ;;  %v2248_v54 = vadd.f32 %v2247_v57, %v13509_v7  ;;  %v2445_v62 = vpop.f32.mrf.mxu0  ;;  %v11341_v50 = vld [vmem:[%s14591_s3 + $0x148] sm:$0xff]  ;;  %v11362_v7 = vld [vmem:[%s14591_s3 + $0x1f0] sm:$0xff]  ;;  %v11360_v57 = vld [vmem:[%s14591_s3 + $0x1e0] sm:$0xff] }
 0x1ad   : > { %4335 = vmatmul.bf16.vlgmr.msrb.gmra.mxu1 %v4105_v22  ;;  %v4445_v22 = vpack.c.b16 %v4444_v0, %v4444_v0  ;;  %v11358_v0 = vld [vmem:[%s14591_s3 + $0x1d0] sm:$0xff] }
 0x1ae   : > { %4844 = vmatpush.bf16.msra.mxu1 %v11307_v58  ;;  %4304 = vmatpush.bf16.msra.mxu3 %v11278_v35  ;;  %v11300_v58 = vld [vmem:[%s14591_s3] sm:$0xff]  ;;  %v11363_v35 = vld [vmem:[%s14591_s3 + $0x1f8] sm:$0xff] }
 0x1af   : > { %4068 = vmatmul.bf16.vlgmr.msra.gmra.mxu2 %v3571_v48  ;;  %v4447_v48 = vshrl.u32 %v13575_v42, 16 }
 0x1b0   : > { %4319 = vmatpush.bf16.msrb.mxu0 %v11285_v4  ;;  %4658 = vmatpush.bf16.msrb.mxu2 %v11331_v29  ;;  %v2432_v29 = vadd.f32 %v2431_v40, %v2418_v2  ;;  %v11320_v2 = vld [vmem:[%s14591_s3 + $0xa0] sm:$0xff] }
 0x1b2   : > { %4845 = vmatpush.bf16.msra.mxu1 %v11306_v6  ;;  %4305 = vmatpush.bf16.msra.mxu3 %v11277_v53  ;;  %v2698_v47 = vpop.f32.mrf.mxu2  ;;  %v2262_v6 = vadd.f32 %v2261_v37, %v2248_v54  ;;  %v2446_v33 = vadd.f32 %v2445_v62, %v2432_v29  ;;  %v4354_v62 = vld [vmem:[#allocation2 + $0x38] sm:$0x1] }
 0x1b3   : > { %v2699_v63 = vadd.f32 %v2698_v47, %v2684_v60  ;;  %v11351_v29 = vld [vmem:[%s14591_s3 + $0x198] sm:$0xff] }
 0x1b4   : > { %4320 = vmatpush.bf16.msrb.mxu0 %v11284_v12  ;;  %4659 = vmatpush.bf16.msrb.mxu2 %v11330_v24  ;;  %v2420_v53 = vadd.f32 %v2419_v36, %v2262_v6  ;;  %v11323_v36 = vld [vmem:[%s14591_s3 + $0xb8] sm:$0xff]  ;;  %v11310_v6 = vld [vmem:[%s14591_s3 + $0x50] sm:$0xff] }
 0x1b6   : > { %4846 = vmatpush.bf16.msra.mxu1 %v11305_v14  ;;  %4306 = vmatpush.bf16.msra.mxu3 %v11276_v18  ;;  %v11340_v14 = vld [vmem:[%s14591_s3 + $0x140] sm:$0xff]  ;;  %v2434_v16 = vadd.f32 %v2433_v34, %v2420_v53  ;;  %v2686_v18 = vpop.f32.mrf.mxu1 }
 0x1b7   : > { %4321 = vmatmul.bf16.vlgmr.msrb.gmra.mxu0 %v4098_v5  ;;  %v4463_v5 = vrot.slane %v4445_v22, 1 }
 0x1b8   : > { %4686 = vmatpush.bf16.msra.mxu0 %v11347_v20  ;;  %4660 = vmatpush.bf16.msrb.mxu2 %v11329_v21  ;;  %v11333_v20 = vld [vmem:[%s14591_s3 + $0x108] sm:$0xff]  ;;  %v4451_v21 = vrot.slane %v4449_v10, 1 }
 0x1b9   : > { %4307 = vmatmul.bf16.vlgmr.msra.gmra.mxu3 %v13451_v39  ;;  %v11302_v39 = vld [vmem:[%s14591_s3 + $0x10] sm:$0xff] }
 0x1ba   : > { %4672 = vmatpush.bf16.msrb.mxu3 %v11339_v17  ;;  %4847 = vmatpush.bf16.msra.mxu1 %v11304_v28  ;;  %v2700_v24 = vpop.f32.mrf.mxu2  ;;  %v11314_v17 = vld [vmem:[%s14591_s3 + $0x70] sm:$0xff]  ;;  %v4454_v28 = vshll.u32 %v4445_v22, 16 }
 0x1bc   : > { %4687 = vmatpush.bf16.msra.mxu0 %v11346_v19  ;;  %4661 = vmatpush.bf16.msrb.mxu2 %v11328_v25  ;;  %v2712_v4 = vpop.f32.mrf.mxu3  ;;  %v4462_v19 = vrot.slane %v11783_v9, 1  ;;  %v2447_v25 = vpop.f32.mrf.mxu0 }
 0x1bd   : > { %v2713_v12 = vadd.f32 %v2712_v4, %v2699_v63  ;;  %v11357_v63 = vld [vmem:[%s14591_s3 + $0x1c8] sm:$0xff] }
 0x1be   : > { %4673 = vmatpush.bf16.msrb.mxu3 %v11338_v8  ;;  %4848 = vmatpush.bf16.msra.mxu1 %v11303_v32  ;;  %v2701_v8 = vadd.f32 %v2700_v24, %v2686_v18  ;;  %v11356_v24 = vld [vmem:[%s14591_s3 + $0x1c0] sm:$0xff] }
 0x1bf   : > { %v2717_v40 = vadd.f32 %v2713_v12, %v2446_v33  ;;  %v11350_v12 = vld [vmem:[%s14591_s3 + $0x190] sm:$0xff]  ;;  %v11419_v33 = vld [vmem:[%s14591_s3 + $0x178] sm:$0xff] }
 0x1c0   : > { %4688 = vmatpush.bf16.msra.mxu0 %v11345_v23  ;;  %4662 = vmatpush.bf16.msrb.mxu2 %v11327_v15  ;;  %v11332_v23 = vld [vmem:[%s14591_s3 + $0x100] sm:$0xff]  ;;  %v4464_v15 = vsel %vm1128_vm12, %v4462_v19, %v4463_v5  ;;  %v11371_v19 = vld [vmem:[%s14591_s3 + $0x238] sm:$0xff]  ;;  %v11418_v5 = vld [vmem:[%s14591_s3 + $0x170] sm:$0xff] }
 0x1c1   : > { %v2719_v43 = vadd.f32 %v13377_v1, %v2717_v40 }
 0x1c2   : > { %4674 = vmatpush.bf16.msrb.mxu3 %v11337_v30  ;;  %4849 = vmatpush.bf16.msra.mxu1 %v11302_v39  ;;  %v2448_v30 = vadd.f32 %v2447_v25, %v2434_v16  ;;  %v11313_v39 = vld [vmem:[%s14591_s3 + $0x68] sm:$0xff]  ;;  %v11698_v25 = vld [vmem:[#allocation2 + $0x30] sm:$0xe] }
 0x1c3   : > { %v2721_v52 = vmax.f32 %v2719_v43, 0.0 }
 0x1c4   : > { %4689 = vmatpush.bf16.msra.mxu0 %v11344_v38  ;;  %4663 = vmatpush.bf16.msrb.mxu2 %v11326_v31  ;;  %v2714_v32 = vpop.f32.mrf.mxu3  ;;  %v11354_v38 = vld [vmem:[%s14591_s3 + $0x1b0] sm:$0xff]  ;;  %v11353_v31 = vld [vmem:[%s14591_s3 + $0x1a8] sm:$0xff] }
 0x1c5   : > { %v2715_v37 = vadd.f32 %v2714_v32, %v2701_v8  ;;  %v11317_v8 = vld [vmem:[%s14591_s3 + $0x88] sm:$0xff] }
 0x1c6   : > { %4675 = vmatpush.bf16.msrb.mxu3 %v11336_v41  ;;  %4850 = vmatpush.bf16.msra.mxu1 %v11301_v45  ;;  %v4452_v41 = vor.u32 %v4451_v21, %v4447_v48  ;;  %v4888_v45 = vld [vmem:[#allocation2 + $0x50] sm:$0x1] }
 0x1c7   : > { %v2718_v34 = vadd.f32 %v2715_v37, %v2448_v30  ;;  %v4897_v54 = vunpack.c.l.b16 %v4888_v45  ;;  %v11411_v30 = vld [vmem:[%s14591_s3 + $0x138] sm:$0xff]  ;;  %v11370_v37 = vld [vmem:[%s14591_s3 + $0x230] sm:$0xff]  ;;  %v3057_v45 = vpop.f32.mrf.mxu1 }
 0x1c8   : > { %4690 = vmatpush.bf16.msra.mxu0 %v11343_v44  ;;  %4664 = vmatpush.bf16.msrb.mxu2 %v11325_v49  ;;  %v11322_v44 = vld [vmem:[%s14591_s3 + $0xb0] sm:$0xff]  ;;  %v11352_v49 = vld [vmem:[%s14591_s3 + $0x1a0] sm:$0xff] }
 0x1c9   : > { %v2720_v26 = vadd.f32 %v13377_v1, %v2718_v34  ;;  %v11369_v34 = vld [vmem:[%s14591_s3 + $0x228] sm:$0xff] }
 0x1ca   : > { %4676 = vmatpush.bf16.msrb.mxu3 %v11335_v11  ;;  %4851 = vmatpush.bf16.msra.mxu1 %v11300_v58  ;;  %v11312_v11 = vld [vmem:[%s14591_s3 + $0x60] sm:$0xff]  ;;  %v13680_v58 = vld [vmem:[#allocation2 + $0x48] sm:$0xff]  }
 0x1cb   : > { %v2722_v60 = vmax.f32 %v2720_v26, 0.0  ;;  %v4902_v4 = vshll.u32 %v13680_v58, 16  ;;  %v4900_v22 = vshrl.u32 %v13680_v58, 16 }
 0x1cc   : > { %4691 = vmatpush.bf16.msra.mxu0 %v11342_v56  ;;  %4665 = vmatpush.bf16.msrb.mxu2 %v11324_v61  ;;  %v11321_v56 = vld [vmem:[%s14591_s3 + $0xa8] sm:$0xff]  ;;  %v13704_v61 = vpop.f32.mrf.mxu0 }
 0x1cd   : > { %4852 = vmatmul.bf16.vlgmr.msra.gmra.mxu1 %v13623_v13  ;;  %v11608_v55 = vpack.c.bf16 %v2722_v60, %v2721_v52  ;;  %v4904_v9 = vrot.slane %v4902_v4, 1  ;;  %v11409_v52 = vld [vmem:[%s14591_s3 + $0x128] sm:$0xff]  ;;  %v11400_v4 = vld [vmem:[%s14591_s3 + $0xe0] sm:$0xff] }
 0x1ce   : > { %5125 = vmatpush.bf16.msrb.mxu1 %v11363_v35  ;;  %4677 = vmatpush.bf16.msrb.mxu3 %v11334_v3  ;;  %v11311_v35 = vld [vmem:[%s14591_s3 + $0x58] sm:$0xff]  ;;  %v13692_v3 = vpack.c.b16 %v4897_v54, %v4897_v54 }
 0x1cf   : > { %4666 = vmatmul.bf16.vlgmr.msrb.gmra.mxu2 %v13575_v42  ;;  %v4456_v42 = vrot.slane %v4454_v28, 1  ;;  %11685 = vst [vmem:[%s13421_s6 + $0x8] sm:$0xff] %v11608_v55   ;;  %v13730_v48 = vor.u32 %v4904_v9, %v4900_v22  ;;  %v11415_v54 = vld [vmem:[%s14591_s3 + $0x158] sm:$0xff]  ;;  %v11401_v55 = vld [vmem:[%s14591_s3 + $0xe8] sm:$0xff]  ;;  %v11366_v22 = vld [vmem:[%s14591_s3 + $0x210] sm:$0xff] }
 0x1d0   : > { %4692 = vmatpush.bf16.msra.mxu0 %v11341_v50  ;;  %4858 = vmatpush.bf16.msra.mxu2 %v11315_v27  ;;  %v4363_v50 = vunpack.c.l.b16 %v4354_v62  ;;  %v4368_v27 = vshll.u32 %v13623_v13, 16  ;;  %v4907_v10 = vshll.u32 %v13692_v3, 16  ;;  %v11367_v62 = vld [vmem:[%s14591_s3 + $0x218] sm:$0xff]  ;;  %v11413_v9 = vld [vmem:[%s14591_s3 + $0x148] sm:$0xff] }
 0x1d1   : > { %v4457_v47 = vsel %vm1111_vm13, %v4452_v41, %v4456_v42  ;;  %v11403_v41 = vld [vmem:[%s14591_s3 + $0xf8] sm:$0xff]  ;;  %v11410_v42 = vld [vmem:[%s14591_s3 + $0x130] sm:$0xff] }
 0x1d2   : > { %5126 = vmatpush.bf16.msrb.mxu1 %v11362_v7  ;;  %4678 = vmatpush.bf16.msrb.mxu3 %v11333_v20  ;;  %v11319_v7 = vld [vmem:[%s14591_s3 + $0x98] sm:$0xff]  ;;  %v13712_v53 = vpack.c.b16 %v4363_v50, %v4363_v50  ;;  %v11309_v20 = vld [vmem:[%s14591_s3 + $0x48] sm:$0xff]  ;;  %v4370_v16 = vrot.slane %v4368_v27, 1  ;;  %v4909_v18 = vrot.slane %v4907_v10, 1  ;;  %v3071_v43 = vpop.f32.mrf.mxu2  ;;  %v3059_v50 = vpop.f32.mrf.mxu1 }
 0x1d4   : > { %4693 = vmatpush.bf16.msra.mxu0 %v11340_v14  ;;  %4859 = vmatpush.bf16.msra.mxu2 %v11314_v17  ;;  %v4366_v14 = vshrl.u32 %v13623_v13, 16  ;;  %v4373_v17 = vshll.u32 %v13712_v53, 16  ;;  %v11349_v13 = vld [vmem:[%s14591_s3 + $0x188] sm:$0xff]  ;;  %v4910_v28 = vsel %vm1111_vm13, %v13730_v48, %v4909_v18  ;;  %v13750_v32 = vpop.f32.mrf.mxu0 }
 0x1d6   : > { %5127 = vmatpush.bf16.msrb.mxu1 %v11361_v59  ;;  %4679 = vmatpush.bf16.msrb.mxu3 %v11332_v23  ;;  %v11308_v59 = vld [vmem:[%s14591_s3 + $0x40] sm:$0xff]  ;;  %v4371_v21 = vor.u32 %v4370_v16, %v4366_v14  ;;  %v4375_v40 = vrot.slane %v4373_v17, 1  ;;  %v11697_v23 = vld [vmem:[#allocation2 + $0x30] sm:$0xf0]  ;;  %v11700_v14 = vld [vmem:[#allocation2 + $0x48] sm:$0xf0] }
 0x1d7   : > { %4694 = vmatmul.bf16.vlgmr.msra.gmra.mxu0 %v4464_v15  ;;  %v11699_v15 = vor.u32 %v11698_v25, %v11697_v23  ;;  %v11365_v16 = vld [vmem:[%s14591_s3 + $0x208] sm:$0xff] }
 0x1d8   : > { %5111 = vmatpush.bf16.msrb.mxu0 %v11355_v46  ;;  %4860 = vmatpush.bf16.msra.mxu2 %v11313_v39  ;;  %v11318_v46 = vld [vmem:[%s14591_s3 + $0x90] sm:$0xff]  ;;  %v4376_v39 = vsel %vm1111_vm13, %v4371_v21, %v4375_v40  ;;  %v11405_v23 = vld [vmem:[%s14591_s3 + $0x108] sm:$0xff] }
 0x1d9   : > { %4680 = vmatmul.bf16.vlgmr.msrb.gmra.mxu3 %v4457_v47  ;;  %v4381_v26 = vrot.slane %v11699_v15, 1  ;;  %v11426_v15 = vld [vmem:[%s14591_s3 + $0x1b0] sm:$0xff] }
 0x1da   : > { %4872 = vmatpush.bf16.msra.mxu3 %v11323_v36  ;;  %5128 = vmatpush.bf16.msrb.mxu1 %v11360_v57  ;;  %v11348_v36 = vld [vmem:[%s14591_s3 + $0x180] sm:$0xff]  ;;  %v3257_v40 = vpop.f32.mrf.mxu1 }
 0x1db   : > { %v11316_v57 = vld [vmem:[%s14591_s3 + $0x80] sm:$0xff] }
 0x1dc   : > { %5112 = vmatpush.bf16.msrb.mxu0 %v11354_v38  ;;  %4861 = vmatpush.bf16.msra.mxu2 %v11312_v11  ;;  %v11417_v38 = vld [vmem:[%s14591_s3 + $0x168] sm:$0xff]  ;;  %v13782_v47 = vpop.f32.mrf.mxu0  ;;  %v3229_v11 = vpop.f32.mrf.mxu3 }
 0x1de   : > { %4873 = vmatpush.bf16.msra.mxu3 %v11322_v44  ;;  %5129 = vmatpush.bf16.msrb.mxu1 %v11359_v51  ;;  %v11416_v44 = vld [vmem:[%s14591_s3 + $0x160] sm:$0xff]  ;;  %v11402_v51 = vld [vmem:[%s14591_s3 + $0xf0] sm:$0xff] }
 0x1e0   : > { %5113 = vmatpush.bf16.msrb.mxu0 %v11353_v31  ;;  %4862 = vmatpush.bf16.msra.mxu2 %v11311_v35  ;;  %v4382_v31 = vrot.slane %v13712_v53, 1  ;;  %v11414_v35 = vld [vmem:[%s14591_s3 + $0x150] sm:$0xff]  ;;  %v11399_v53 = vld [vmem:[%s14591_s3 + $0xd8] sm:$0xff] }
 0x1e2   : > { %4874 = vmatpush.bf16.msra.mxu3 %v11321_v56  ;;  %5130 = vmatpush.bf16.msrb.mxu1 %v11358_v0  ;;  %v4383_v60 = vsel %vm1128_vm12, %v4381_v26, %v4382_v31  ;;  %v11368_v56 = vld [vmem:[%s14591_s3 + $0x220] sm:$0xff]  ;;  %v5247_v0 = vld [vmem:[#allocation2 + $0x50] sm:$0x1]  ;;  %v11395_v31 = vld [vmem:[%s14591_s3 + $0xb8] sm:$0xff] }
 0x1e3   : > { %v5256_v10 = vunpack.c.l.b16 %v5247_v0  ;;  %v11404_v26 = vld [vmem:[%s14591_s3 + $0x100] sm:$0xff] }
 0x1e4   : > { %5114 = vmatpush.bf16.msrb.mxu0 %v11352_v49  ;;  %4863 = vmatpush.bf16.msra.mxu2 %v11310_v6  ;;  %v11408_v49 = vld [vmem:[%s14591_s3 + $0x120] sm:$0xff]  ;;  %v11704_v6 = vld [vmem:[#allocation2 + $0x48] sm:$0xf0]  ;;  %v13815_v27 = vpop.f32.mrf.mxu0 }
 0x1e5   : > { %v5257_v18 = vpack.c.b16 %v5256_v10, %v5256_v10  ;;  %v11376_v10 = vld [vmem:[%s14591_s3 + $0x20] sm:$0xff] }
 0x1e6   : > { %4875 = vmatpush.bf16.msra.mxu3 %v11320_v2  ;;  %5131 = vmatpush.bf16.msrb.mxu1 %v11357_v63  ;;  %v3073_v2 = vpop.f32.mrf.mxu2  ;;  %v11705_v63 = vld [vmem:[#allocation2 + $0x48] sm:$0xe] }
 0x1e8   : > { %5115 = vmatpush.bf16.msrb.mxu0 %v11351_v29  ;;  %4864 = vmatpush.bf16.msra.mxu2 %v11309_v20  ;;  %v11407_v29 = vld [vmem:[%s14591_s3 + $0x118] sm:$0xff]  ;;  %v3058_v20 = vadd.f32 %v3057_v45, %v13704_v61 }
 0x1e9   : > { %v11427_v61 = vld [vmem:[%s14591_s3 + $0x1b8] sm:$0xff] }
 0x1ea   : > { %4876 = vmatpush.bf16.msra.mxu3 %v11319_v7  ;;  %5132 = vmatpush.bf16.msrb.mxu1 %v11356_v24  ;;  %v3231_v7 = vpop.f32.mrf.mxu3  ;;  %v11406_v24 = vld [vmem:[%s14591_s3 + $0x110] sm:$0xff]  ;;  %v3072_v17 = vadd.f32 %v3071_v43, %v3058_v20  ;;  %v11397_v43 = vld [vmem:[%s14591_s3 + $0xc8] sm:$0xff] }
 0x1eb   : > { %v11385_v20 = vld [vmem:[%s14591_s3 + $0x68] sm:$0xff] }
 0x1ec   : > { %5116 = vmatpush.bf16.msrb.mxu0 %v11350_v12  ;;  %4865 = vmatpush.bf16.msra.mxu2 %v11308_v59  ;;  %v11706_v12 = vor.u32 %v11705_v63, %v11704_v6  ;;  %v11398_v59 = vld [vmem:[%s14591_s3 + $0xd0] sm:$0xff] }
 0x1ed   : > { %5133 = vmatmul.bf16.vlgmr.msrb.gmra.mxu1 %v4910_v28  ;;  %v3060_v28 = vadd.f32 %v3059_v50, %v13750_v32  ;;  %v11379_v32 = vld [vmem:[%s14591_s3 + $0x38] sm:$0xff]  ;;  %v11424_v50 = vld [vmem:[%s14591_s3 + $0x1a0] sm:$0xff] }
 0x1ee   : > { %5498 = vmatpush.bf16.msra.mxu1 %v11419_v33  ;;  %4877 = vmatpush.bf16.msra.mxu3 %v11318_v46  ;;  %v11701_v33 = vld [vmem:[#allocation2 + $0x48] sm:$0xe]  ;;  %v11412_v46 = vld [vmem:[%s14591_s3 + $0x140] sm:$0xff] }
 0x1ef   : > { %4866 = vmatmul.bf16.vlgmr.msra.gmra.mxu2 %v4376_v39  ;;  %v11702_v21 = vor.u32 %v11701_v33, %v11700_v14  ;;  %v5266_v39 = vshll.u32 %v5257_v18, 16 }
 0x1f0   : > { %5117 = vmatpush.bf16.msrb.mxu0 %v11349_v13  ;;  %5139 = vmatpush.bf16.msrb.mxu2 %v11371_v19  ;;  %v5274_v19 = vrot.slane %v11706_v12, 1 }
 0x1f2   : > { %5499 = vmatpush.bf16.msra.mxu1 %v11418_v5  ;;  %4878 = vmatpush.bf16.msra.mxu3 %v11317_v8  ;;  %v3496_v13 = vpop.f32.mrf.mxu2  ;;  %v5275_v5 = vrot.slane %v5257_v18, 1  ;;  %v3230_v8 = vadd.f32 %v3229_v11, %v3072_v17  ;;  %v5268_v11 = vrot.slane %v5266_v39, 1  ;;  %v13922_v18 = vld [vmem:[#allocation2 + $0x3c] sm:$0xff]  }
 0x1f3   : > { %v11784_v17 = vld [vmem:[#allocation2 + $0x3c] sm:$0xf0] }
 0x1f4   : > { %5118 = vmatpush.bf16.msrb.mxu0 %v11348_v36  ;;  %5140 = vmatpush.bf16.msrb.mxu2 %v11370_v37  ;;  %v3524_v25 = vpop.f32.mrf.mxu0  ;;  %v3074_v37 = vadd.f32 %v3073_v2, %v3060_v28  ;;  %v5269_v2 = vsel %vm1111_vm13, %v13730_v48, %v5268_v11  ;;  %v11393_v48 = vld [vmem:[%s14591_s3 + $0xa8] sm:$0xff]  ;;  %v13939_v28 = vld [vmem:[#allocation2 + $0x54] sm:$0xff]  }
 0x1f6   : > { %5500 = vmatpush.bf16.msra.mxu1 %v11417_v38  ;;  %4879 = vmatpush.bf16.msra.mxu3 %v11316_v57  ;;  %v5276_v57 = vsel %vm1128_vm12, %v5274_v19, %v5275_v5  ;;  %v5166_v5 = vld [vmem:[#allocation2 + $0x44] sm:$0x1] }
 0x1f7   : > { %5119 = vmatmul.bf16.vlgmr.msrb.gmra.mxu0 %v13680_v58 }
 0x1f8   : > { %5484 = vmatpush.bf16.msra.mxu0 %v11411_v30  ;;  %5141 = vmatpush.bf16.msrb.mxu2 %v11369_v34  ;;  %v11364_v30 = vld [vmem:[%s14591_s3 + $0x200] sm:$0xff]  ;;  %v3244_v34 = vadd.f32 %v13782_v47, %v3230_v8  ;;  %v11425_v47 = vld [vmem:[%s14591_s3 + $0x1a8] sm:$0xff]  ;;  %v11785_v8 = vld [vmem:[#allocation2 + $0x3c] sm:$0xe] }
 0x1f9   : > { %4880 = vmatmul.bf16.vlgmr.msra.gmra.mxu3 %v4383_v60 }
 0x1fa   : > { %5470 = vmatpush.bf16.msrb.mxu3 %v11403_v41  ;;  %5501 = vmatpush.bf16.msra.mxu1 %v11416_v44  ;;  %v4915_v41 = vrot.slane %v11702_v21, 1  ;;  %v3232_v44 = vadd.f32 %v3231_v7, %v3074_v37  ;;  %v3258_v60 = vadd.f32 %v3257_v40, %v3244_v34  ;;  %v11386_v7 = vld [vmem:[%s14591_s3 + $0x70] sm:$0xff]  ;;  %v11383_v21 = vld [vmem:[%s14591_s3 + $0x58] sm:$0xff]  ;;  %v11381_v34 = vld [vmem:[%s14591_s3 + $0x48] sm:$0xff] }
 0x1fb   : > { %v13941_v40 = vld [vmem:[#allocation2 + $0x54] sm:$0xf0] }
 0x1fc   : > { %5485 = vmatpush.bf16.msra.mxu0 %v11410_v42  ;;  %5142 = vmatpush.bf16.msrb.mxu2 %v11368_v56  ;;  %v3510_v36 = vpop.f32.mrf.mxu3  ;;  %v4916_v42 = vrot.slane %v13692_v3, 1  ;;  %v11378_v3 = vld [vmem:[%s14591_s3 + $0x30] sm:$0xff]  ;;  %v3246_v56 = vadd.f32 %v13815_v27, %v3232_v44  ;;  %v3526_v6 = vpop.f32.mrf.mxu0  ;;  %v11483_v37 = vld [vmem:[%s14591_s3 + $0x138] sm:$0xff] }
 0x1fd   : > { %v3511_v38 = vadd.f32 %v3510_v36, %v3496_v13  ;;  %v11374_v13 = vld [vmem:[%s14591_s3 + $0x10] sm:$0xff]  ;;  %v11420_v36 = vld [vmem:[%s14591_s3 + $0x180] sm:$0xff] }
 0x1fe   : > { %5471 = vmatpush.bf16.msrb.mxu3 %v11402_v51  ;;  %5502 = vmatpush.bf16.msra.mxu1 %v11415_v54  ;;  %v4917_v51 = vsel %vm1128_vm12, %v4915_v41, %v4916_v42  ;;  %v11387_v54 = vld [vmem:[%s14591_s3 + $0x78] sm:$0xff]  ;;  %v11482_v41 = vld [vmem:[%s14591_s3 + $0x130] sm:$0xff]  ;;  %v11786_v42 = vor.u32 %v11785_v8, %v11784_v17  ;;  %v11477_v8 = vld [vmem:[%s14591_s3 + $0x108] sm:$0xff] }
 0x1ff   : > { %v3525_v45 = vadd.f32 %v3524_v25, %v3511_v38  ;;  %v11373_v25 = vld [vmem:[%s14591_s3 + $0x8] sm:$0xff]  ;;  %v11382_v38 = vld [vmem:[%s14591_s3 + $0x50] sm:$0xff] }
 0x200   : > { %5486 = vmatpush.bf16.msra.mxu0 %v11409_v52  ;;  %5143 = vmatpush.bf16.msrb.mxu2 %v11367_v62  ;;  %v11396_v52 = vld [vmem:[%s14591_s3 + $0xc0] sm:$0xff]  ;;  %v11394_v62 = vld [vmem:[%s14591_s3 + $0xb0] sm:$0xff]  ;;  %v5193_v11 = vrot.slane %v11786_v42, 1 }
 0x202   : > { %5472 = vmatpush.bf16.msrb.mxu3 %v11401_v55  ;;  %5503 = vmatpush.bf16.msra.mxu1 %v11414_v35  ;;  %v3498_v55 = vpop.f32.mrf.mxu2  ;;  %v3529_v35 = vadd.f32 %v3525_v45, %v3258_v60 }
 0x204   : > { %5487 = vmatpush.bf16.msra.mxu0 %v11408_v49  ;;  %5144 = vmatpush.bf16.msrb.mxu2 %v11366_v22  ;;  %v3512_v49 = vpop.f32.mrf.mxu3  ;;  %v3531_v22 = vadd.f32 %v13377_v1, %v3529_v35  ;;  %v14004_v35 = vld [vmem:[#allocation2 + $0x54] sm:$0xf0] }
 0x205   : > { %v3513_v0 = vadd.f32 %v3512_v49, %v3498_v55  ;;  %v11474_v49 = vld [vmem:[%s14591_s3 + $0xf0] sm:$0xff] }
 0x206   : > { %5473 = vmatpush.bf16.msrb.mxu3 %v11400_v4  ;;  %5504 = vmatpush.bf16.msra.mxu1 %v11413_v9  ;;  %v11377_v4 = vld [vmem:[%s14591_s3 + $0x28] sm:$0xff]  ;;  %v3533_v14 = vmax.f32 %v3531_v22, 0.0  ;;  %v6059_v22 = vld [vmem:[#allocation2 + $0x5c] sm:$0x1] }
 0x207   : > { %v3527_v27 = vadd.f32 %v3526_v6, %v3513_v0 }
 0x208   : > { %5488 = vmatpush.bf16.msra.mxu0 %v11407_v29  ;;  %5145 = vmatpush.bf16.msrb.mxu2 %v11365_v16  ;;  %v3259_v29 = vpop.f32.mrf.mxu1 }
 0x209   : > { %v3260_v63 = vadd.f32 %v3259_v29, %v3246_v56  ;;  %v11380_v56 = vld [vmem:[%s14591_s3 + $0x40] sm:$0xff] }
 0x20a   : > { %5474 = vmatpush.bf16.msrb.mxu3 %v11399_v53  ;;  %5505 = vmatpush.bf16.msra.mxu1 %v11412_v46  ;;  %v11423_v53 = vld [vmem:[%s14591_s3 + $0x198] sm:$0xff]  ;;  %v11384_v46 = vld [vmem:[%s14591_s3 + $0x60] sm:$0xff] }
 0x20b   : > { %v3530_v9 = vadd.f32 %v3527_v27, %v3260_v63 }
 0x20c   : > { %5489 = vmatpush.bf16.msra.mxu0 %v11406_v24  ;;  %5146 = vmatpush.bf16.msrb.mxu2 %v11364_v30  ;;  %v11392_v24 = vld [vmem:[%s14591_s3 + $0xa0] sm:$0xff]  ;;  %v5175_v30 = vunpack.c.l.b16 %v5166_v5 }
 0x20d   : > { %5506 = vmatmul.bf16.vlgmr.msra.gmra.mxu1 %v5276_v57  ;;  %v3532_v12 = vadd.f32 %v13377_v1, %v3530_v9  ;;  %v11422_v1 = vld [vmem:[%s14591_s3 + $0x190] sm:$0xff]  ;;  %v11435_v57 = vld [vmem:[%s14591_s3 + $0x1f8] sm:$0xff] }
 0x20e   : > { %5923 = vmatpush.bf16.msrb.mxu1 %v11427_v61  ;;  %5475 = vmatpush.bf16.msrb.mxu3 %v11398_v59  ;;  %v11391_v61 = vld [vmem:[%s14591_s3 + $0x98] sm:$0xff]  ;;  %v11421_v59 = vld [vmem:[%s14591_s3 + $0x188] sm:$0xff]  ;;  %v5176_v39 = vpack.c.b16 %v5175_v30, %v5175_v30 }
 0x20f   : > { %5147 = vmatmul.bf16.vlgmr.msrb.gmra.mxu2 %v4917_v51  ;;  %v3534_v33 = vmax.f32 %v3532_v12, 0.0  ;;  %v5178_v51 = vshrl.u32 %v13922_v18, 16  ;;  %v11441_v12 = vld [vmem:[%s14591_s3 + $0x228] sm:$0xff] }
 0x210   : > { %5490 = vmatpush.bf16.msra.mxu0 %v11405_v23  ;;  %5656 = vmatpush.bf16.msra.mxu2 %v11379_v32  ;;  %v13934_v19 = vpop.f32.mrf.mxu1  ;;  %v11390_v23 = vld [vmem:[%s14591_s3 + $0x90] sm:$0xff]  ;;  %v11389_v32 = vld [vmem:[%s14591_s3 + $0x88] sm:$0xff]  ;;  %v5194_v45 = vrot.slane %v5176_v39, 1  ;;  %v5185_v60 = vshll.u32 %v5176_v39, 16 }
 0x211   : > { %v11621_v16 = vpack.c.bf16 %v3534_v33, %v3533_v14  ;;  %v11472_v14 = vld [vmem:[%s14591_s3 + $0xe0] sm:$0xff]  ;;  %v11431_v33 = vld [vmem:[%s14591_s3 + $0x1d8] sm:$0xff]  ;;  %v11429_v39 = vld [vmem:[%s14591_s3 + $0x1c8] sm:$0xff] }
 0x212   : > { %5924 = vmatpush.bf16.msrb.mxu1 %v11426_v15  ;;  %5476 = vmatpush.bf16.msrb.mxu3 %v11397_v43  ;;  %v11372_v15 = vld [vmem:[%s14591_s3] sm:$0xff]  ;;  %v5180_v43 = vshll.u32 %v13922_v18, 16  ;;  %v3869_v0 = vpop.f32.mrf.mxu2  ;;  %v5187_v6 = vrot.slane %v5185_v60, 1 }
 0x213   : > { %11692 = vst [vmem:[%s13421_s6 + $0x10] sm:$0xff] %v11621_v16  }
 0x214   : > { %5491 = vmatpush.bf16.msra.mxu0 %v11404_v26  ;;  %5657 = vmatpush.bf16.msra.mxu2 %v11378_v3  ;;  %v11388_v26 = vld [vmem:[%s14591_s3 + $0x80] sm:$0xff]  ;;  %v11434_v3 = vld [vmem:[%s14591_s3 + $0x1f0] sm:$0xff]  ;;  %v13997_v55 = vpop.f32.mrf.mxu0 }
 0x216   : > { %5925 = vmatpush.bf16.msrb.mxu1 %v11425_v47  ;;  %5477 = vmatpush.bf16.msrb.mxu3 %v11396_v52  ;;  %v11481_v47 = vld [vmem:[%s14591_s3 + $0x128] sm:$0xff]  ;;  %v5182_v52 = vrot.slane %v5180_v43, 1  ;;  %v5712_v43 = vshrl.u32 %v13939_v28, 16 }
 0x217   : > { %5492 = vmatmul.bf16.vlgmr.msra.gmra.mxu0 %v5269_v2  ;;  %v5195_v2 = vsel %vm1128_vm12, %v5193_v11, %v5194_v45 }
 0x218   : > { %5684 = vmatpush.bf16.msrb.mxu0 %v11395_v31  ;;  %5658 = vmatpush.bf16.msra.mxu2 %v11377_v4  ;;  %v13974_v44 = vpop.f32.mrf.mxu1  ;;  %v11475_v31 = vld [vmem:[%s14591_s3 + $0xf8] sm:$0xff]  ;;  %v11433_v4 = vld [vmem:[%s14591_s3 + $0x1e8] sm:$0xff]  ;;  %v5183_v29 = vor.u32 %v5182_v52, %v5178_v51 }
 0x219   : > { %5478 = vmatmul.bf16.vlgmr.msrb.gmra.mxu3 %v13680_v58  ;;  %v11375_v58 = vld [vmem:[%s14591_s3 + $0x18] sm:$0xff]  ;;  %v11469_v52 = vld [vmem:[%s14591_s3 + $0xc8] sm:$0xff] }
 0x21a   : > { %5670 = vmatpush.bf16.msra.mxu3 %v11387_v54  ;;  %5926 = vmatpush.bf16.msrb.mxu1 %v11424_v50  ;;  %v11443_v54 = vld [vmem:[%s14591_s3 + $0x238] sm:$0xff]  ;;  %v11480_v50 = vld [vmem:[%s14591_s3 + $0x120] sm:$0xff]  ;;  %v5188_v9 = vsel %vm1111_vm13, %v5183_v29, %v5187_v6 }
 0x21b   : > { %v11468_v6 = vld [vmem:[%s14591_s3 + $0xc0] sm:$0xff] }
 0x21c   : > { %5685 = vmatpush.bf16.msrb.mxu0 %v11394_v62  ;;  %5659 = vmatpush.bf16.msra.mxu2 %v11376_v10  ;;  %v14002_v62 = vld [vmem:[#allocation2 + $0x54] sm:$0xff]   ;;  %v3883_v27 = vpop.f32.mrf.mxu3  ;;  %v11432_v10 = vld [vmem:[%s14591_s3 + $0x1e0] sm:$0xff] }
 0x21e   : > { %5671 = vmatpush.bf16.msra.mxu3 %v11386_v7  ;;  %5927 = vmatpush.bf16.msrb.mxu1 %v11423_v53  ;;  %v11442_v7 = vld [vmem:[%s14591_s3 + $0x230] sm:$0xff]  ;;  %v11479_v53 = vld [vmem:[%s14591_s3 + $0x118] sm:$0xff] }
 0x220   : > { %5686 = vmatpush.bf16.msrb.mxu0 %v11393_v48  ;;  %5660 = vmatpush.bf16.msra.mxu2 %v11375_v58  ;;  %v14013_v63 = vpop.f32.mrf.mxu1  ;;  %v11473_v48 = vld [vmem:[%s14591_s3 + $0xe8] sm:$0xff]  ;;  %v11478_v58 = vld [vmem:[%s14591_s3 + $0x110] sm:$0xff] }
 0x222   : > { %5672 = vmatpush.bf16.msra.mxu3 %v11385_v20  ;;  %5928 = vmatpush.bf16.msrb.mxu1 %v11422_v1  ;;  %v6068_v20 = vunpack.c.l.b16 %v6059_v22  ;;  %v14040_v1 = vpop.f32.mrf.mxu0 }
 0x224   : > { %5687 = vmatpush.bf16.msrb.mxu0 %v11392_v24  ;;  %5661 = vmatpush.bf16.msra.mxu2 %v11374_v13  ;;  %v5700_v24 = vld [vmem:[#allocation2 + $0x5c] sm:$0x1]  ;;  %v14045_v17 = vpack.c.b16 %v6068_v20, %v6068_v20  ;;  %v3885_v5 = vpop.f32.mrf.mxu3 }
 0x225   : > { %v5709_v16 = vunpack.c.l.b16 %v5700_v24  ;;  %v11471_v13 = vld [vmem:[%s14591_s3 + $0xd8] sm:$0xff] }
 0x226   : > { %5673 = vmatpush.bf16.msra.mxu3 %v11384_v46  ;;  %5929 = vmatpush.bf16.msrb.mxu1 %v11421_v59  ;;  %v3871_v46 = vpop.f32.mrf.mxu2  ;;  %v11451_v24 = vld [vmem:[%s14591_s3 + $0x38] sm:$0xff] }
 0x227   : > { %v3872_v51 = vadd.f32 %v3871_v46, %v13974_v44  ;;  %v11491_v44 = vld [vmem:[%s14591_s3 + $0x178] sm:$0xff] }
 0x228   : > { %5688 = vmatpush.bf16.msrb.mxu0 %v11391_v61  ;;  %5662 = vmatpush.bf16.msra.mxu2 %v11373_v25  ;;  %v6073_v61 = vshll.u32 %v14002_v62, 16  ;;  %v14051_v59 = vpop.f32.mrf.mxu1  ;;  %v11439_v25 = vld [vmem:[%s14591_s3 + $0x218] sm:$0xff] }
 0x22a   : > { %5674 = vmatpush.bf16.msra.mxu3 %v11383_v21  ;;  %5930 = vmatpush.bf16.msrb.mxu1 %v11420_v36  ;;  %v11430_v21 = vld [vmem:[%s14591_s3 + $0x1d0] sm:$0xff]  ;;  %v6071_v36 = vshrl.u32 %v14002_v62, 16  ;;  %v6075_v30 = vrot.slane %v6073_v61, 1  ;;  %v11489_v61 = vld [vmem:[%s14591_s3 + $0x168] sm:$0xff] }
 0x22c   : > { %5689 = vmatpush.bf16.msrb.mxu0 %v11390_v23  ;;  %5663 = vmatpush.bf16.msra.mxu2 %v11372_v15  ;;  %v14059_v23 = vpack.c.b16 %v5709_v16, %v5709_v16  ;;  %v11470_v15 = vld [vmem:[%s14591_s3 + $0xd0] sm:$0xff]  ;;  %v6076_v45 = vor.u32 %v6075_v30, %v6071_v36  ;;  %v14146_v36 = vld [vmem:[%s14592_s4] ss:$0 sm:$0xff] }
 0x22d   : > { %5931 = vmatmul.bf16.vlgmr.msrb.gmra.mxu1 %v13939_v28 }
 0x22e   : > { %6296 = vmatpush.bf16.msra.mxu1 %v11483_v37  ;;  %5675 = vmatpush.bf16.msra.mxu3 %v11382_v38  ;;  %v6078_v37 = vshll.u32 %v14045_v17, 16  ;;  %v5714_v38 = vshll.u32 %v13939_v28, 16  ;;  %v5719_v11 = vshll.u32 %v14059_v23, 16 }
 0x22f   : > { %5664 = vmatmul.bf16.vlgmr.msra.gmra.mxu2 %v13922_v18  ;;  %v11440_v18 = vld [vmem:[%s14591_s3 + $0x220] sm:$0xff] }
 0x230   : > { %5690 = vmatpush.bf16.msrb.mxu0 %v11389_v32  ;;  %5937 = vmatpush.bf16.msrb.mxu2 %v11435_v57  ;;  %v3870_v32 = vadd.f32 %v3869_v0, %v13934_v19  ;;  %v11476_v57 = vld [vmem:[%s14591_s3 + $0x100] sm:$0xff]  ;;  %v11467_v19 = vld [vmem:[%s14591_s3 + $0xb8] sm:$0xff]  ;;  %v4336_v28 = vpop.f32.mrf.mxu1  ;;  %v5721_v29 = vrot.slane %v5719_v11, 1  ;;  %v11791_v11 = vld [vmem:[#allocation2 + $0x54] sm:$0xe] }
 0x232   : > { %6297 = vmatpush.bf16.msra.mxu1 %v11482_v41  ;;  %5676 = vmatpush.bf16.msra.mxu3 %v11381_v34  ;;  %v3884_v41 = vadd.f32 %v3883_v27, %v3870_v32  ;;  %v11788_v34 = vld [vmem:[#allocation2 + $0x54] sm:$0xe]  ;;  %v11459_v27 = vld [vmem:[%s14591_s3 + $0x78] sm:$0xff] }
 0x233   : > { %v11463_v32 = vld [vmem:[%s14591_s3 + $0x98] sm:$0xff] }
 0x234   : > { %5691 = vmatpush.bf16.msrb.mxu0 %v11388_v26  ;;  %5938 = vmatpush.bf16.msrb.mxu2 %v11434_v3  ;;  %v4322_v42 = vpop.f32.mrf.mxu0  ;;  %v4069_v26 = vpop.f32.mrf.mxu2  ;;  %v6080_v3 = vrot.slane %v6078_v37, 1 }
 0x236   : > { %6298 = vmatpush.bf16.msra.mxu1 %v11481_v47  ;;  %5677 = vmatpush.bf16.msra.mxu3 %v11380_v56  ;;  %v5716_v47 = vrot.slane %v5714_v38, 1  ;;  %v11428_v56 = vld [vmem:[%s14591_s3 + $0x1c0] sm:$0xff] }
 0x237   : > { %5692 = vmatmul.bf16.vlgmr.msrb.gmra.mxu0 %v5195_v2  ;;  %v11466_v2 = vld [vmem:[%s14591_s3 + $0xb0] sm:$0xff]  ;;  %v11488_v38 = vld [vmem:[%s14591_s3 + $0x160] sm:$0xff] }
 0x238   : > { %6282 = vmatpush.bf16.msra.mxu0 %v11475_v31  ;;  %5939 = vmatpush.bf16.msrb.mxu2 %v11433_v4  ;;  %v11438_v31 = vld [vmem:[%s14591_s3 + $0x210] sm:$0xff]  ;;  %v6081_v4 = vsel %vm1111_vm13, %v6076_v45, %v6080_v3  ;;  %v11708_v45 = vld [vmem:[#allocation2 + $0x48] sm:$0xf0]  ;;  %v11455_v3 = vld [vmem:[%s14591_s3 + $0x58] sm:$0xff] }
 0x239   : > { %5678 = vmatmul.bf16.vlgmr.msra.gmra.mxu3 %v5188_v9 }
 0x23a   : > { %5951 = vmatpush.bf16.msrb.mxu3 %v11443_v54  ;;  %6299 = vmatpush.bf16.msra.mxu1 %v11480_v50  ;;  %v4042_v54 = vadd.f32 %v13997_v55, %v3884_v41  ;;  %v5717_v50 = vor.u32 %v5716_v47, %v5712_v43  ;;  %v11437_v55 = vld [vmem:[%s14591_s3 + $0x208] sm:$0xff]  ;;  %v11462_v43 = vld [vmem:[%s14591_s3 + $0x90] sm:$0xff] }
 0x23b   : > { %v11709_v47 = vld [vmem:[#allocation2 + $0x48] sm:$0xe] }
 0x23c   : > { %6283 = vmatpush.bf16.msra.mxu0 %v11474_v49  ;;  %5940 = vmatpush.bf16.msrb.mxu2 %v11432_v10  ;;  %v4308_v60 = vpop.f32.mrf.mxu3  ;;  %v3886_v49 = vadd.f32 %v3885_v5, %v3872_v51  ;;  %v4056_v22 = vadd.f32 %v14013_v63, %v4042_v54  ;;  %v11490_v10 = vld [vmem:[%s14591_s3 + $0x170] sm:$0xff]  ;;  %v4324_v63 = vpop.f32.mrf.mxu0  ;;  %v14185_v54 = vld [vmem:[#allocation2 + $0x48] sm:$0xff]  }
 0x23d   : > { %v4323_v0 = vadd.f32 %v4322_v42, %v4308_v60  ;;  %v11486_v51 = vld [vmem:[%s14591_s3 + $0x150] sm:$0xff]  ;;  %v11447_v60 = vld [vmem:[%s14591_s3 + $0x18] sm:$0xff] }
 0x23e   : > { %5952 = vmatpush.bf16.msrb.mxu3 %v11442_v7  ;;  %6300 = vmatpush.bf16.msra.mxu1 %v11479_v53  ;;  %v11789_v7 = vor.u32 %v11788_v34, %v13941_v40  ;;  %v11465_v53 = vld [vmem:[%s14591_s3 + $0xa8] sm:$0xff]  ;;  %v11436_v40 = vld [vmem:[%s14591_s3 + $0x200] sm:$0xff]  ;;  %v4070_v20 = vadd.f32 %v4069_v26, %v4056_v22  ;;  %v5978_v34 = vld [vmem:[#allocation2 + $0x50] sm:$0x1] }
 0x23f   : > { %v4337_v9 = vadd.f32 %v4336_v28, %v4323_v0  ;;  %v5987_v28 = vunpack.c.l.b16 %v5978_v34  ;;  %v11485_v0 = vld [vmem:[%s14591_s3 + $0x148] sm:$0xff]  ;;  %v11499_v22 = vld [vmem:[%s14591_s3 + $0x1b8] sm:$0xff] }
 0x240   : > { %6284 = vmatpush.bf16.msra.mxu0 %v11473_v48  ;;  %5941 = vmatpush.bf16.msrb.mxu2 %v11431_v33  ;;  %v4044_v48 = vadd.f32 %v14040_v1, %v3886_v49  ;;  %v5728_v1 = vrot.slane %v14059_v23, 1  ;;  %v5727_v5 = vrot.slane %v11789_v7, 1  ;;  %v11454_v49 = vld [vmem:[%s14591_s3 + $0x50] sm:$0xff]  ;;  %v11453_v7 = vld [vmem:[%s14591_s3 + $0x48] sm:$0xff] }
 0x241   : > { %v4341_v16 = vadd.f32 %v4337_v9, %v4070_v20  ;;  %v5990_v9 = vshrl.u32 %v14185_v54, 16  ;;  %v6087_v20 = vrot.slane %v14045_v17, 1  ;;  %v11498_v17 = vld [vmem:[%s14591_s3 + $0x1b0] sm:$0xff] }
 0x242   : > { %5953 = vmatpush.bf16.msrb.mxu3 %v11441_v12  ;;  %6301 = vmatpush.bf16.msra.mxu1 %v11478_v58  ;;  %v5722_v12 = vsel %vm1111_vm13, %v5717_v50, %v5721_v29  ;;  %v11458_v58 = vld [vmem:[%s14591_s3 + $0x70] sm:$0xff]  ;;  %v4058_v46 = vadd.f32 %v14051_v59, %v4044_v48  ;;  %v5729_v37 = vsel %vm1128_vm12, %v5727_v5, %v5728_v1  ;;  %v5992_v50 = vshll.u32 %v14185_v54, 16  ;;  %v11484_v48 = vld [vmem:[%s14591_s3 + $0x140] sm:$0xff]  ;;  %v11497_v5 = vld [vmem:[%s14591_s3 + $0x1a8] sm:$0xff] }
 0x243   : > { %v11450_v59 = vld [vmem:[%s14591_s3 + $0x30] sm:$0xff] }
 0x244   : > { %6285 = vmatpush.bf16.msra.mxu0 %v11472_v14  ;;  %5942 = vmatpush.bf16.msrb.mxu2 %v11430_v21  ;;  %v4071_v14 = vpop.f32.mrf.mxu2  ;;  %v4310_v33 = vpop.f32.mrf.mxu3  ;;  %v11446_v29 = vld [vmem:[%s14591_s3 + $0x10] sm:$0xff] }
 0x245   : > { %v4338_v21 = vpop.f32.mrf.mxu1 }
 0x246   : > { %5954 = vmatpush.bf16.msrb.mxu3 %v11440_v18  ;;  %6302 = vmatpush.bf16.msra.mxu1 %v11477_v8  ;;  %v4325_v18 = vadd.f32 %v4324_v63, %v4310_v33  ;;  %v4072_v8 = vadd.f32 %v4071_v14, %v4058_v46  ;;  %v11445_v63 = vld [vmem:[%s14591_s3 + $0x8] sm:$0xff]  ;;  %v11515_v14 = vld [vmem:[%s14591_s3 + $0x238] sm:$0xff]  ;;  %v11444_v46 = vld [vmem:[%s14591_s3] sm:$0xff] }
 0x247   : > { %v11545_v33 = vld [vmem:[%s14591_s3 + $0xe8] sm:$0xff] }
 0x248   : > { %6286 = vmatpush.bf16.msra.mxu0 %v11471_v13  ;;  %5943 = vmatpush.bf16.msrb.mxu2 %v11429_v39  ;;  %v11464_v13 = vld [vmem:[%s14591_s3 + $0xa0] sm:$0xff]  ;;  %v4339_v23 = vadd.f32 %v4338_v21, %v4325_v18  ;;  %v11449_v39 = vld [vmem:[%s14591_s3 + $0x28] sm:$0xff]  ;;  %v11507_v18 = vld [vmem:[%s14591_s3 + $0x1f8] sm:$0xff] }
 0x249   : > { %v11544_v21 = vld [vmem:[%s14591_s3 + $0xe0] sm:$0xff] }
 0x24a   : > { %5955 = vmatpush.bf16.msrb.mxu3 %v11439_v25  ;;  %6303 = vmatpush.bf16.msra.mxu1 %v11476_v57  ;;  %v11457_v25 = vld [vmem:[%s14591_s3 + $0x68] sm:$0xff]  ;;  %v4342_v30 = vadd.f32 %v4339_v23, %v4072_v8  ;;  %v11456_v57 = vld [vmem:[%s14591_s3 + $0x60] sm:$0xff]  ;;  %v11506_v8 = vld [vmem:[%s14591_s3 + $0x1f0] sm:$0xff] }
 0x24b   : > { %v11513_v23 = vld [vmem:[%s14591_s3 + $0x228] sm:$0xff] }
 0x24c   : > { %6287 = vmatpush.bf16.msra.mxu0 %v11470_v15  ;;  %5944 = vmatpush.bf16.msrb.mxu2 %v11428_v56  ;;  %v4344_v15 = vadd.f32 %v14146_v36, %v4342_v30  ;;  %v11710_v56 = vor.u32 %v11709_v47, %v11708_v45  ;;  %v11505_v30 = vld [vmem:[%s14591_s3 + $0x1e8] sm:$0xff]  ;;  %v11531_v45 = vld [vmem:[%s14591_s3 + $0x78] sm:$0xff] }
 0x24d   : > { %6304 = vmatmul.bf16.vlgmr.msra.gmra.mxu1 %v6081_v4  ;;  %v11547_v4 = vld [vmem:[%s14591_s3 + $0xf8] sm:$0xff] }
 0x24e   : > { %6496 = vmatpush.bf16.msrb.mxu1 %v11467_v19  ;;  %5956 = vmatpush.bf16.msrb.mxu3 %v11438_v31  ;;  %v4346_v42 = vmax.f32 %v4344_v15, 0.0  ;;  %v11487_v19 = vld [vmem:[%s14591_s3 + $0x158] sm:$0xff]  ;;  %v11448_v31 = vld [vmem:[%s14591_s3 + $0x20] sm:$0xff] }
 0x24f   : > { %5945 = vmatmul.bf16.vlgmr.msrb.gmra.mxu2 %v5722_v12  ;;  %v11504_v15 = vld [vmem:[%s14591_s3 + $0x1e0] sm:$0xff] }
 0x250   : > { %6288 = vmatpush.bf16.msra.mxu0 %v11469_v52  ;;  %6310 = vmatpush.bf16.msra.mxu2 %v11491_v44  ;;  %v11461_v52 = vld [vmem:[%s14591_s3 + $0x88] sm:$0xff]  ;;  %v11460_v44 = vld [vmem:[%s14591_s3 + $0x80] sm:$0xff] }
 0x252   : > { %6497 = vmatpush.bf16.msrb.mxu1 %v11466_v2  ;;  %5957 = vmatpush.bf16.msrb.mxu3 %v11437_v55  ;;  %v5988_v2 = vpack.c.b16 %v5987_v28, %v5987_v28  ;;  %v6005_v55 = vrot.slane %v11710_v56, 1  ;;  %v11712_v28 = vld [vmem:[#allocation2 + $0x60] sm:$0xe]  ;;  %v14315_v56 = vpop.f32.mrf.mxu1 }
 0x254   : > { %6289 = vmatpush.bf16.msra.mxu0 %v11468_v6  ;;  %6311 = vmatpush.bf16.msra.mxu2 %v11490_v10  ;;  %v6006_v6 = vrot.slane %v5988_v2, 1  ;;  %v5994_v10 = vrot.slane %v5992_v50, 1 }
 0x256   : > { %6498 = vmatpush.bf16.msrb.mxu1 %v11465_v53  ;;  %5958 = vmatpush.bf16.msrb.mxu3 %v11436_v40  ;;  %v5997_v53 = vshll.u32 %v5988_v2, 16  ;;  %v6007_v12 = vsel %vm1128_vm12, %v6005_v55, %v6006_v6  ;;  %v11530_v2 = vld [vmem:[%s14591_s3 + $0x70] sm:$0xff]  ;;  %v11508_v55 = vld [vmem:[%s14591_s3 + $0x200] sm:$0xff] }
 0x257   : > { %6290 = vmatmul.bf16.vlgmr.msra.gmra.mxu0 %v14002_v62  ;;  %v4343_v62 = vadd.f32 %v14146_v36, %v4341_v16 }
 0x258   : > { %6482 = vmatpush.bf16.msrb.mxu0 %v11459_v27  ;;  %6312 = vmatpush.bf16.msra.mxu2 %v11489_v61  ;;  %v11792_v27 = vor.u32 %v11791_v11, %v14004_v35  ;;  %v11546_v35 = vld [vmem:[%s14591_s3 + $0xf0] sm:$0xff]  ;;  %v5999_v1 = vrot.slane %v5997_v53, 1  ;;  %v14307_v11 = vpop.f32.mrf.mxu0 }
 0x259   : > { %5959 = vmatmul.bf16.vlgmr.msrb.gmra.mxu3 %v5729_v37  ;;  %v4345_v41 = vmax.f32 %v4343_v62, 0.0  ;;  %v11514_v61 = vld [vmem:[%s14591_s3 + $0x230] sm:$0xff]  ;;  %v14264_v62 = vpop.f32.mrf.mxu2  ;;  %v11512_v37 = vld [vmem:[%s14591_s3 + $0x220] sm:$0xff] }
 0x25a   : > { %6468 = vmatpush.bf16.msra.mxu3 %v11451_v24  ;;  %6499 = vmatpush.bf16.msrb.mxu1 %v11464_v13  ;;  %v6086_v40 = vrot.slane %v11792_v27, 1  ;;  %v11452_v24 = vld [vmem:[%s14591_s3 + $0x40] sm:$0xff] }
 0x25b   : > { %v11630_v26 = vpack.c.bf16 %v4346_v42, %v4345_v41  ;;  %v11541_v41 = vld [vmem:[%s14591_s3 + $0xc8] sm:$0xff]  ;;  %v11503_v42 = vld [vmem:[%s14591_s3 + $0x1d8] sm:$0xff] }
 0x25c   : > { %6483 = vmatpush.bf16.msrb.mxu0 %v11458_v58  ;;  %6313 = vmatpush.bf16.msra.mxu2 %v11488_v38  ;;  %v5995_v58 = vor.u32 %v5994_v10, %v5990_v9  ;;  %v6088_v16 = vsel %vm1128_vm12, %v6086_v40, %v6087_v20  ;;  %v11495_v38 = vld [vmem:[%s14591_s3 + $0x198] sm:$0xff] }
 0x25d   : > { %11696 = vst [vmem:[%s13421_s6 + $0x18] sm:$0xff] %v11630_v26   ;;  %v11493_v26 = vld [vmem:[%s14591_s3 + $0x188] sm:$0xff]  ;;  %v11563_v40 = vld [vmem:[%s14591_s3 + $0x178] sm:$0xff] }
 0x25e   : > { %6469 = vmatpush.bf16.msra.mxu3 %v11450_v59  ;;  %6500 = vmatpush.bf16.msrb.mxu1 %v11463_v32  ;;  %v6000_v13 = vsel %vm1111_vm13, %v5995_v58, %v5999_v1  ;;  %v11496_v59 = vld [vmem:[%s14591_s3 + $0x1a0] sm:$0xff]  ;;  %v11542_v32 = vld [vmem:[%s14591_s3 + $0xd0] sm:$0xff]  ;;  %v11553_v58 = vld [vmem:[%s14591_s3 + $0x128] sm:$0xff] }
 0x25f   : > { %v11528_v1 = vld [vmem:[%s14591_s3 + $0x60] sm:$0xff] }
 0x260   : > { %6484 = vmatpush.bf16.msrb.mxu0 %v11457_v25  ;;  %6314 = vmatpush.bf16.msra.mxu2 %v11487_v19  ;;  %v11543_v25 = vld [vmem:[%s14591_s3 + $0xd8] sm:$0xff]  ;;  %v6512_v19 = vld [vmem:[#allocation2 + $0x68] sm:$0x1]  ;;  %v4697_v20 = vpop.f32.mrf.mxu0 }
 0x261   : > { %v14296_v34 = vpop.f32.mrf.mxu2  ;;  %v6521_v47 = vunpack.c.l.b16 %v6512_v19 }
 0x262   : > { %6470 = vmatpush.bf16.msra.mxu3 %v11449_v39  ;;  %6501 = vmatpush.bf16.msrb.mxu1 %v11462_v43  ;;  %v11511_v39 = vld [vmem:[%s14591_s3 + $0x218] sm:$0xff]  ;;  %v11510_v43 = vld [vmem:[%s14591_s3 + $0x210] sm:$0xff] }
 0x264   : > { %6485 = vmatpush.bf16.msrb.mxu0 %v11456_v57  ;;  %6315 = vmatpush.bf16.msra.mxu2 %v11486_v51  ;;  %v11494_v57 = vld [vmem:[%s14591_s3 + $0x190] sm:$0xff] }
 0x265   : > { %v11502_v51 = vld [vmem:[%s14591_s3 + $0x1d0] sm:$0xff] }
 0x266   : > { %6471 = vmatpush.bf16.msra.mxu3 %v11448_v31  ;;  %6502 = vmatpush.bf16.msrb.mxu1 %v11461_v52  ;;  %v11540_v31 = vld [vmem:[%s14591_s3 + $0xc0] sm:$0xff] }
 0x267   : > { %v11711_v52 = vld [vmem:[#allocation2 + $0x60] sm:$0xf0] }
 0x268   : > { %6486 = vmatpush.bf16.msrb.mxu0 %v11455_v3  ;;  %6316 = vmatpush.bf16.msra.mxu2 %v11485_v0  ;;  %v11668_v3 = vld [vmem:[#allocation2 + $0x60] sm:$0xff]   ;;  %v11713_v50 = vor.u32 %v11712_v28, %v11711_v52 }
 0x269   : > { %v6885_v0 = vshll.u32 %v11668_v3, 16  ;;  %v6883_v27 = vshrl.u32 %v11668_v3, 16 }
 0x26a   : > { %6472 = vmatpush.bf16.msra.mxu3 %v11447_v60  ;;  %6503 = vmatpush.bf16.msrb.mxu1 %v11460_v44  ;;  %v11509_v60 = vld [vmem:[%s14591_s3 + $0x208] sm:$0xff]  ;;  %v11555_v44 = vld [vmem:[%s14591_s3 + $0x138] sm:$0xff]  ;;  %v6539_v9 = vrot.slane %v11713_v50, 1 }
 0x26c   : > { %6487 = vmatpush.bf16.msrb.mxu0 %v11454_v49  ;;  %6317 = vmatpush.bf16.msra.mxu2 %v11484_v48  ;;  %v11492_v49 = vld [vmem:[%s14591_s3 + $0x180] sm:$0xff]  ;;  %v6887_v48 = vrot.slane %v6885_v0, 1  ;;  %v11559_v0 = vld [vmem:[%s14591_s3 + $0x158] sm:$0xff] }
 0x26d   : > { %6504 = vmatmul.bf16.vlgmr.msrb.gmra.mxu1 %v6007_v12  ;;  %v11500_v12 = vld [vmem:[%s14591_s3 + $0x1c0] sm:$0xff] }
 0x26e   : > { %7094 = vmatpush.bf16.msra.mxu1 %v11547_v4  ;;  %6473 = vmatpush.bf16.msra.mxu3 %v11446_v29  ;;  %v6522_v4 = vpack.c.b16 %v6521_v47, %v6521_v47  ;;  %v11501_v29 = vld [vmem:[%s14591_s3 + $0x1c8] sm:$0xff]  ;;  %v11550_v47 = vld [vmem:[%s14591_s3 + $0x110] sm:$0xff] }
 0x26f   : > { %6318 = vmatmul.bf16.vlgmr.msra.gmra.mxu2 %v6088_v16 }
 0x270   : > { %6488 = vmatpush.bf16.msrb.mxu0 %v11453_v7  ;;  %6735 = vmatpush.bf16.msrb.mxu2 %v11499_v22  ;;  %v11523_v7 = vld [vmem:[%s14591_s3 + $0x38] sm:$0xff]  ;;  %v11554_v22 = vld [vmem:[%s14591_s3 + $0x130] sm:$0xff]  ;;  %v6540_v10 = vrot.slane %v6522_v4, 1  ;;  %v6531_v53 = vshll.u32 %v6522_v4, 16 }
 0x272   : > { %7095 = vmatpush.bf16.msra.mxu1 %v11546_v35  ;;  %6474 = vmatpush.bf16.msra.mxu3 %v11445_v63  ;;  %v14332_v6 = vpop.f32.mrf.mxu2  ;;  %v11529_v35 = vld [vmem:[%s14591_s3 + $0x68] sm:$0xff]  ;;  %v11522_v63 = vld [vmem:[%s14591_s3 + $0x30] sm:$0xff]  ;;  %v6533_v16 = vrot.slane %v6531_v53, 1 }
 0x274   : > { %6489 = vmatpush.bf16.msrb.mxu0 %v11452_v24  ;;  %6736 = vmatpush.bf16.msrb.mxu2 %v11498_v17  ;;  %v14352_v24 = vld [vmem:[#allocation2 + $0x54] sm:$0xff]   ;;  %v14356_v17 = vor.u32 %v6887_v48, %v6883_v27 }
 0x275   : > { %v11587_v27 = vld [vmem:[%s14591_s3 + $0x238] sm:$0xff] }
 0x276   : > { %7096 = vmatpush.bf16.msra.mxu1 %v11545_v33  ;;  %6475 = vmatpush.bf16.msra.mxu3 %v11444_v46  ;;  %v6541_v33 = vsel %vm1128_vm12, %v6539_v9, %v6540_v10  ;;  %v14365_v46 = vpop.f32.mrf.mxu1 }
 0x277   : > { %6490 = vmatmul.bf16.vlgmr.msrb.gmra.mxu0 %v6000_v13  ;;  %v6790_v13 = vld [vmem:[#allocation2 + $0x5c] sm:$0x1] }
 0x278   : > { %6763 = vmatpush.bf16.msra.mxu0 %v11515_v14  ;;  %6737 = vmatpush.bf16.msrb.mxu2 %v11497_v5  ;;  %v14354_v14 = vld [vmem:[#allocation2 + $0x54] sm:$0xf0]  ;;  %v11521_v5 = vld [vmem:[%s14591_s3 + $0x28] sm:$0xff] }
 0x279   : > { %6476 = vmatmul.bf16.vlgmr.msra.gmra.mxu3 %v14185_v54  ;;  %v4681_v54 = vpop.f32.mrf.mxu3 }
 0x27a   : > { %6749 = vmatpush.bf16.msrb.mxu3 %v11507_v18  ;;  %7097 = vmatpush.bf16.msra.mxu1 %v11544_v21  ;;  %v6534_v21 = vsel %vm1111_vm13, %v14356_v17, %v6533_v16  ;;  %v11586_v16 = vld [vmem:[%s14591_s3 + $0x230] sm:$0xff] }
 0x27c   : > { %6764 = vmatpush.bf16.msra.mxu0 %v11514_v61  ;;  %6738 = vmatpush.bf16.msrb.mxu2 %v11496_v59  ;;  %v11562_v61 = vld [vmem:[%s14591_s3 + $0x170] sm:$0xff]  ;;  %v4869_v59 = vpop.f32.mrf.mxu2 }
 0x27e   : > { %6750 = vmatpush.bf16.msrb.mxu3 %v11506_v8  ;;  %7098 = vmatpush.bf16.msra.mxu1 %v11543_v25  ;;  %v11552_v8 = vld [vmem:[%s14591_s3 + $0x120] sm:$0xff]  ;;  %v6799_v25 = vunpack.c.l.b16 %v6790_v13 }
 0x280   : > { %6765 = vmatpush.bf16.msra.mxu0 %v11513_v23  ;;  %6739 = vmatpush.bf16.msrb.mxu2 %v11495_v38  ;;  %v11527_v23 = vld [vmem:[%s14591_s3 + $0x58] sm:$0xff]  ;;  %v6871_v38 = vld [vmem:[#allocation2 + $0x68] sm:$0x1] }
 0x281   : > { %v4683_v18 = vpop.f32.mrf.mxu3  ;;  %v6880_v19 = vunpack.c.l.b16 %v6871_v38  ;;  %v11585_v38 = vld [vmem:[%s14591_s3 + $0x228] sm:$0xff] }
 0x282   : > { %6751 = vmatpush.bf16.msrb.mxu3 %v11505_v30  ;;  %7099 = vmatpush.bf16.msra.mxu1 %v11542_v32  ;;  %v4682_v30 = vadd.f32 %v4681_v54, %v14264_v62  ;;  %v5120_v32 = vpop.f32.mrf.mxu0  ;;  %v11526_v62 = vld [vmem:[%s14591_s3 + $0x50] sm:$0xff] }
 0x283   : > { %v14413_v28 = vpack.c.b16 %v6880_v19, %v6880_v19 }
 0x284   : > { %6766 = vmatpush.bf16.msra.mxu0 %v11512_v37  ;;  %6740 = vmatpush.bf16.msrb.mxu2 %v11494_v57  ;;  %v11561_v37 = vld [vmem:[%s14591_s3 + $0x168] sm:$0xff]  ;;  %v5134_v57 = vpop.f32.mrf.mxu1 }
 0x285   : > { %v5135_v54 = vadd.f32 %v5134_v57, %v5120_v32  ;;  %v6890_v9 = vshll.u32 %v14413_v28, 16  ;;  %v11571_v57 = vld [vmem:[%s14591_s3 + $0x1b8] sm:$0xff] }
 0x286   : > { %6752 = vmatpush.bf16.msrb.mxu3 %v11504_v15  ;;  %7100 = vmatpush.bf16.msra.mxu1 %v11541_v41  ;;  %v11520_v15 = vld [vmem:[%s14591_s3 + $0x20] sm:$0xff] }
 0x287   : > { %v6892_v13 = vrot.slane %v6890_v9, 1  ;;  %v11533_v9 = vld [vmem:[%s14591_s3 + $0x88] sm:$0xff] }
 0x288   : > { %6767 = vmatpush.bf16.msra.mxu0 %v11511_v39  ;;  %6741 = vmatpush.bf16.msrb.mxu2 %v11493_v26  ;;  %v11551_v39 = vld [vmem:[%s14591_s3 + $0x118] sm:$0xff]  ;;  %v4684_v26 = vadd.f32 %v4683_v18, %v14296_v34  ;;  %v11525_v34 = vld [vmem:[%s14591_s3 + $0x48] sm:$0xff] }
 0x289   : > { %v4881_v41 = vpop.f32.mrf.mxu3 }
 0x28a   : > { %6753 = vmatpush.bf16.msrb.mxu3 %v11503_v42  ;;  %7101 = vmatpush.bf16.msra.mxu1 %v11540_v31  ;;  %v14394_v42 = vpack.c.b16 %v6799_v25, %v6799_v25  ;;  %v11560_v31 = vld [vmem:[%s14591_s3 + $0x160] sm:$0xff] }
 0x28c   : > { %6768 = vmatpush.bf16.msra.mxu0 %v11510_v43  ;;  %6742 = vmatpush.bf16.msrb.mxu2 %v11492_v49  ;;  %v4696_v43 = vadd.f32 %v14307_v11, %v4682_v30  ;;  %v6809_v52 = vshll.u32 %v14394_v42, 16  ;;  %v5136_v10 = vpop.f32.mrf.mxu1  ;;  %v11579_v30 = vld [vmem:[%s14591_s3 + $0x1f8] sm:$0xff] }
 0x28d   : > { %7102 = vmatmul.bf16.vlgmr.msra.gmra.mxu1 %v11668_v3 }
 0x28e   : > { %7294 = vmatpush.bf16.msrb.mxu1 %v11531_v45  ;;  %6754 = vmatpush.bf16.msrb.mxu3 %v11502_v51  ;;  %v6804_v45 = vshll.u32 %v14352_v24, 16  ;;  %v6802_v51 = vshrl.u32 %v14352_v24, 16  ;;  %v4854_v49 = vadd.f32 %v14315_v56, %v4696_v43  ;;  %v11549_v56 = vld [vmem:[%s14591_s3 + $0x108] sm:$0xff]  ;;  %v11578_v43 = vld [vmem:[%s14591_s3 + $0x1f0] sm:$0xff] }
 0x28f   : > { %6743 = vmatmul.bf16.vlgmr.msrb.gmra.mxu2 %v11668_v3  ;;  %v11519_v3 = vld [vmem:[%s14591_s3 + $0x18] sm:$0xff] }
 0x290   : > { %6769 = vmatpush.bf16.msra.mxu0 %v11509_v60  ;;  %7108 = vmatpush.bf16.msra.mxu2 %v11555_v44  ;;  %v4698_v60 = vadd.f32 %v4697_v20, %v4684_v26  ;;  %v6806_v44 = vrot.slane %v6804_v45, 1  ;;  %v4868_v4 = vadd.f32 %v14332_v6, %v4854_v49  ;;  %v11584_v26 = vld [vmem:[%s14591_s3 + $0x220] sm:$0xff]  ;;  %v6899_v45 = vrot.slane %v14413_v28, 1  ;;  %v14503_v28 = vld [vmem:[#allocation2 + $0x6c] sm:$0xff]   ;;  %v7324_v49 = vld [vmem:[#allocation2 + $0x74] sm:$0x1] }
 0x291   : > { %v4883_v53 = vpop.f32.mrf.mxu3 }
 0x292   : > { %7295 = vmatpush.bf16.msrb.mxu1 %v11530_v2  ;;  %6755 = vmatpush.bf16.msrb.mxu3 %v11501_v29  ;;  %v5148_v11 = vpop.f32.mrf.mxu2  ;;  %v11518_v2 = vld [vmem:[%s14591_s3 + $0x10] sm:$0xff]  ;;  %v11524_v29 = vld [vmem:[%s14591_s3 + $0x40] sm:$0xff]  ;;  %v4882_v48 = vadd.f32 %v4881_v41, %v4868_v4  ;;  %v4856_v6 = vadd.f32 %v14365_v46, %v4698_v60 }
 0x293   : > { %v5149_v50 = vadd.f32 %v5148_v11, %v5135_v54  ;;  %v11793_v60 = vld [vmem:[#allocation2 + $0x6c] sm:$0xf0]  ;;  %v11576_v54 = vld [vmem:[%s14591_s3 + $0x1e0] sm:$0xff] }
 0x294   : > { %6770 = vmatpush.bf16.msra.mxu0 %v11508_v55  ;;  %7109 = vmatpush.bf16.msra.mxu2 %v11554_v22  ;;  %v5122_v55 = vpop.f32.mrf.mxu0  ;;  %v11558_v22 = vld [vmem:[%s14591_s3 + $0x150] sm:$0xff]  ;;  %v4870_v20 = vadd.f32 %v4869_v59, %v4856_v6  ;;  %v11568_v4 = vld [vmem:[%s14591_s3 + $0x1a0] sm:$0xff] }
 0x296   : > { %7296 = vmatpush.bf16.msrb.mxu1 %v11529_v35  ;;  %6756 = vmatpush.bf16.msrb.mxu3 %v11500_v12  ;;  %v6807_v35 = vor.u32 %v6806_v44, %v6802_v51  ;;  %v11517_v12 = vld [vmem:[%s14591_s3 + $0x8] sm:$0xff]  ;;  %v4884_v46 = vadd.f32 %v4883_v53, %v4870_v20  ;;  %v11583_v51 = vld [vmem:[%s14591_s3 + $0x218] sm:$0xff]  ;;  %v7338_v53 = vshll.u32 %v14503_v28, 16 }
 0x297   : > { %6771 = vmatmul.bf16.vlgmr.msra.gmra.mxu0 %v6541_v33  ;;  %v11548_v33 = vld [vmem:[%s14591_s3 + $0x100] sm:$0xff]  ;;  %v11535_v44 = vld [vmem:[%s14591_s3 + $0x98] sm:$0xff] }
 0x298   : > { %7280 = vmatpush.bf16.msrb.mxu0 %v11523_v7  ;;  %7110 = vmatpush.bf16.msra.mxu2 %v11553_v58  ;;  %v6811_v7 = vrot.slane %v6809_v52, 1  ;;  %v11569_v52 = vld [vmem:[%s14591_s3 + $0x1a8] sm:$0xff] }
 0x299   : > { %6757 = vmatmul.bf16.vlgmr.msrb.gmra.mxu3 %v6534_v21  ;;  %v11715_v21 = vld [vmem:[#allocation2 + $0x60] sm:$0xf0] }
 0x29a   : > { %7122 = vmatpush.bf16.msra.mxu3 %v11563_v40  ;;  %7297 = vmatpush.bf16.msrb.mxu1 %v11528_v1  ;;  %v5137_v40 = vadd.f32 %v5136_v10, %v5122_v55  ;;  %v5150_v58 = vpop.f32.mrf.mxu2  ;;  %v11539_v1 = vld [vmem:[%s14591_s3 + $0xb8] sm:$0xff]  ;;  %v11534_v55 = vld [vmem:[%s14591_s3 + $0x90] sm:$0xff]  ;;  %v11580_v10 = vld [vmem:[%s14591_s3 + $0x200] sm:$0xff] }
 0x29c   : > { %7281 = vmatpush.bf16.msrb.mxu0 %v11522_v63  ;;  %7111 = vmatpush.bf16.msra.mxu2 %v11552_v8  ;;  %v5153_v63 = vadd.f32 %v5149_v50, %v4882_v48  ;;  %v5151_v18 = vadd.f32 %v5150_v58, %v5137_v40  ;;  %v11716_v8 = vld [vmem:[#allocation2 + $0x60] sm:$0xe]  ;;  %v7333_v50 = vunpack.c.l.b16 %v7324_v49  ;;  %v11567_v48 = vld [vmem:[%s14591_s3 + $0x198] sm:$0xff] }
 0x29d   : > { %v11717_v32 = vor.u32 %v11716_v8, %v11715_v21  ;;  %v11532_v58 = vld [vmem:[%s14591_s3 + $0x80] sm:$0xff] }
 0x29e   : > { %7123 = vmatpush.bf16.msra.mxu3 %v11562_v61  ;;  %7298 = vmatpush.bf16.msrb.mxu1 %v11527_v23  ;;  %v6812_v61 = vsel %vm1111_vm13, %v6807_v35, %v6811_v7  ;;  %v11516_v23 = vld [vmem:[%s14591_s3] sm:$0xff]  ;;  %v5155_v59 = vadd.f32 %v14146_v36, %v5153_v63  ;;  %v5154_v25 = vadd.f32 %v5151_v18, %v4884_v46  ;;  %v5479_v7 = vpop.f32.mrf.mxu3  ;;  %v11574_v35 = vld [vmem:[%s14591_s3 + $0x1d0] sm:$0xff] }
 0x29f   : > { %v7334_v6 = vpack.c.b16 %v7333_v50, %v7333_v50  ;;  %v11572_v21 = vld [vmem:[%s14591_s3 + $0x1c0] sm:$0xff] }
 0x2a0   : > { %7282 = vmatpush.bf16.msrb.mxu0 %v11521_v5  ;;  %7112 = vmatpush.bf16.msra.mxu2 %v11551_v39  ;;  %v11557_v5 = vld [vmem:[%s14591_s3 + $0x148] sm:$0xff]  ;;  %v6893_v39 = vsel %vm1111_vm13, %v14356_v17, %v6892_v13  ;;  %v5157_v41 = vmax.f32 %v5155_v59, 0.0 }
 0x2a1   : > { %v11537_v17 = vld [vmem:[%s14591_s3 + $0xa8] sm:$0xff]  ;;  %v7352_v20 = vrot.slane %v7334_v6, 1  ;;  %v7343_v46 = vshll.u32 %v7334_v6, 16 }
 0x2a2   : > { %7124 = vmatpush.bf16.msra.mxu3 %v11561_v37  ;;  %7299 = vmatpush.bf16.msrb.mxu1 %v11526_v62  ;;  %v11538_v37 = vld [vmem:[%s14591_s3 + $0xb0] sm:$0xff]  ;;  %v11556_v62 = vld [vmem:[%s14591_s3 + $0x140] sm:$0xff]  ;;  %v11565_v13 = vld [vmem:[%s14591_s3 + $0x188] sm:$0xff] }
 0x2a3   : > { %v7345_v59 = vrot.slane %v7343_v46, 1 }
 0x2a4   : > { %7283 = vmatpush.bf16.msrb.mxu0 %v11520_v15  ;;  %7113 = vmatpush.bf16.msra.mxu2 %v11550_v47  ;;  %v5156_v15 = vadd.f32 %v14146_v36, %v5154_v25  ;;  %v11570_v47 = vld [vmem:[%s14591_s3 + $0x1b0] sm:$0xff] }
 0x2a6   : > { %7125 = vmatpush.bf16.msra.mxu3 %v11560_v31  ;;  %7300 = vmatpush.bf16.msrb.mxu1 %v11525_v34  ;;  %v5158_v19 = vmax.f32 %v5156_v15, 0.0  ;;  %v6898_v31 = vrot.slane %v11717_v32, 1  ;;  %v11577_v34 = vld [vmem:[%s14591_s3 + $0x1e8] sm:$0xff] }
 0x2a8   : > { %7284 = vmatpush.bf16.msrb.mxu0 %v11519_v3  ;;  %7114 = vmatpush.bf16.msra.mxu2 %v11549_v56  ;;  %v11643_v3 = vpack.c.bf16 %v5158_v19, %v5157_v41  ;;  %v6900_v11 = vsel %vm1128_vm12, %v6898_v31, %v6899_v45  ;;  %v11575_v56 = vld [vmem:[%s14591_s3 + $0x1d8] sm:$0xff] }
 0x2aa   : > { %7126 = vmatpush.bf16.msra.mxu3 %v11559_v0  ;;  %7301 = vmatpush.bf16.msrb.mxu1 %v11524_v29  ;;  %11703 = vst [vmem:[%s13421_s6 + $0x20] sm:$0xff] %v11643_v3   ;;  %v11794_v0 = vld [vmem:[#allocation2 + $0x6c] sm:$0xe]  ;;  %v11797_v29 = vld [vmem:[#allocation2 + $0x54] sm:$0xe] }
 0x2ab   : > { %v11798_v63 = vor.u32 %v11797_v29, %v14354_v14  ;;  %v6818_v14 = vrot.slane %v14394_v42, 1  ;;  %v11564_v42 = vld [vmem:[%s14591_s3 + $0x180] sm:$0xff] }
 0x2ac   : > { %7285 = vmatpush.bf16.msrb.mxu0 %v11518_v2  ;;  %7115 = vmatpush.bf16.msra.mxu2 %v11548_v33  ;;  %v11582_v2 = vld [vmem:[%s14591_s3 + $0x210] sm:$0xff]  ;;  %v11573_v33 = vld [vmem:[%s14591_s3 + $0x1c8] sm:$0xff] }
 0x2ad   : > { %7302 = vmatmul.bf16.vlgmr.msrb.gmra.mxu1 %v6812_v61  ;;  %v6817_v61 = vrot.slane %v11798_v63, 1 }
 0x2ae   : > { %7575 = vmatpush.bf16.msra.mxu1 %v11587_v27  ;;  %7127 = vmatpush.bf16.msra.mxu3 %v11558_v22  ;;  %v11581_v27 = vld [vmem:[%s14591_s3 + $0x208] sm:$0xff]  ;;  %v11795_v22 = vor.u32 %v11794_v0, %v11793_v60 }
 0x2af   : > { %7116 = vmatmul.bf16.vlgmr.msra.gmra.mxu2 %v6893_v39  ;;  %v6819_v25 = vsel %vm1128_vm12, %v6817_v61, %v6818_v14 }
 0x2b0   : > { %7286 = vmatpush.bf16.msrb.mxu0 %v11517_v12  ;;  %7308 = vmatpush.bf16.msrb.mxu2 %v11539_v1  ;;  %v11566_v12 = vld [vmem:[%s14591_s3 + $0x190] sm:$0xff]  ;;  %v7351_v40 = vrot.slane %v11795_v22, 1  ;;  %v7336_v1 = vshrl.u32 %v14503_v28, 16 }
 0x2b2   : > { %7576 = vmatpush.bf16.msra.mxu1 %v11586_v16  ;;  %7128 = vmatpush.bf16.msra.mxu3 %v11557_v5  ;;  %v7340_v16 = vrot.slane %v7338_v53, 1  ;;  %v7353_v18 = vsel %vm1128_vm12, %v7351_v40, %v7352_v20  ;;  %v5481_v5 = vpop.f32.mrf.mxu3  ;;  %v5665_v8 = vpop.f32.mrf.mxu2 }
 0x2b4   : > { %7287 = vmatpush.bf16.msrb.mxu0 %v11516_v23  ;;  %7309 = vmatpush.bf16.msrb.mxu2 %v11538_v37  ;;  %v7341_v23 = vor.u32 %v7340_v16, %v7336_v1  ;;  %v5493_v37 = vpop.f32.mrf.mxu0 }
 0x2b5   : > { %v5494_v41 = vadd.f32 %v5493_v37, %v5479_v7 }
 0x2b6   : > { %7577 = vmatpush.bf16.msra.mxu1 %v11585_v38  ;;  %7129 = vmatpush.bf16.msra.mxu3 %v11556_v62  ;;  %v7346_v38 = vsel %vm1111_vm13, %v7341_v23, %v7345_v59 }
 0x2b7   : > { %7288 = vmatmul.bf16.vlgmr.msrb.gmra.mxu0 %v14352_v24  ;;  %v11536_v24 = vld [vmem:[%s14591_s3 + $0xa0] sm:$0xff] }
 0x2b8   : > { %7561 = vmatpush.bf16.msra.mxu0 %v11579_v30  ;;  %7310 = vmatpush.bf16.msrb.mxu2 %v11537_v17  ;;  %v5507_v30 = vpop.f32.mrf.mxu1 }
 0x2b9   : > { %7130 = vmatmul.bf16.vlgmr.msra.gmra.mxu3 %v6900_v11 }
 0x2ba   : > { %7547 = vmatpush.bf16.msrb.mxu3 %v11571_v57  ;;  %7578 = vmatpush.bf16.msra.mxu1 %v11584_v26  ;;  %v5667_v15 = vpop.f32.mrf.mxu2  ;;  %v5508_v26 = vadd.f32 %v5507_v30, %v5494_v41 }
 0x2bc   : > { %7562 = vmatpush.bf16.msra.mxu0 %v11578_v43  ;;  %7311 = vmatpush.bf16.msrb.mxu2 %v11536_v24  ;;  %v5679_v32 = vpop.f32.mrf.mxu3  ;;  %v5495_v62 = vpop.f32.mrf.mxu0  ;;  %v5666_v45 = vadd.f32 %v5665_v8, %v5508_v26 }
 0x2bd   : > { %v5496_v17 = vadd.f32 %v5495_v62, %v5481_v5 }
 0x2be   : > { %7548 = vmatpush.bf16.msrb.mxu3 %v11570_v47  ;;  %7579 = vmatpush.bf16.msra.mxu1 %v11583_v51  ;;  %v5680_v47 = vadd.f32 %v5679_v32, %v5666_v45 }
 0x2c0   : > { %7563 = vmatpush.bf16.msra.mxu0 %v11577_v34  ;;  %7312 = vmatpush.bf16.msrb.mxu2 %v11535_v44  ;;  %v5509_v39 = vpop.f32.mrf.mxu1 }
 0x2c1   : > { %v5510_v34 = vadd.f32 %v5509_v39, %v5496_v17 }
 0x2c2   : > { %7549 = vmatpush.bf16.msrb.mxu3 %v11569_v52  ;;  %7580 = vmatpush.bf16.msra.mxu1 %v11582_v2 }
 0x2c3   : > { %v5668_v24 = vadd.f32 %v5667_v15, %v5510_v34 }
 0x2c4   : > { %7564 = vmatpush.bf16.msra.mxu0 %v11576_v54  ;;  %7313 = vmatpush.bf16.msrb.mxu2 %v11534_v55  ;;  %v5681_v57 = vpop.f32.mrf.mxu3  ;;  %v5693_v31 = vpop.f32.mrf.mxu0 }
 0x2c5   : > { %v5682_v60 = vadd.f32 %v5681_v57, %v5668_v24 }
 0x2c6   : > { %7550 = vmatpush.bf16.msrb.mxu3 %v11568_v4  ;;  %7581 = vmatpush.bf16.msra.mxu1 %v11581_v27 }
 0x2c8   : > { %7565 = vmatpush.bf16.msra.mxu0 %v11575_v56  ;;  %7314 = vmatpush.bf16.msrb.mxu2 %v11533_v9  ;;  %v5932_v43 = vpop.f32.mrf.mxu1 }
 0x2ca   : > { %7551 = vmatpush.bf16.msrb.mxu3 %v11567_v48  ;;  %7582 = vmatpush.bf16.msra.mxu1 %v11580_v10 }
 0x2cc   : > { %7566 = vmatpush.bf16.msra.mxu0 %v11574_v35  ;;  %7315 = vmatpush.bf16.msrb.mxu2 %v11532_v58  ;;  %v5695_v44 = vpop.f32.mrf.mxu0 }
 0x2cd   : > { %7583 = vmatmul.bf16.vlgmr.msra.gmra.mxu1 %v7353_v18  ;;  %v5696_v4 = vadd.f32 %v5695_v44, %v5682_v60 }
 0x2ce   : > { %7552 = vmatpush.bf16.msrb.mxu3 %v11566_v12 }
 0x2cf   : > { %7316 = vmatmul.bf16.vlgmr.msrb.gmra.mxu2 %v6819_v25 }
 0x2d0   : > { %7567 = vmatpush.bf16.msra.mxu0 %v11573_v33  ;;  %v5934_v54 = vpop.f32.mrf.mxu1 }
 0x2d2   : > { %7553 = vmatpush.bf16.msrb.mxu3 %v11565_v13  ;;  %v5946_v19 = vpop.f32.mrf.mxu2 }
 0x2d3   : > { %v5947_v11 = vadd.f32 %v5946_v19, %v5932_v43 }
 0x2d4   : > { %7568 = vmatpush.bf16.msra.mxu0 %v11572_v21  ;;  %v6291_v6 = vpop.f32.mrf.mxu0 }
 0x2d6   : > { %7554 = vmatpush.bf16.msrb.mxu3 %v11564_v42 }
 0x2d7   : > { %7569 = vmatmul.bf16.vlgmr.msra.gmra.mxu0 %v7346_v38 }
 0x2d8   : > { %v6305_v9 = vpop.f32.mrf.mxu1 }
 0x2d9   : > { %7555 = vmatmul.bf16.vlgmr.msrb.gmra.mxu3 %v14503_v28  ;;  %v5694_v28 = vadd.f32 %v5693_v31, %v5680_v47  ;;  %v6306_v33 = vadd.f32 %v6305_v9, %v6291_v6 }
 0x2da   : > { %v5948_v52 = vpop.f32.mrf.mxu2 }
 0x2db   : > { %v5949_v0 = vadd.f32 %v5948_v52, %v5934_v54 }
 0x2dc   : > { %v5960_v3 = vpop.f32.mrf.mxu3  ;;  %v6293_v22 = vpop.f32.mrf.mxu0 }
 0x2dd   : > { %v5961_v51 = vadd.f32 %v5960_v3, %v5947_v11 }
 0x2df   : > { %v5965_v49 = vadd.f32 %v5961_v51, %v5694_v28 }
 0x2e0   : > { %v6307_v40 = vpop.f32.mrf.mxu1 }
 0x2e1   : > { %v5967_v56 = vadd.f32 %v14146_v36, %v5965_v49  ;;  %v6308_v16 = vadd.f32 %v6307_v40, %v6293_v22 }
 0x2e3   : > { %v5969_v27 = vmax.f32 %v5967_v56, 0.0 }
 0x2e4   : > { %v5962_v2 = vpop.f32.mrf.mxu3 }
 0x2e5   : > { %v5963_v50 = vadd.f32 %v5962_v2, %v5949_v0 }
 0x2e7   : > { %v5966_v29 = vadd.f32 %v5963_v50, %v5696_v4 }
 0x2e9   : > { %v5968_v55 = vadd.f32 %v14146_v36, %v5966_v29 }
 0x2ea   : > { %v6505_v46 = vpop.f32.mrf.mxu1 }
 0x2eb   : > { %v5970_v7 = vmax.f32 %v5968_v55, 0.0 }
 0x2ed   : > { %v11652_v48 = vpack.c.bf16 %v5970_v7, %v5969_v27 }
 0x2ef   : > { %11707 = vst [vmem:[%s13421_s6 + $0x28] sm:$0xff] %v11652_v48  }
 0x2f2   : > { %v6319_v35 = vpop.f32.mrf.mxu2  ;;  %v6507_v32 = vpop.f32.mrf.mxu1 }
 0x2f3   : > { %v6320_v58 = vadd.f32 %v6319_v35, %v6306_v33 }
 0x2f4   : > { %v6491_v10 = vpop.f32.mrf.mxu0 }
 0x2fa   : > { %v6321_v12 = vpop.f32.mrf.mxu2 }
 0x2fb   : > { %v6322_v13 = vadd.f32 %v6321_v12, %v6308_v16 }
 0x2fc   : > { %v6477_v53 = vpop.f32.mrf.mxu3  ;;  %v6493_v20 = vpop.f32.mrf.mxu0 }
 0x2fd   : > { %v6478_v18 = vadd.f32 %v6477_v53, %v6320_v58 }
 0x2ff   : > { %v6492_v21 = vadd.f32 %v6491_v10, %v6478_v18 }
 0x301   : > { %v6506_v59 = vadd.f32 %v6505_v46, %v6492_v21 }
 0x304   : > { %v6479_v63 = vpop.f32.mrf.mxu3 }
 0x305   : > { %v6480_v8 = vadd.f32 %v6479_v63, %v6322_v13 }
 0x307   : > { %v6494_v25 = vadd.f32 %v6493_v20, %v6480_v8 }
 0x309   : > { %v6508_v39 = vadd.f32 %v6507_v32, %v6494_v25 }
 0x30a   : > { %v7103_v31 = vpop.f32.mrf.mxu1 }
 0x312   : > { %v6744_v1 = vpop.f32.mrf.mxu2  ;;  %v7105_v45 = vpop.f32.mrf.mxu1 }
 0x314   : > { %v6772_v61 = vpop.f32.mrf.mxu0 }
 0x31a   : > { %v6746_v42 = vpop.f32.mrf.mxu2 }
 0x31c   : > { %v6758_v14 = vpop.f32.mrf.mxu3  ;;  %v6774_v15 = vpop.f32.mrf.mxu0 }
 0x31d   : > { %v6759_v5 = vadd.f32 %v6758_v14, %v6744_v1 }
 0x31f   : > { %v6773_v23 = vadd.f32 %v6772_v61, %v6759_v5 }
 0x321   : > { %v6777_v37 = vadd.f32 %v6773_v23, %v6506_v59 }
 0x323   : > { %v6779_v57 = vadd.f32 %v14146_v36, %v6777_v37 }
 0x324   : > { %v6760_v30 = vpop.f32.mrf.mxu3 }
 0x325   : > { %v6761_v38 = vadd.f32 %v6760_v30, %v6746_v42  ;;  %v6781_v43 = vmax.f32 %v6779_v57, 0.0 }
 0x327   : > { %v6775_v62 = vadd.f32 %v6774_v15, %v6761_v38 }
 0x329   : > { %v6778_v41 = vadd.f32 %v6775_v62, %v6508_v39 }
 0x32a   : > { %v7303_v34 = vpop.f32.mrf.mxu1 }
 0x32b   : > { %v6780_v19 = vadd.f32 %v14146_v36, %v6778_v41 }
 0x32d   : > { %v6782_v17 = vmax.f32 %v6780_v19, 0.0 }
 0x32f   : > { %v11665_v26 = vpack.c.bf16 %v6782_v17, %v6781_v43 }
 0x331   : > { %11714 = vst [vmem:[%s13421_s6 + $0x30] sm:$0xff] %v11665_v26  }
 0x332   : > { %v7117_v47 = vpop.f32.mrf.mxu2  ;;  %v7305_v52 = vpop.f32.mrf.mxu1 }
 0x333   : > { %v7118_v60 = vadd.f32 %v7117_v47, %v7103_v31 }
 0x334   : > { %v7289_v3 = vpop.f32.mrf.mxu0 }
 0x33a   : > { %v7119_v51 = vpop.f32.mrf.mxu2 }
 0x33b   : > { %v7120_v44 = vadd.f32 %v7119_v51, %v7105_v45 }
 0x33c   : > { %v7131_v11 = vpop.f32.mrf.mxu3  ;;  %v7291_v24 = vpop.f32.mrf.mxu0 }
 0x33d   : > { %v7132_v54 = vadd.f32 %v7131_v11, %v7118_v60 }
 0x33f   : > { %v7290_v50 = vadd.f32 %v7289_v3, %v7132_v54 }
 0x341   : > { %v7304_v27 = vadd.f32 %v7303_v34, %v7290_v50 }
 0x344   : > { %v7133_v28 = vpop.f32.mrf.mxu3 }
 0x345   : > { %v7134_v56 = vadd.f32 %v7133_v28, %v7120_v44 }
 0x347   : > { %v7292_v55 = vadd.f32 %v7291_v24, %v7134_v56 }
 0x349   : > { %v7306_v10 = vadd.f32 %v7305_v52, %v7292_v55 }
 0x34a   : > { %v7584_v2 = vpop.f32.mrf.mxu1 }
 0x352   : > { %v7317_v0 = vpop.f32.mrf.mxu2  ;;  %v7586_v12 = vpop.f32.mrf.mxu1 }
 0x353   : > { %v7318_v48 = vadd.f32 %v7317_v0, %v7304_v27 }
 0x354   : > { %v7570_v49 = vpop.f32.mrf.mxu0 }
 0x35a   : > { %v7319_v22 = vpop.f32.mrf.mxu2 }
 0x35b   : > { %v7320_v40 = vadd.f32 %v7319_v22, %v7306_v10 }
 0x35c   : > { %v7556_v4 = vpop.f32.mrf.mxu3  ;;  %v7572_v6 = vpop.f32.mrf.mxu0 }
 0x35d   : > { %v7571_v29 = vadd.f32 %v7570_v49, %v7556_v4 }
 0x35f   : > { %v7585_v7 = vadd.f32 %v7584_v2, %v7571_v29 }
 0x361   : > { %v7589_v9 = vadd.f32 %v7585_v7, %v7318_v48 }
 0x363   : > { %v7591_v63 = vadd.f32 %v14146_v36, %v7589_v9 }
 0x364   : > { %v7558_v35 = vpop.f32.mrf.mxu3 }
 0x365   : > { %v7573_v53 = vadd.f32 %v7572_v6, %v7558_v35  ;;  %v7593_v1 = vmax.f32 %v7591_v63, 0.0 }
 0x367   : > { %v7587_v20 = vadd.f32 %v7586_v12, %v7573_v53 }
 0x369   : > { %v7590_v33 = vadd.f32 %v7587_v20, %v7320_v40 }
 0x36b   : > { %v7592_v58 = vadd.f32 %v14146_v36, %v7590_v33 }
 0x36d   : > { %v7594_v16 = vmax.f32 %v7592_v58, 0.0 }
 0x36f   : > { %v11674_v46 = vpack.c.bf16 %v7594_v16, %v7593_v1 }
 0x371   : > { %11718 = vst [vmem:[%s13421_s6 + $0x38] sm:$0xff] %v11674_v46  }
 0x372 PF: > { %s14626_s19 = sld [smem:[#allocation5_spill]] }
 0x373   : > { %s14627_s18 = sld [smem:[#allocation3_spill]] }
 0x374   : > { %s14629_s20 = sld [smem:[#allocation6_spill]] }
 0x375   : > { %s14630_s21 = sld [smem:[#allocation7_spill]] }
 0x378   : > { %s15_s22 = sadd.s32 1, %s14626_s19   ;;  %s14628_s19 = sld [smem:[#allocation4_spill]] }
 0x379   : > { %p12_p0 = scmp.ge.s32.totalorder %s15_s22, 6  }
 0x37b   :  { %14 = sbr.rel (!%p12_p0) target bundleno = 4 (0x4), region = 98 }

</bundles_post_ra>
